<compile_context>
chip_gen: v7x
topology: tpu7x:2x2x1
jax: 0.10.0
libtpu: 0.0.40
codegen_flags: <defaults>
</compile_context>

<pallas_src>
import jax
import jax.numpy as jnp
import numpy as np
from jax import lax
from jax.experimental import pallas as pl
from jax.experimental.pallas import tpu as pltpu


def _round_up(x, m):
    return ((x + m - 1) // m) * m


def _vmem_capacity_bytes():
    """Physical VMEM per TensorCore; conservative (v7x-sized) fallback."""
    try:
        return int(pltpu.get_tpu_info().vmem_capacity_bytes)
    except Exception:
        return 64 * 1024 * 1024


def edge_score_kernel(idx_ref, p_ref, b_ref, out_ref):
    """One tile of edges: score = P[src] + P[Np + dst] + b.

    The per-edge row gather-add is a single one-hot matmul on the MXU
    (tile_e, 2*Np) @ (2*Np, Cp).  One-hot values are exactly 0/1 and the
    accumulation is f32, so the row selection is exact.
    Any src/dst index >= N selects an all-zero (padding) row -> score = bias.
    """
    tile_e = idx_ref.shape[0]
    two_np = p_ref.shape[0]
    n_pad = two_np // 2

    idx = idx_ref[...]                              # (tile_e, 2) int32
    su = idx[:, 0:1]                                # (tile_e, 1) src node id
    sv = idx[:, 1:2]                                # (tile_e, 1) dst node id

    ids = lax.broadcasted_iota(jnp.int32, (tile_e, two_np), 1)
    # combined selector: column src picks the Pu row, column Np+dst the Pv row
    oh = ((ids == su) | (ids == (sv + n_pad))).astype(p_ref.dtype)

    acc = jnp.dot(oh, p_ref[...], preferred_element_type=jnp.float32)
    out_ref[...] = (acc + b_ref[...]).astype(out_ref.dtype)


def _pick_tile_e(n_edges, n_pad, c_pad, vmem_limit, resident_bytes, tile_e_max):
    """Honest per-edge VMEM accounting of every per-tile consumer."""
    per_edge = (
        2 * 2 * 4            # double-buffered (tile_e, 2) int32 index block
        + 2 * c_pad * 4      # double-buffered (tile_e, Cp) output block (f32)
        + 2 * n_pad * 4      # (tile_e, 2*Np) f32 one-hot selector (transient)
        + c_pad * 4          # (tile_e, Cp) f32 accumulator (transient)
    )
    slack = 4 * 1024 * 1024  # headroom for compiler-internal scratch
    budget = vmem_limit - resident_bytes - slack
    tile = max(budget // per_edge, 8)
    tile = min(tile, tile_e_max, _round_up(n_edges, 8))
    return max(8, (tile // 8) * 8)


def mlp_predictor(h, src, dst, W, b, *, tile_e_max=2048):
    """h: [N, F] node features; src/dst: [E] int edge endpoints;
    W: [2F, C] (transpose of torch nn.Linear.weight [C, 2F]); b: [C].
    Returns [E, C] edge scores = Linear(cat([h[src], h[dst]], 1))."""
    N, F = int(h.shape[0]), int(h.shape[1])
    E = int(src.shape[0])
    C = int(W.shape[1])
    out_dtype = h.dtype

    Cp = _round_up(C, 128)      # lane-dense output / projection columns
    Np = _round_up(N, 8)        # sublane-aligned node rows
    # TODO(synk): when C << 128, repack k = 128 // C edge scores per lane-dense
    # output row to cut the padded-output HBM writeback (currently 128/C excess).

    # --- per-node projections, computed once in plain XLA (f32) -------------
    # cat([h_u, h_v], 1) @ W == (h @ Wu)[src] + (h @ Wv)[dst]; stacking the two
    # projections along rows turns the in-kernel gather+add into a single
    # one-hot matmul with K = 2*Np.
    h32 = h.astype(jnp.float32)
    W32 = W.astype(jnp.float32)
    Pu = jnp.dot(h32, W32[:F, :], precision=jax.lax.Precision.HIGHEST)   # (N, C)
    Pv = jnp.dot(h32, W32[F:, :], precision=jax.lax.Precision.HIGHEST)   # (N, C)
    P = jnp.zeros((2 * Np, Cp), jnp.float32)
    P = P.at[:N, :C].set(Pu).at[Np:Np + N, :C].set(Pv)
    b_p = jnp.zeros((1, Cp), jnp.float32).at[0, :C].set(b.astype(jnp.float32))

    # --- generation-aware VMEM budget ---------------------------------------
    cap = _vmem_capacity_bytes()
    vmem_limit = max(min(cap * 3 // 4, 96 * 1024 * 1024), 32 * 1024 * 1024)
    # residents accounted at 2 buffers (worst case with default pipelining)
    # TODO(synk): single-buffer the never-changing P / bias blocks with
    # pipeline_mode=pl.Buffered(1) to halve resident VMEM on v7x for huge graphs.
    resident_bytes = 2 * (2 * Np * Cp + Cp) * 4
    if resident_bytes > vmem_limit // 2:
        # TODO(synk): page the projection table in from HBM via manual DMA
        # (pl.ANY + pltpu.make_async_copy) for graphs too large to keep resident.
        raise ValueError("node projection table too large to keep VMEM-resident")

    tile_e = _pick_tile_e(E, Np, Cp, vmem_limit, resident_bytes, tile_e_max)
    Ep = _round_up(E, tile_e)
    idx = jnp.zeros((Ep, 2), jnp.int32)
    idx = idx.at[:E, 0].set(src.astype(jnp.int32))
    idx = idx.at[:E, 1].set(dst.astype(jnp.int32))

    grid = (Ep // tile_e,)

    cost = pl.CostEstimate(
        flops=int(2 * Ep * (2 * Np) * Cp),                 # one-hot gather matmul
        transcendentals=0,
        bytes_accessed=int(Ep * 2 * 4                      # edge indices
                           + 2 * Np * Cp * 4 + Cp * 4      # resident P + bias
                           + Ep * Cp * 4),                 # padded output
    )

    out = pl.pallas_call(
        edge_score_kernel,
        out_shape=jax.ShapeDtypeStruct((Ep, Cp), out_dtype),
        grid_spec=pltpu.PrefetchScalarGridSpec(
            num_scalar_prefetch=0,
            grid=grid,
            in_specs=[
                pl.BlockSpec((tile_e, 2), lambda i: (i, 0)),     # merged src/dst
                pl.BlockSpec((2 * Np, Cp), lambda i: (0, 0)),    # resident P
                pl.BlockSpec((1, Cp), lambda i: (0, 0)),         # resident bias
            ],
            out_specs=pl.BlockSpec((tile_e, Cp), lambda i: (i, 0)),
        ),
        compiler_params=pltpu.CompilerParams(
            dimension_semantics=("parallel",),   # edge tiles are independent
            vmem_limit_bytes=int(vmem_limit),
        ),
        cost_estimate=cost,
    )(idx, P, b_p)

    return out[:E, :C]


if __name__ == "__main__":
    key = jax.random.PRNGKey(0)
    kh, ks, kd, kw, kb = jax.random.split(key, 5)

    # small synthetic graph: N nodes, E edges, in_features=F, out_classes=C
    N, F, E, C = 64, 16, 1000, 8
    h = jax.random.normal(kh, (N, F), dtype=jnp.float32)
    src = jax.random.randint(ks, (E,), 0, N, dtype=jnp.int32)
    dst = jax.random.randint(kd, (E,), 0, N, dtype=jnp.int32)

    # params of nn.Linear(in_features*2, out_classes); W stored as [2F, C]
    W = jax.random.normal(kw, (2 * F, C), dtype=jnp.float32) * 0.1
    b = jax.random.normal(kb, (C,), dtype=jnp.float32) * 0.1

    out = jax.block_until_ready(mlp_predictor(h, src, dst, W, b))
    assert out.shape == (E, C)

    # host reference: the MLPPredictor forward, score = Linear(cat([h_u, h_v], 1))
    h_np, W_np, b_np = np.asarray(h), np.asarray(W), np.asarray(b)
    src_np, dst_np = np.asarray(src), np.asarray(dst)
    ref = np.concatenate([h_np[src_np], h_np[dst_np]], axis=1) @ W_np + b_np

    out_np = np.asarray(out)
    max_err = float(np.max(np.abs(out_np - ref)))
    assert np.allclose(out_np, ref, atol=5e-3, rtol=5e-3), max_err
    print("KERNEL_OK")
</pallas_src>

<mosaic_0001>
module attributes {stable_mosaic.version = 11 : i64} {
  func.func @edge_score_kernel(%arg0: i32, %arg1: memref<1000x2xi32, #tpu.memory_space<vmem>>, %arg2: memref<128x128xf32, #tpu.memory_space<vmem>>, %arg3: memref<1x128xf32, #tpu.memory_space<vmem>>, %arg4: memref<1000x128xf32, #tpu.memory_space<vmem>>) attributes {dimension_semantics = [#tpu.dimension_semantics<parallel>], iteration_bounds = array<i64: 1>, scalar_prefetch = 0 : i64, scratch_operands = 0 : i64, tpu.core_type = #tpu.core_type<tc>, window_params = [{transform_indices = @transform_0, window_bounds = array<i64: 1000, 2>}, {pipeline_mode = #tpu.pipeline_mode<synchronous>, transform_indices = @transform_1, window_bounds = array<i64: 128, 128>}, {pipeline_mode = #tpu.pipeline_mode<synchronous>, transform_indices = @transform_2, window_bounds = array<i64: 1, 128>}, {transform_indices = @transform_3, window_bounds = array<i64: 1000, 128>}]} {
    %c0 = arith.constant 0 : index
    %c0_0 = arith.constant 0 : index
    %0 = vector.load %arg1[%c0, %c0_0] : memref<1000x2xi32, #tpu.memory_space<vmem>>, vector<1000x2xi32>
    %1 = vector.extract_strided_slice %0 {offsets = [0, 0], sizes = [1000, 1], strides = [1, 1]} : vector<1000x2xi32> to vector<1000x1xi32>
    %2 = vector.extract_strided_slice %0 {offsets = [0, 1], sizes = [1000, 1], strides = [1, 1]} : vector<1000x2xi32> to vector<1000x1xi32>
    %3 = tpu.iota {dimensions = array<i32: 1>} : vector<1000x128xi32>
    %4 = vector.broadcast %1 : vector<1000x1xi32> to vector<1000x128xi32>
    %5 = arith.cmpi eq, %3, %4 : vector<1000x128xi32>
    %c64_i32 = arith.constant 64 : i32
    %6 = vector.broadcast %c64_i32 : i32 to vector<1000x1xi32>
    %7 = arith.addi %2, %6 : vector<1000x1xi32>
    %8 = vector.broadcast %7 : vector<1000x1xi32> to vector<1000x128xi32>
    %9 = arith.cmpi eq, %3, %8 : vector<1000x128xi32>
    %10 = arith.ori %5, %9 : vector<1000x128xi1>
    %11 = arith.extui %10 : vector<1000x128xi1> to vector<1000x128xi32>
    %12 = arith.sitofp %11 : vector<1000x128xi32> to vector<1000x128xf32>
    %c0_1 = arith.constant 0 : index
    %c0_2 = arith.constant 0 : index
    %13 = vector.load %arg2[%c0_1, %c0_2] : memref<128x128xf32, #tpu.memory_space<vmem>>, vector<128x128xf32>
    %cst = arith.constant dense<0.000000e+00> : vector<1000x128xf32>
    %14 = tpu.matmul %12, %13, %cst {dimension_numbers = #tpu.dot_dimension_numbers<[1], [0], [0], [1], [0, 0, 1, 1], [], []>} : vector<1000x128xf32>, vector<128x128xf32>, vector<1000x128xf32> -> vector<1000x128xf32>
    %c0_3 = arith.constant 0 : index
    %c0_4 = arith.constant 0 : index
    %15 = vector.load %arg3[%c0_3, %c0_4] : memref<1x128xf32, #tpu.memory_space<vmem>>, vector<1x128xf32>
    %16 = vector.broadcast %15 : vector<1x128xf32> to vector<1000x128xf32>
    %17 = arith.addf %14, %16 : vector<1000x128xf32>
    %c0_5 = arith.constant 0 : index
    %c0_6 = arith.constant 0 : index
    %18 = vector.load %arg4[%c0_5, %c0_6] : memref<1000x128xf32, #tpu.memory_space<vmem>>, vector<1000x128xf32>
    tpu.vector_store %arg4[%c0_5, %c0_6], %17 {strides = array<i32>} : memref<1000x128xf32, #tpu.memory_space<vmem>>, vector<1000x128xf32>,
    return
  }
  func.func @transform_0(%arg0: i32) -> (i32, i32) {
    %c0_i32 = arith.constant 0 : i32
    %c0_i32_0 = arith.constant 0 : i32
    return %arg0, %c0_i32 : i32, i32
  }
  func.func @transform_1(%arg0: i32) -> (i32, i32) {
    %c0_i32 = arith.constant 0 : i32
    %c0_i32_0 = arith.constant 0 : i32
    %c0_i32_1 = arith.constant 0 : i32
    return %c0_i32, %c0_i32_0 : i32, i32
  }
  func.func @transform_2(%arg0: i32) -> (i32, i32) {
    %c0_i32 = arith.constant 0 : i32
    %c0_i32_0 = arith.constant 0 : i32
    %c0_i32_1 = arith.constant 0 : i32
    return %c0_i32, %c0_i32_0 : i32, i32
  }
  func.func @transform_3(%arg0: i32) -> (i32, i32) {
    %c0_i32 = arith.constant 0 : i32
    %c0_i32_0 = arith.constant 0 : i32
    return %arg0, %c0_i32 : i32, i32
  }
}

</mosaic_0001>

<bundles_post_ra>
// kernel: tpu_custom_call.1
= control target key start
LH: loop header
LB: loop body
LE: loop exit
PB: predicated region body
PF: predicated region fallthrough
CT: control target
= control target key end

     0   :  { %v5541_v2 = vmov 0   ;;  %s5537_s0 = inlined_call_operand.vmem [shape: s32[1000,2], index: 0, kind: input, shape index: {}]   ;;  %s5538_s1 = inlined_call_operand.vmem [shape: f32[128,128], index: 1, kind: input, shape index: {}]   ;;  %s5539_s2 = inlined_call_operand.vmem [shape: f32[1,128], index: 2, kind: input, shape index: {}]   ;;  %s5540_s3 = inlined_call_operand.hbm [shape: f32[1000,128], index: 3, kind: output, shape index: {}]  }
   0x1   :  { %v3446_v0 = vld [vmem:[%s5537_s0 + $0x10] sm:$0xff]  ;;  %v3451_v1 = vld [vmem:[%s5537_s0] sm:$0xff]  ;;  %3345 = vset.pattern.permute.xlu1 %v5541_v2  ;;  %3344 = vset.pattern.permute.xlu0 %v5541_v2  ;;  %v3460_v3 = vld [vmem:[%s5537_s0 + $0x18] sm:$0xff] }
   0x2   :  { %149 = vperm.xlu1 %3345, %v3446_v0   ;;  %143 = vperm.xlu0 %3344, %v3451_v1   ;;  %v3465_v4 = vld [vmem:[%s5537_s0 + $0x8] sm:$0xff]  ;;  %v3477_v6 = vld [vmem:[%s5537_s0 + $0x20] sm:$0xff]  ;;  %v3484_v7 = vld [vmem:[%s5537_s0 + $0x38] sm:$0xff] }
   0x3   :  { %v3472_v5 = vld [vmem:[%s5537_s0 + $0x28] sm:$0xff]  ;;  %v3489_v8 = vld [vmem:[%s5537_s0 + $0x30] sm:$0xff]  ;;  %v3501_v10 = vld [vmem:[%s5537_s0 + $0x40] sm:$0xff] }
   0x4   :  { %v3496_v9 = vld [vmem:[%s5537_s0 + $0x48] sm:$0xff]  ;;  %v3508_v11 = vld [vmem:[%s5537_s0 + $0x58] sm:$0xff]  ;;  %v3513_v12 = vld [vmem:[%s5537_s0 + $0x50] sm:$0xff] }
   0x5   :  { %v3520_v13 = vld [vmem:[%s5537_s0 + $0x68] sm:$0xff]  ;;  %v3525_v14 = vld [vmem:[%s5537_s0 + $0x60] sm:$0xff] }
   0x6   :  { %152 = vperm.xlu1 %3345, %v3460_v3   ;;  %146 = vperm.xlu0 %3344, %v3465_v4  }
   0xa   :  { %158 = vperm.xlu1 %3345, %v3472_v5   ;;  %155 = vperm.xlu0 %3344, %v3477_v6  }
   0xe   :  { %164 = vperm.xlu1 %3345, %v3484_v7   ;;  %161 = vperm.xlu0 %3344, %v3489_v8  }
  0x12   :  { %170 = vperm.xlu1 %3345, %v3496_v9   ;;  %167 = vperm.xlu0 %3344, %v3501_v10  }
  0x16   :  { %176 = vperm.xlu1 %3345, %v3508_v11   ;;  %173 = vperm.xlu0 %3344, %v3513_v12  }
  0x1a   :  { %182 = vperm.xlu1 %3345, %v3520_v13   ;;  %179 = vperm.xlu0 %3344, %v3525_v14  }
  0x1b   :  { %8 = vsyncpa [#allocation3], 0  ;;  %v3532_v15 = vld [vmem:[%s5537_s0 + $0x78] sm:$0xff]  ;;  %v3537_v16 = vld [vmem:[%s5537_s0 + $0x70] sm:$0xff]  ;;  %vm3417_vm0 = vmmov 0  }
  0x1c   :  { %v3544_v17 = vld [vmem:[%s5537_s0 + $0x88] sm:$0xff]  ;;  %v3549_v18 = vld [vmem:[%s5537_s0 + $0x80] sm:$0xff]  ;;  %v3556_v19 = vld [vmem:[%s5537_s0 + $0x98] sm:$0xff] }
  0x1d   :  { %v3561_v20 = vld [vmem:[%s5537_s0 + $0x90] sm:$0xff]  ;;  %v3568_v21 = vld [vmem:[%s5537_s0 + $0xa8] sm:$0xff]  ;;  %v3573_v22 = vld [vmem:[%s5537_s0 + $0xa0] sm:$0xff] }
  0x1e   :  { %188 = vperm.xlu1 %3345, %v3532_v15   ;;  %185 = vperm.xlu0 %3344, %v3537_v16   ;;  %v3580_v23 = vld [vmem:[%s5537_s0 + $0xb8] sm:$0xff]  ;;  %v3585_v24 = vld [vmem:[%s5537_s0 + $0xb0] sm:$0xff]  ;;  %v3592_v25 = vld [vmem:[%s5537_s0 + $0xc8] sm:$0xff] }
  0x1f   :  { %v3597_v26 = vld [vmem:[%s5537_s0 + $0xc0] sm:$0xff]  ;;  %v3604_v27 = vld [vmem:[%s5537_s0 + $0xd8] sm:$0xff]  ;;  %v3609_v28 = vld [vmem:[%s5537_s0 + $0xd0] sm:$0xff] }
  0x20   :  { %v3616_v29 = vld [vmem:[%s5537_s0 + $0xe8] sm:$0xff]  ;;  %v3621_v30 = vld [vmem:[%s5537_s0 + $0xe0] sm:$0xff]  ;;  %v3628_v31 = vld [vmem:[%s5537_s0 + $0xf8] sm:$0xff] }
  0x21   :  { %5579 = vst [vmem:[#allocation5_spill] sm:$0xff] %v3616_v29  ;;  %5580 = vst [vmem:[#allocation6_spill] sm:$0xff] %v3621_v30  ;;  %v3633_v32 = vld [vmem:[%s5537_s0 + $0xf0] sm:$0xff]  ;;  %v3640_v33 = vld [vmem:[%s5537_s0 + $0x108] sm:$0xff] }
  0x22   :  { %194 = vperm.xlu1 %3345, %v3544_v17   ;;  %191 = vperm.xlu0 %3344, %v3549_v18   ;;  %5581 = vst [vmem:[#allocation7_spill] sm:$0xff] %v3628_v31  ;;  %5582 = vst [vmem:[#allocation8_spill] sm:$0xff] %v3633_v32  ;;  %v3645_v34 = vld [vmem:[%s5537_s0 + $0x100] sm:$0xff]  ;;  %v3652_v35 = vld [vmem:[%s5537_s0 + $0x118] sm:$0xff] }
  0x23   :  { %5583 = vst [vmem:[#allocation9_spill] sm:$0xff] %v3640_v33  ;;  %5584 = vst [vmem:[#allocation10_spill] sm:$0xff] %v3645_v34  ;;  %v3657_v36 = vld [vmem:[%s5537_s0 + $0x110] sm:$0xff]  ;;  %v52_v37 = vld [vmem:[%s5537_s0 + $0x128] sm:$0xff] }
  0x24   :  { %5585 = vst [vmem:[#allocation11_spill] sm:$0xff] %v3652_v35  ;;  %5586 = vst [vmem:[#allocation12_spill] sm:$0xff] %v3657_v36  ;;  %v3667_v38 = vld [vmem:[%s5537_s0 + $0x120] sm:$0xff]  ;;  %v54_v39 = vld [vmem:[%s5537_s0 + $0x138] sm:$0xff] }
  0x25   :  { %5587 = vst [vmem:[#allocation13_spill] sm:$0xff] %v3667_v38  ;;  %v53_v40 = vld [vmem:[%s5537_s0 + $0x130] sm:$0xff]  ;;  %v56_v41 = vld [vmem:[%s5537_s0 + $0x148] sm:$0xff]  ;;  %v55_v42 = vld [vmem:[%s5537_s0 + $0x140] sm:$0xff] }
  0x26   :  { %200 = vperm.xlu1 %3345, %v3556_v19   ;;  %197 = vperm.xlu0 %3344, %v3561_v20   ;;  %v58_v43 = vld [vmem:[%s5537_s0 + $0x158] sm:$0xff]  ;;  %v57_v44 = vld [vmem:[%s5537_s0 + $0x150] sm:$0xff]  ;;  %v60_v45 = vld [vmem:[%s5537_s0 + $0x168] sm:$0xff] }
  0x27   :  { %v59_v46 = vld [vmem:[%s5537_s0 + $0x160] sm:$0xff]  ;;  %v62_v47 = vld [vmem:[%s5537_s0 + $0x178] sm:$0xff]  ;;  %v61_v48 = vld [vmem:[%s5537_s0 + $0x170] sm:$0xff] }
  0x28   :  { %v64_v49 = vld [vmem:[%s5537_s0 + $0x188] sm:$0xff]  ;;  %v63_v50 = vld [vmem:[%s5537_s0 + $0x180] sm:$0xff]  ;;  %v66_v51 = vld [vmem:[%s5537_s0 + $0x198] sm:$0xff] }
  0x29   :  { %v65_v52 = vld [vmem:[%s5537_s0 + $0x190] sm:$0xff]  ;;  %v68_v53 = vld [vmem:[%s5537_s0 + $0x1a8] sm:$0xff]  ;;  %v67_v54 = vld [vmem:[%s5537_s0 + $0x1a0] sm:$0xff] }
  0x2a   :  { %206 = vperm.xlu1 %3345, %v3568_v21   ;;  %203 = vperm.xlu0 %3344, %v3573_v22   ;;  %v70_v55 = vld [vmem:[%s5537_s0 + $0x1b8] sm:$0xff]  ;;  %v69_v56 = vld [vmem:[%s5537_s0 + $0x1b0] sm:$0xff]  ;;  %v72_v57 = vld [vmem:[%s5537_s0 + $0x1c8] sm:$0xff] }
  0x2b   :  { %v71_v58 = vld [vmem:[%s5537_s0 + $0x1c0] sm:$0xff]  ;;  %v74_v59 = vld [vmem:[%s5537_s0 + $0x1d8] sm:$0xff]  ;;  %v73_v60 = vld [vmem:[%s5537_s0 + $0x1d0] sm:$0xff] }
  0x2c   :  { %v76_v61 = vld [vmem:[%s5537_s0 + $0x1e8] sm:$0xff]  ;;  %v75_v62 = vld [vmem:[%s5537_s0 + $0x1e0] sm:$0xff]  ;;  %v3745_v63 = vld [vmem:[%s5537_s0 + $0x1f8] sm:$0xff] }
  0x2d   :  { %v3855_v2 = vld [vmem:[%s5537_s0 + $0x260] sm:$0xff] }
  0x2e   :  { %212 = vperm.xlu1 %3345, %v3580_v23   ;;  %209 = vperm.xlu0 %3344, %v3585_v24  }
  0x32   :  { %218 = vperm.xlu1 %3345, %v3592_v25   ;;  %215 = vperm.xlu0 %3344, %v3597_v26  }
  0x36   :  { %224 = vperm.xlu1 %3345, %v3604_v27   ;;  %221 = vperm.xlu0 %3344, %v3609_v28  }
  0x3a   :  { %230 = vperm.xlu1 %3345, %v3616_v29   ;;  %227 = vperm.xlu0 %3344, %v3621_v30   ;;  %v4103_v30 = vld [vmem:[%s5537_s0 + $0x350] sm:$0xff] }
  0x3b   :  { %5649 = vst [vmem:[#allocation75_spill] sm:$0xff] %v4103_v30 }
  0x3e   :  { %236 = vperm.xlu1 %3345, %v3628_v31   ;;  %233 = vperm.xlu0 %3344, %v3633_v32  }
  0x42   :  { %242 = vperm.xlu1 %3345, %v3640_v33   ;;  %239 = vperm.xlu0 %3344, %v3645_v34  }
  0x46   :  { %248 = vperm.xlu1 %3345, %v3652_v35   ;;  %245 = vperm.xlu0 %3344, %v3657_v36  }
  0x4a   :  { %254 = vperm.xlu1 %3345, %v52_v37   ;;  %251 = vperm.xlu0 %3344, %v3667_v38   ;;  %v77_v37 = vld [vmem:[%s5537_s0 + $0x1f0] sm:$0xff] }
  0x4e   :  { %260 = vperm.xlu1 %3345, %v54_v39   ;;  %257 = vperm.xlu0 %3344, %v53_v40   ;;  %v3754_v39 = vld [vmem:[%s5537_s0 + $0x208] sm:$0xff]  ;;  %v3759_v40 = vld [vmem:[%s5537_s0 + $0x200] sm:$0xff] }
  0x52   :  { %266 = vperm.xlu1 %3345, %v56_v41   ;;  %263 = vperm.xlu0 %3344, %v55_v42  }
  0x56   :  { %272 = vperm.xlu1 %3345, %v58_v43   ;;  %269 = vperm.xlu0 %3344, %v57_v44   ;;  %v3770_v43 = vld [vmem:[%s5537_s0 + $0x218] sm:$0xff]  ;;  %v3775_v44 = vld [vmem:[%s5537_s0 + $0x210] sm:$0xff] }
  0x5a   :  { %278 = vperm.xlu1 %3345, %v60_v45   ;;  %275 = vperm.xlu0 %3344, %v59_v46  }
  0x5e   :  { %284 = vperm.xlu1 %3345, %v62_v47   ;;  %281 = vperm.xlu0 %3344, %v61_v48   ;;  %v3786_v47 = vld [vmem:[%s5537_s0 + $0x228] sm:$0xff]  ;;  %v3791_v48 = vld [vmem:[%s5537_s0 + $0x220] sm:$0xff] }
  0x62   :  { %290 = vperm.xlu1 %3345, %v64_v49   ;;  %287 = vperm.xlu0 %3344, %v63_v50  }
  0x66   :  { %296 = vperm.xlu1 %3345, %v66_v51   ;;  %293 = vperm.xlu0 %3344, %v65_v52   ;;  %v3802_v51 = vld [vmem:[%s5537_s0 + $0x238] sm:$0xff]  ;;  %v3807_v52 = vld [vmem:[%s5537_s0 + $0x230] sm:$0xff] }
  0x6a   :  { %302 = vperm.xlu1 %3345, %v68_v53   ;;  %299 = vperm.xlu0 %3344, %v67_v54  }
  0x6e   :  { %308 = vperm.xlu1 %3345, %v70_v55   ;;  %305 = vperm.xlu0 %3344, %v69_v56   ;;  %v3818_v55 = vld [vmem:[%s5537_s0 + $0x248] sm:$0xff]  ;;  %v3823_v56 = vld [vmem:[%s5537_s0 + $0x240] sm:$0xff] }
  0x72   :  { %314 = vperm.xlu1 %3345, %v72_v57   ;;  %311 = vperm.xlu0 %3344, %v71_v58  }
  0x76   :  { %320 = vperm.xlu1 %3345, %v74_v59   ;;  %317 = vperm.xlu0 %3344, %v73_v60   ;;  %v3834_v59 = vld [vmem:[%s5537_s0 + $0x258] sm:$0xff]  ;;  %v3839_v60 = vld [vmem:[%s5537_s0 + $0x250] sm:$0xff] }
  0x7a   :  { %326 = vperm.xlu1 %3345, %v76_v61   ;;  %323 = vperm.xlu0 %3344, %v75_v62  }
  0x7e   :  { %332 = vperm.xlu1 %3345, %v3745_v63   ;;  %329 = vperm.xlu0 %3344, %v77_v37   ;;  %v3850_v37 = vld [vmem:[%s5537_s0 + $0x268] sm:$0xff] }
  0x81   :  { %v3761_v41 = vpop.permute.xlu1 %149  ;;  %v3763_v42 = vpop.permute.xlu0 %143 }
  0x82   :  { %5588 = vst [vmem:[#allocation14_spill] sm:$0xff] %v3761_v41  ;;  %5589 = vst [vmem:[#allocation15_spill] sm:$0xff] %v3763_v42  ;;  %338 = vperm.xlu1 %3345, %v3754_v39   ;;  %335 = vperm.xlu0 %3344, %v3759_v40  }
  0x85   :  { %v3777_v45 = vpop.permute.xlu1 %152  ;;  %v3779_v46 = vpop.permute.xlu0 %146 }
  0x86   :  { %5590 = vst [vmem:[#allocation16_spill] sm:$0xff] %v3777_v45  ;;  %5591 = vst [vmem:[#allocation17_spill] sm:$0xff] %v3779_v46  ;;  %344 = vperm.xlu1 %3345, %v3770_v43   ;;  %341 = vperm.xlu0 %3344, %v3775_v44  }
  0x89   :  { %v3793_v49 = vpop.permute.xlu1 %158  ;;  %v3795_v50 = vpop.permute.xlu0 %155 }
  0x8a   :  { %5592 = vst [vmem:[#allocation18_spill] sm:$0xff] %v3793_v49  ;;  %5593 = vst [vmem:[#allocation19_spill] sm:$0xff] %v3795_v50  ;;  %350 = vperm.xlu1 %3345, %v3786_v47   ;;  %347 = vperm.xlu0 %3344, %v3791_v48  }
  0x8d   :  { %v3809_v53 = vpop.permute.xlu1 %164  ;;  %v3811_v54 = vpop.permute.xlu0 %161 }
  0x8e   :  { %5594 = vst [vmem:[#allocation20_spill] sm:$0xff] %v3809_v53  ;;  %5595 = vst [vmem:[#allocation21_spill] sm:$0xff] %v3811_v54  ;;  %356 = vperm.xlu1 %3345, %v3802_v51   ;;  %353 = vperm.xlu0 %3344, %v3807_v52  }
  0x91   :  { %v3825_v57 = vpop.permute.xlu1 %170  ;;  %v3827_v58 = vpop.permute.xlu0 %167 }
  0x92   :  { %5596 = vst [vmem:[#allocation22_spill] sm:$0xff] %v3825_v57  ;;  %5597 = vst [vmem:[#allocation23_spill] sm:$0xff] %v3827_v58  ;;  %362 = vperm.xlu1 %3345, %v3818_v55   ;;  %359 = vperm.xlu0 %3344, %v3823_v56  }
  0x95   :  { %v3841_v61 = vpop.permute.xlu1 %176  ;;  %v3843_v62 = vpop.permute.xlu0 %173 }
  0x96   :  { %5598 = vst [vmem:[#allocation24_spill] sm:$0xff] %v3841_v61  ;;  %5599 = vst [vmem:[#allocation25_spill] sm:$0xff] %v3843_v62  ;;  %368 = vperm.xlu1 %3345, %v3834_v59   ;;  %365 = vperm.xlu0 %3344, %v3839_v60   ;;  %v3866_v61 = vld [vmem:[%s5537_s0 + $0x278] sm:$0xff]  ;;  %v3871_v62 = vld [vmem:[%s5537_s0 + $0x270] sm:$0xff] }
  0x99   :  { %v3857_v57 = vpop.permute.xlu1 %182  ;;  %v3859_v58 = vpop.permute.xlu0 %179 }
  0x9a   :  { %5600 = vst [vmem:[#allocation26_spill] sm:$0xff] %v3857_v57  ;;  %5601 = vst [vmem:[#allocation27_spill] sm:$0xff] %v3859_v58  ;;  %374 = vperm.xlu1 %3345, %v3850_v37   ;;  %371 = vperm.xlu0 %3344, %v3855_v2   ;;  %v3882_v57 = vld [vmem:[%s5537_s0 + $0x288] sm:$0xff]  ;;  %v3887_v58 = vld [vmem:[%s5537_s0 + $0x280] sm:$0xff] }
  0x9d   :  { %v3873_v53 = vpop.permute.xlu1 %188  ;;  %v3875_v54 = vpop.permute.xlu0 %185 }
  0x9e   :  { %5602 = vst [vmem:[#allocation28_spill] sm:$0xff] %v3873_v53  ;;  %5603 = vst [vmem:[#allocation29_spill] sm:$0xff] %v3875_v54  ;;  %380 = vperm.xlu1 %3345, %v3866_v61   ;;  %377 = vperm.xlu0 %3344, %v3871_v62   ;;  %v3898_v53 = vld [vmem:[%s5537_s0 + $0x298] sm:$0xff]  ;;  %v3903_v54 = vld [vmem:[%s5537_s0 + $0x290] sm:$0xff] }
  0xa1   :  { %v3889_v49 = vpop.permute.xlu1 %194  ;;  %v3891_v50 = vpop.permute.xlu0 %191 }
  0xa2   :  { %5604 = vst [vmem:[#allocation30_spill] sm:$0xff] %v3889_v49  ;;  %5605 = vst [vmem:[#allocation31_spill] sm:$0xff] %v3891_v50  ;;  %386 = vperm.xlu1 %3345, %v3882_v57   ;;  %383 = vperm.xlu0 %3344, %v3887_v58   ;;  %v3914_v49 = vld [vmem:[%s5537_s0 + $0x2a8] sm:$0xff]  ;;  %v3919_v50 = vld [vmem:[%s5537_s0 + $0x2a0] sm:$0xff] }
  0xa5   :  { %v3905_v45 = vpop.permute.xlu1 %200  ;;  %v3907_v41 = vpop.permute.xlu0 %197 }
  0xa6   :  { %5606 = vst [vmem:[#allocation32_spill] sm:$0xff] %v3905_v45  ;;  %5607 = vst [vmem:[#allocation33_spill] sm:$0xff] %v3907_v41  ;;  %392 = vperm.xlu1 %3345, %v3898_v53   ;;  %389 = vperm.xlu0 %3344, %v3903_v54   ;;  %v3930_v45 = vld [vmem:[%s5537_s0 + $0x2b8] sm:$0xff]  ;;  %v3935_v41 = vld [vmem:[%s5537_s0 + $0x2b0] sm:$0xff] }
  0xa9   :  { %v3921_v38 = vpop.permute.xlu1 %206  ;;  %v3923_v46 = vpop.permute.xlu0 %203 }
  0xaa   :  { %5608 = vst [vmem:[#allocation34_spill] sm:$0xff] %v3921_v38  ;;  %5609 = vst [vmem:[#allocation35_spill] sm:$0xff] %v3923_v46  ;;  %398 = vperm.xlu1 %3345, %v3914_v49   ;;  %395 = vperm.xlu0 %3344, %v3919_v50   ;;  %v3946_v38 = vld [vmem:[%s5537_s0 + $0x2c8] sm:$0xff]  ;;  %v3951_v46 = vld [vmem:[%s5537_s0 + $0x2c0] sm:$0xff] }
  0xab   :  { %5612 = vst [vmem:[#allocation38_spill] sm:$0xff] %v3946_v38  ;;  %5613 = vst [vmem:[#allocation39_spill] sm:$0xff] %v3951_v46 }
  0xad   :  { %v3937_v35 = vpop.permute.xlu1 %212  ;;  %v3939_v42 = vpop.permute.xlu0 %209 }
  0xae   :  { %5610 = vst [vmem:[#allocation36_spill] sm:$0xff] %v3937_v35  ;;  %5611 = vst [vmem:[#allocation37_spill] sm:$0xff] %v3939_v42  ;;  %404 = vperm.xlu1 %3345, %v3930_v45   ;;  %401 = vperm.xlu0 %3344, %v3935_v41   ;;  %v3962_v35 = vld [vmem:[%s5537_s0 + $0x2d8] sm:$0xff]  ;;  %v3967_v42 = vld [vmem:[%s5537_s0 + $0x2d0] sm:$0xff] }
  0xaf   :  { %5616 = vst [vmem:[#allocation42_spill] sm:$0xff] %v3962_v35  ;;  %5617 = vst [vmem:[#allocation43_spill] sm:$0xff] %v3967_v42 }
  0xb1   :  { %v3953_v36 = vpop.permute.xlu1 %218  ;;  %v3955_v33 = vpop.permute.xlu0 %215 }
  0xb2   :  { %5614 = vst [vmem:[#allocation40_spill] sm:$0xff] %v3953_v36  ;;  %5615 = vst [vmem:[#allocation41_spill] sm:$0xff] %v3955_v33  ;;  %410 = vperm.xlu1 %3345, %v3946_v38   ;;  %407 = vperm.xlu0 %3344, %v3951_v46   ;;  %v3978_v36 = vld [vmem:[%s5537_s0 + $0x2e8] sm:$0xff]  ;;  %v3983_v33 = vld [vmem:[%s5537_s0 + $0x2e0] sm:$0xff] }
  0xb3   :  { %5620 = vst [vmem:[#allocation46_spill] sm:$0xff] %v3978_v36  ;;  %5621 = vst [vmem:[#allocation47_spill] sm:$0xff] %v3983_v33  ;;  %v4098_v38 = vld [vmem:[%s5537_s0 + $0x358] sm:$0xff]  ;;  %v1656_v46 = vld [vmem:[%s5538_s1 + $0x70] sm:$0xff] }
  0xb4   :  { %5648 = vst [vmem:[#allocation74_spill] sm:$0xff] %v4098_v38 }
  0xb5   :  { %v3969_v34 = vpop.permute.xlu1 %224  ;;  %v3971_v31 = vpop.permute.xlu0 %221 }
  0xb6   :  { %5618 = vst [vmem:[#allocation44_spill] sm:$0xff] %v3969_v34  ;;  %5619 = vst [vmem:[#allocation45_spill] sm:$0xff] %v3971_v31  ;;  %416 = vperm.xlu1 %3345, %v3962_v35   ;;  %413 = vperm.xlu0 %3344, %v3967_v42   ;;  %v3994_v34 = vld [vmem:[%s5537_s0 + $0x2f8] sm:$0xff]  ;;  %v3999_v31 = vld [vmem:[%s5537_s0 + $0x2f0] sm:$0xff] }
  0xb7   :  { %5624 = vst [vmem:[#allocation50_spill] sm:$0xff] %v3994_v34  ;;  %5625 = vst [vmem:[#allocation51_spill] sm:$0xff] %v3999_v31 }
  0xb9   :  { %v3985_v32 = vpop.permute.xlu1 %230  ;;  %v3987_v29 = vpop.permute.xlu0 %227 }
  0xba   :  { %5622 = vst [vmem:[#allocation48_spill] sm:$0xff] %v3985_v32  ;;  %5623 = vst [vmem:[#allocation49_spill] sm:$0xff] %v3987_v29  ;;  %422 = vperm.xlu1 %3345, %v3978_v36   ;;  %419 = vperm.xlu0 %3344, %v3983_v33   ;;  %v4010_v32 = vld [vmem:[%s5537_s0 + $0x308] sm:$0xff]  ;;  %v4015_v29 = vld [vmem:[%s5537_s0 + $0x300] sm:$0xff] }
  0xbb   :  { %5628 = vst [vmem:[#allocation54_spill] sm:$0xff] %v4010_v32  ;;  %5629 = vst [vmem:[#allocation55_spill] sm:$0xff] %v4015_v29 }
  0xbd   :  { %v4001_v35 = vpop.permute.xlu1 %236  ;;  %v4003_v42 = vpop.permute.xlu0 %233 }
  0xbe   :  { %5626 = vst [vmem:[#allocation52_spill] sm:$0xff] %v4001_v35  ;;  %5627 = vst [vmem:[#allocation53_spill] sm:$0xff] %v4003_v42  ;;  %428 = vperm.xlu1 %3345, %v3994_v34   ;;  %425 = vperm.xlu0 %3344, %v3999_v31   ;;  %v4026_v35 = vld [vmem:[%s5537_s0 + $0x318] sm:$0xff]  ;;  %v4031_v42 = vld [vmem:[%s5537_s0 + $0x310] sm:$0xff] }
  0xbf   :  { %5632 = vst [vmem:[#allocation58_spill] sm:$0xff] %v4026_v35  ;;  %5633 = vst [vmem:[#allocation59_spill] sm:$0xff] %v4031_v42 }
  0xc1   :  { %v4017_v36 = vpop.permute.xlu1 %242  ;;  %v4019_v33 = vpop.permute.xlu0 %239 }
  0xc2   :  { %5630 = vst [vmem:[#allocation56_spill] sm:$0xff] %v4017_v36  ;;  %5631 = vst [vmem:[#allocation57_spill] sm:$0xff] %v4019_v33  ;;  %434 = vperm.xlu1 %3345, %v4010_v32   ;;  %431 = vperm.xlu0 %3344, %v4015_v29   ;;  %v4042_v36 = vld [vmem:[%s5537_s0 + $0x328] sm:$0xff]  ;;  %v4047_v33 = vld [vmem:[%s5537_s0 + $0x320] sm:$0xff] }
  0xc3   :  { %5636 = vst [vmem:[#allocation62_spill] sm:$0xff] %v4042_v36  ;;  %5637 = vst [vmem:[#allocation63_spill] sm:$0xff] %v4047_v33 }
  0xc5   :  { %v4033_v34 = vpop.permute.xlu1 %248  ;;  %v4035_v31 = vpop.permute.xlu0 %245 }
  0xc6   :  { %5634 = vst [vmem:[#allocation60_spill] sm:$0xff] %v4033_v34  ;;  %5635 = vst [vmem:[#allocation61_spill] sm:$0xff] %v4035_v31  ;;  %440 = vperm.xlu1 %3345, %v4026_v35   ;;  %437 = vperm.xlu0 %3344, %v4031_v42   ;;  %v4058_v34 = vld [vmem:[%s5537_s0 + $0x338] sm:$0xff]  ;;  %v4063_v31 = vld [vmem:[%s5537_s0 + $0x330] sm:$0xff] }
  0xc7   :  { %5640 = vst [vmem:[#allocation66_spill] sm:$0xff] %v4058_v34  ;;  %5641 = vst [vmem:[#allocation67_spill] sm:$0xff] %v4063_v31 }
  0xc9   :  { %v4049_v32 = vpop.permute.xlu1 %254  ;;  %v4051_v29 = vpop.permute.xlu0 %251 }
  0xca   :  { %5638 = vst [vmem:[#allocation64_spill] sm:$0xff] %v4049_v32  ;;  %5639 = vst [vmem:[#allocation65_spill] sm:$0xff] %v4051_v29  ;;  %446 = vperm.xlu1 %3345, %v4042_v36   ;;  %443 = vperm.xlu0 %3344, %v4047_v33   ;;  %v4074_v32 = vld [vmem:[%s5537_s0 + $0x348] sm:$0xff]  ;;  %v4079_v29 = vld [vmem:[%s5537_s0 + $0x340] sm:$0xff] }
  0xcb   :  { %5644 = vst [vmem:[#allocation70_spill] sm:$0xff] %v4074_v32  ;;  %5645 = vst [vmem:[#allocation71_spill] sm:$0xff] %v4079_v29 }
  0xcd   :  { %v4065_v35 = vpop.permute.xlu1 %260  ;;  %v4067_v42 = vpop.permute.xlu0 %257 }
  0xce   :  { %5642 = vst [vmem:[#allocation68_spill] sm:$0xff] %v4065_v35  ;;  %5643 = vst [vmem:[#allocation69_spill] sm:$0xff] %v4067_v42  ;;  %452 = vperm.xlu1 %3345, %v4058_v34   ;;  %449 = vperm.xlu0 %3344, %v4063_v31   ;;  %v1642_v35 = vld [vmem:[%s5538_s1] sm:$0xff]  ;;  %v1643_v42 = vld [vmem:[%s5538_s1 + $0x8] sm:$0xff]  ;;  %v3415_v34 = vmov 0.0|0.0  }
  0xcf   :  { %3295 = vmatprep.subr.bf16.mxu0 %v3415_v34  ;;  %v3296_v31 = vpack.c.bf16 %v1643_v42, %v1642_v35  ;;  %3319 = vmatprep.subr.bf16.mxu1 %v3415_v34  ;;  %v1644_v35 = vld [vmem:[%s5538_s1 + $0x10] sm:$0xff]  ;;  %v1645_v42 = vld [vmem:[%s5538_s1 + $0x18] sm:$0xff] }
  0xd1   :  { %v4089_v36 = vpop.permute.xlu1 %266  ;;  %v4091_v33 = vpop.permute.xlu0 %263  ;;  %3297 = vmatpush3.bf16.msra.mxu0 %v3296_v31  ;;  %3327 = vmatpush3.bf16.msra.mxu1 %v3296_v31  ;;  %v4122_v31 = vld [vmem:[%s5537_s0 + $0x368] sm:$0xff] }
  0xd2   :  { %5646 = vst [vmem:[#allocation72_spill] sm:$0xff] %v4089_v36  ;;  %5647 = vst [vmem:[#allocation73_spill] sm:$0xff] %v4091_v33  ;;  %458 = vperm.xlu1 %3345, %v4074_v32   ;;  %455 = vperm.xlu0 %3344, %v4079_v29   ;;  %v3299_v36 = vpack.c.bf16 %v1645_v42, %v1644_v35  ;;  %v4127_v29 = vld [vmem:[%s5537_s0 + $0x360] sm:$0xff]  ;;  %v1647_v42 = vld [vmem:[%s5538_s1 + $0x28] sm:$0xff] }
  0xd3   :  { %3298 = vmatprep.subr.bf16.mxu0 %v3415_v34  ;;  %3320 = vmatprep.subr.bf16.mxu1 %v3415_v34  ;;  %5652 = vst [vmem:[#allocation78_spill] sm:$0xff] %v4122_v31  ;;  %5653 = vst [vmem:[#allocation79_spill] sm:$0xff] %v4127_v29  ;;  %v1646_v35 = vld [vmem:[%s5538_s1 + $0x20] sm:$0xff] }
  0xd5   :  { %v4113_v33 = vpop.permute.xlu1 %272  ;;  %v4115_v32 = vpop.permute.xlu0 %269  ;;  %3300 = vmatpush3.bf16.msra.mxu0 %v3299_v36  ;;  %3328 = vmatpush3.bf16.msra.mxu1 %v3299_v36  ;;  %v126_v36 = vld [vmem:[%s5537_s0 + $0x378] sm:$0xff] }
  0xd6   :  { %5650 = vst [vmem:[#allocation76_spill] sm:$0xff] %v4113_v33  ;;  %5651 = vst [vmem:[#allocation77_spill] sm:$0xff] %v4115_v32  ;;  %464 = vperm.xlu1 %3345, %v4098_v38   ;;  %461 = vperm.xlu0 %3344, %v4103_v30   ;;  %v3302_v33 = vpack.c.bf16 %v1647_v42, %v1646_v35  ;;  %v4149_v30 = vld [vmem:[%s5537_s0 + $0x370] sm:$0xff]  ;;  %v1649_v42 = vld [vmem:[%s5538_s1 + $0x38] sm:$0xff] }
  0xd7   :  { %3301 = vmatprep.subr.bf16.mxu0 %v3415_v34  ;;  %3321 = vmatprep.subr.bf16.mxu1 %v3415_v34  ;;  %5656 = vst [vmem:[#allocation82_spill] sm:$0xff] %v4149_v30  ;;  %v1648_v35 = vld [vmem:[%s5538_s1 + $0x30] sm:$0xff] }
  0xd9   :  { %v4137_v32 = vpop.permute.xlu1 %278  ;;  %v4139_v38 = vpop.permute.xlu0 %275  ;;  %3303 = vmatpush3.bf16.msra.mxu0 %v3302_v33  ;;  %3329 = vmatpush3.bf16.msra.mxu1 %v3302_v33  ;;  %v128_v33 = vld [vmem:[%s5537_s0 + $0x388] sm:$0xff] }
  0xda   :  { %5654 = vst [vmem:[#allocation80_spill] sm:$0xff] %v4137_v32  ;;  %5655 = vst [vmem:[#allocation81_spill] sm:$0xff] %v4139_v38  ;;  %470 = vperm.xlu1 %3345, %v4122_v31   ;;  %467 = vperm.xlu0 %3344, %v4127_v29   ;;  %v3305_v32 = vpack.c.bf16 %v1649_v42, %v1648_v35  ;;  %v127_v29 = vld [vmem:[%s5537_s0 + $0x380] sm:$0xff] }
  0xdb   :  { %3304 = vmatprep.subr.bf16.mxu0 %v3415_v34  ;;  %3322 = vmatprep.subr.bf16.mxu1 %v3415_v34  ;;  %v1650_v35 = vld [vmem:[%s5538_s1 + $0x40] sm:$0xff] }
  0xdd   :  { %v4159_v38 = vpop.permute.xlu1 %284  ;;  %v4161_v31 = vpop.permute.xlu0 %281  ;;  %3306 = vmatpush3.bf16.msra.mxu0 %v3305_v32  ;;  %3330 = vmatpush3.bf16.msra.mxu1 %v3305_v32  ;;  %v130_v32 = vld [vmem:[%s5537_s0 + $0x398] sm:$0xff] }
  0xde   :  { %5657 = vst [vmem:[#allocation83_spill] sm:$0xff] %v4159_v38  ;;  %5658 = vst [vmem:[#allocation84_spill] sm:$0xff] %v4161_v31  ;;  %476 = vperm.xlu1 %3345, %v126_v36   ;;  %473 = vperm.xlu0 %3344, %v4149_v30   ;;  %v1651_v36 = vld [vmem:[%s5538_s1 + $0x48] sm:$0xff]  ;;  %v129_v30 = vld [vmem:[%s5537_s0 + $0x390] sm:$0xff] }
  0xdf   :  { %3307 = vmatprep.subr.bf16.mxu0 %v3415_v34  ;;  %v3308_v42 = vpack.c.bf16 %v1651_v36, %v1650_v35  ;;  %3323 = vmatprep.subr.bf16.mxu1 %v3415_v34  ;;  %v1652_v35 = vld [vmem:[%s5538_s1 + $0x50] sm:$0xff]  ;;  %v1653_v36 = vld [vmem:[%s5538_s1 + $0x58] sm:$0xff] }
  0xe1   :  { %v4178_v38 = vpop.permute.xlu1 %290  ;;  %v4180_v31 = vpop.permute.xlu0 %287  ;;  %3309 = vmatpush3.bf16.msra.mxu0 %v3308_v42  ;;  %3331 = vmatpush3.bf16.msra.mxu1 %v3308_v42  ;;  %v132_v42 = vld [vmem:[%s5537_s0 + $0x3a8] sm:$0xff] }
  0xe2   :  { %5659 = vst [vmem:[#allocation85_spill] sm:$0xff] %v4178_v38  ;;  %5660 = vst [vmem:[#allocation86_spill] sm:$0xff] %v4180_v31  ;;  %482 = vperm.xlu1 %3345, %v128_v33   ;;  %479 = vperm.xlu0 %3344, %v127_v29   ;;  %v3311_v29 = vpack.c.bf16 %v1653_v36, %v1652_v35  ;;  %v131_v31 = vld [vmem:[%s5537_s0 + $0x3a0] sm:$0xff]  ;;  %v1655_v36 = vld [vmem:[%s5538_s1 + $0x68] sm:$0xff] }
  0xe3   :  { %3310 = vmatprep.subr.bf16.mxu0 %v3415_v34  ;;  %3324 = vmatprep.subr.bf16.mxu1 %v3415_v34  ;;  %v1654_v35 = vld [vmem:[%s5538_s1 + $0x60] sm:$0xff] }
  0xe5   :  { %v4196_v33 = vpop.permute.xlu1 %296  ;;  %v4198_v38 = vpop.permute.xlu0 %293  ;;  %3312 = vmatpush3.bf16.msra.mxu0 %v3311_v29  ;;  %3332 = vmatpush3.bf16.msra.mxu1 %v3311_v29  ;;  %v642_v29 = vadd.s32 64, %v3451_v1 }
  0xe6   :  { %5661 = vst [vmem:[#allocation87_spill] sm:$0xff] %v4196_v33  ;;  %5662 = vst [vmem:[#allocation88_spill] sm:$0xff] %v4198_v38  ;;  %488 = vperm.xlu1 %3345, %v130_v32   ;;  %485 = vperm.xlu0 %3344, %v129_v30   ;;  %v3314_v30 = vpack.c.bf16 %v1655_v36, %v1654_v35  ;;  %v643_v38 = vadd.s32 64, %v3465_v4  ;;  %v1657_v35 = vld [vmem:[%s5538_s1 + $0x78] sm:$0xff]  ;;  %v5575_v4 = vmov 1  }
  0xe7   :  { %3313 = vmatprep.subr.bf16.mxu0 %v3415_v34  ;;  %3325 = vmatprep.subr.bf16.mxu1 %v3415_v34  ;;  %v3317_v36 = vpack.c.bf16 %v1657_v35, %v1656_v46  ;;  %v5577_v35 = vmov 0.0  }
  0xe8   :  { %2920 = vmatprep.mubr.msk.f32.mxu0 %vm3417_vm0, %v5577_v35  ;;  %3109 = vmatprep.mubr.msk.f32.mxu1 %vm3417_vm0, %v5577_v35  ;;  %v5674_v35 = vld [vmem:[#allocation39_spill] sm:$0xff] }
  0xe9   :  { %v4214_v32 = vpop.permute.xlu1 %302  ;;  %v4216_v33 = vpop.permute.xlu0 %299  ;;  %3315 = vmatpush3.bf16.msra.mxu0 %v3314_v30  ;;  %3333 = vmatpush3.bf16.msra.mxu1 %v3314_v30  ;;  %v705_v30 = vadd.s32 64, %v3745_v63  ;;  %v706_v63 = vadd.s32 64, %v3759_v40  ;;  %v708_v40 = vadd.s32 64, %v3775_v44  ;;  %v710_v44 = vadd.s32 64, %v3791_v48 }
  0xea   :  { %5663 = vst [vmem:[#allocation89_spill] sm:$0xff] %v4214_v32  ;;  %5664 = vst [vmem:[#allocation90_spill] sm:$0xff] %v4216_v33  ;;  %494 = vperm.xlu1 %3345, %v132_v42   ;;  %491 = vperm.xlu0 %3344, %v131_v31   ;;  %v644_v42 = vadd.s32 64, %v3446_v0  ;;  %v645_v0 = vadd.s32 64, %v3460_v3  ;;  %v647_v3 = vadd.s32 64, %v3472_v5  ;;  %v649_v5 = vadd.s32 64, %v3484_v7 }
  0xeb   :  { %3316 = vmatprep.subr.bf16.mxu0 %v3415_v34  ;;  %3326 = vmatprep.subr.bf16.mxu1 %v3415_v34  ;;  %v651_v7 = vadd.s32 64, %v3496_v9  ;;  %v712_v48 = vadd.s32 64, %v3807_v52  ;;  %v653_v9 = vadd.s32 64, %v3508_v11  ;;  %v714_v52 = vadd.s32 64, %v3823_v56  ;;  %v5686_v32 = vld [vmem:[#allocation47_spill] sm:$0xff]  ;;  %v5689_v33 = vld [vmem:[#allocation10_spill] sm:$0xff] }
  0xec   :  { %v655_v11 = vadd.s32 64, %v3520_v13  ;;  %v716_v56 = vadd.s32 64, %v3839_v60  ;;  %v657_v13 = vadd.s32 64, %v3532_v15  ;;  %v718_v60 = vadd.s32 64, %v3855_v2 }
  0xed   :  { %v4228_v31 = vpop.permute.xlu1 %308  ;;  %v4230_v1 = vpop.permute.xlu0 %305  ;;  %3318 = vmatpush3.bf16.msra.mxu0 %v3317_v36  ;;  %3334 = vmatpush3.bf16.msra.mxu1 %v3317_v36  ;;  %v646_v36 = vadd.s32 64, %v3477_v6  ;;  %v648_v6 = vadd.s32 64, %v3489_v8  ;;  %v650_v8 = vadd.s32 64, %v3501_v10  ;;  %v652_v10 = vadd.s32 64, %v3513_v12 }
  0xee   :  { %5665 = vst [vmem:[#allocation91_spill] sm:$0xff] %v4228_v31  ;;  %5666 = vst [vmem:[#allocation92_spill] sm:$0xff] %v4230_v1  ;;  %3347 = vset.pattern.permute.xlu1 %v5575_v4  ;;  %3346 = vset.pattern.permute.xlu0 %v5575_v4  ;;  %v707_v4 = vadd.s32 64, %v3754_v39  ;;  %v709_v39 = vadd.s32 64, %v3770_v43  ;;  %v711_v43 = vadd.s32 64, %v3786_v47  ;;  %v713_v47 = vadd.s32 64, %v3802_v51 }
  0xef   :  { %771 = vperm.xlu1 %3347, %v643_v38   ;;  %768 = vperm.xlu0 %3346, %v642_v29   ;;  %v654_v12 = vadd.s32 64, %v3525_v14  ;;  %v715_v51 = vadd.s32 64, %v3818_v55  ;;  %v656_v14 = vadd.s32 64, %v3537_v16  ;;  %v717_v55 = vadd.s32 64, %v3834_v59  ;;  %v5682_v31 = vld [vmem:[#allocation42_spill] sm:$0xff]  ;;  %v5685_v1 = vld [vmem:[#allocation7_spill] sm:$0xff] }
  0xf0   :  { %v658_v16 = vadd.s32 64, %v3549_v18  ;;  %v719_v59 = vadd.s32 64, %v3850_v37  ;;  %v659_v15 = vadd.s32 64, %v3544_v17  ;;  %v720_v2 = vadd.s32 64, %v3871_v62 }
  0xf1   :  { %v4236_v46 = vpop.permute.xlu1 %314  ;;  %v4238_v34 = vpop.permute.xlu0 %311  ;;  %v660_v18 = vadd.s32 64, %v3561_v20  ;;  %v721_v37 = vadd.s32 64, %v3866_v61  ;;  %v661_v17 = vadd.s32 64, %v3556_v19  ;;  %v722_v62 = vadd.s32 64, %v3887_v58 }
  0xf2   :  { %5667 = vst [vmem:[#allocation93_spill] sm:$0xff] %v4236_v46  ;;  %5668 = vst [vmem:[#allocation94_spill] sm:$0xff] %v4238_v34  ;;  %v662_v20 = vadd.s32 64, %v3573_v22  ;;  %v723_v61 = vadd.s32 64, %v3882_v57  ;;  %v663_v19 = vadd.s32 64, %v3568_v21  ;;  %v724_v58 = vadd.s32 64, %v3903_v54 }
  0xf3   :  { %957 = vperm.xlu1 %3347, %v705_v30   ;;  %774 = vperm.xlu0 %3346, %v644_v42   ;;  %v664_v22 = vadd.s32 64, %v3585_v24  ;;  %v725_v57 = vadd.s32 64, %v3898_v53  ;;  %v665_v21 = vadd.s32 64, %v3580_v23  ;;  %v726_v54 = vadd.s32 64, %v3919_v50 }
  0xf4   :  { %v666_v24 = vadd.s32 64, %v3597_v26  ;;  %v727_v53 = vadd.s32 64, %v3914_v49  ;;  %v667_v23 = vadd.s32 64, %v3592_v25  ;;  %v728_v50 = vadd.s32 64, %v3935_v41 }
  0xf5   :  { %v4246_v38 = vpop.permute.xlu1 %320  ;;  %v4248_v29 = vpop.permute.xlu0 %317  ;;  %v668_v26 = vadd.s32 64, %v3609_v28  ;;  %v729_v49 = vadd.s32 64, %v3930_v45  ;;  %v669_v25 = vadd.s32 64, %v3604_v27  ;;  %v730_v41 = vadd.s32 64, %v5674_v35 }
  0xf6   :  { %5669 = vst [vmem:[#allocation95_spill] sm:$0xff] %v4246_v38  ;;  %5670 = vst [vmem:[#allocation96_spill] sm:$0xff] %v4248_v29  ;;  %v5678_v38 = vld [vmem:[#allocation43_spill] sm:$0xff]  ;;  %v5681_v29 = vld [vmem:[#allocation8_spill] sm:$0xff] }
  0xf7   :  { %960 = vperm.xlu1 %3347, %v706_v63   ;;  %777 = vperm.xlu0 %3346, %v645_v0   ;;  %v732_v35 = vadd.s32 64, %v5678_v38  ;;  %v734_v38 = vadd.s32 64, %v5686_v32  ;;  %v5693_v32 = vld [vmem:[#allocation51_spill] sm:$0xff] }
  0xf9   :  { %v4252_v46 = vpop.permute.xlu1 %326  ;;  %v4254_v34 = vpop.permute.xlu0 %323 }
  0xfa   :  { %5671 = vst [vmem:[#allocation97_spill] sm:$0xff] %v4252_v46  ;;  %5672 = vst [vmem:[#allocation98_spill] sm:$0xff] %v4254_v34  ;;  %v5676_v46 = vld [vmem:[#allocation38_spill] sm:$0xff]  ;;  %v5677_v34 = vld [vmem:[#allocation5_spill] sm:$0xff] }
  0xfb   :  { %963 = vperm.xlu1 %3347, %v707_v4   ;;  %780 = vperm.xlu0 %3346, %v646_v36   ;;  %v731_v45 = vadd.s32 64, %v5676_v46  ;;  %v671_v27 = vadd.s32 64, %v5677_v34  ;;  %v733_v46 = vadd.s32 64, %v5682_v31  ;;  %v673_v34 = vadd.s32 64, %v5685_v1  ;;  %v5692_v1 = vld [vmem:[#allocation9_spill] sm:$0xff] }
  0xfd   :  { %v4258_v42 = vpop.permute.xlu1 %332  ;;  %v4260_v30 = vpop.permute.xlu0 %329 }
  0xfe   :  { %5673 = vst [vmem:[#allocation99_spill] sm:$0xff] %v4260_v30  ;;  %v5675_v30 = vld [vmem:[#allocation6_spill] sm:$0xff] }
  0xff   :  { %966 = vperm.xlu1 %3347, %v708_v40   ;;  %783 = vperm.xlu0 %3346, %v647_v3   ;;  %v670_v28 = vadd.s32 64, %v5675_v30  ;;  %v672_v30 = vadd.s32 64, %v5681_v29  ;;  %v674_v29 = vadd.s32 64, %v5689_v33  ;;  %v5694_v33 = vld [vmem:[#allocation12_spill] sm:$0xff] }
 0x101   :  { %v4264_v0 = vpop.permute.xlu1 %338  ;;  %v4266_v63 = vpop.permute.xlu0 %335 }
 0x103   :  { %969 = vperm.xlu1 %3347, %v709_v39   ;;  %786 = vperm.xlu0 %3346, %v648_v6  }
 0x105   :  { %v4270_v4 = vpop.permute.xlu1 %344  ;;  %v4272_v36 = vpop.permute.xlu0 %341 }
 0x107   :  { %972 = vperm.xlu1 %3347, %v710_v44   ;;  %789 = vperm.xlu0 %3346, %v649_v5  }
 0x109   :  { %v4276_v3 = vpop.permute.xlu1 %350  ;;  %v4278_v40 = vpop.permute.xlu0 %347 }
 0x10b   :  { %975 = vperm.xlu1 %3347, %v711_v43   ;;  %792 = vperm.xlu0 %3346, %v650_v8  }
 0x10d   :  { %v4282_v6 = vpop.permute.xlu1 %356  ;;  %v4284_v39 = vpop.permute.xlu0 %353 }
 0x10f   :  { %978 = vperm.xlu1 %3347, %v712_v48   ;;  %795 = vperm.xlu0 %3346, %v651_v7  }
 0x111   :  { %v4288_v5 = vpop.permute.xlu1 %362  ;;  %v4290_v44 = vpop.permute.xlu0 %359 }
 0x113   :  { %981 = vperm.xlu1 %3347, %v713_v47   ;;  %798 = vperm.xlu0 %3346, %v652_v10  }
 0x115   :  { %v4294_v8 = vpop.permute.xlu1 %368  ;;  %v4296_v43 = vpop.permute.xlu0 %365 }
 0x117   :  { %984 = vperm.xlu1 %3347, %v714_v52   ;;  %801 = vperm.xlu0 %3346, %v653_v9  }
 0x119   :  { %v4300_v7 = vpop.permute.xlu1 %374  ;;  %v4302_v48 = vpop.permute.xlu0 %371 }
 0x11b   :  { %987 = vperm.xlu1 %3347, %v715_v51   ;;  %804 = vperm.xlu0 %3346, %v654_v12  }
 0x11d   :  { %v4306_v10 = vpop.permute.xlu1 %380  ;;  %v4308_v47 = vpop.permute.xlu0 %377 }
 0x11f   :  { %990 = vperm.xlu1 %3347, %v716_v56   ;;  %807 = vperm.xlu0 %3346, %v655_v11  }
 0x121   :  { %v4312_v9 = vpop.permute.xlu1 %386  ;;  %v4314_v52 = vpop.permute.xlu0 %383 }
 0x123   :  { %993 = vperm.xlu1 %3347, %v717_v55   ;;  %810 = vperm.xlu0 %3346, %v656_v14  }
 0x125   :  { %v4318_v12 = vpop.permute.xlu1 %392  ;;  %v4320_v51 = vpop.permute.xlu0 %389 }
 0x127   :  { %996 = vperm.xlu1 %3347, %v718_v60   ;;  %813 = vperm.xlu0 %3346, %v657_v13  }
 0x129   :  { %v4324_v11 = vpop.permute.xlu1 %398  ;;  %v4326_v56 = vpop.permute.xlu0 %395 }
 0x12b   :  { %999 = vperm.xlu1 %3347, %v719_v59   ;;  %816 = vperm.xlu0 %3346, %v658_v16  }
 0x12d   :  { %v4330_v14 = vpop.permute.xlu1 %404  ;;  %v4332_v55 = vpop.permute.xlu0 %401 }
 0x12f   :  { %1002 = vperm.xlu1 %3347, %v720_v2   ;;  %819 = vperm.xlu0 %3346, %v659_v15  }
 0x131   :  { %v4336_v13 = vpop.permute.xlu1 %410  ;;  %v4338_v60 = vpop.permute.xlu0 %407 }
 0x133   :  { %1005 = vperm.xlu1 %3347, %v721_v37   ;;  %822 = vperm.xlu0 %3346, %v660_v18  }
 0x135   :  { %v4342_v16 = vpop.permute.xlu1 %416  ;;  %v4344_v59 = vpop.permute.xlu0 %413 }
 0x137   :  { %1008 = vperm.xlu1 %3347, %v722_v62   ;;  %825 = vperm.xlu0 %3346, %v661_v17  }
 0x139   :  { %v4348_v15 = vpop.permute.xlu1 %422  ;;  %v4350_v2 = vpop.permute.xlu0 %419 }
 0x13b   :  { %1011 = vperm.xlu1 %3347, %v723_v61   ;;  %828 = vperm.xlu0 %3346, %v662_v20  }
 0x13d   :  { %v4354_v18 = vpop.permute.xlu1 %428  ;;  %v4356_v37 = vpop.permute.xlu0 %425 }
 0x13f   :  { %1014 = vperm.xlu1 %3347, %v724_v58   ;;  %831 = vperm.xlu0 %3346, %v663_v19  }
 0x141   :  { %v4360_v17 = vpop.permute.xlu1 %434  ;;  %v4362_v62 = vpop.permute.xlu0 %431 }
 0x143   :  { %1017 = vperm.xlu1 %3347, %v725_v57   ;;  %834 = vperm.xlu0 %3346, %v664_v22  }
 0x145   :  { %v4366_v20 = vpop.permute.xlu1 %440  ;;  %v4368_v61 = vpop.permute.xlu0 %437 }
 0x147   :  { %1020 = vperm.xlu1 %3347, %v726_v54   ;;  %837 = vperm.xlu0 %3346, %v665_v21  }
 0x149   :  { %v4372_v19 = vpop.permute.xlu1 %446  ;;  %v4374_v58 = vpop.permute.xlu0 %443 }
 0x14b   :  { %1023 = vperm.xlu1 %3347, %v727_v53   ;;  %840 = vperm.xlu0 %3346, %v666_v24  }
 0x14d   :  { %v4378_v22 = vpop.permute.xlu1 %452  ;;  %v4380_v57 = vpop.permute.xlu0 %449 }
 0x14f   :  { %1026 = vperm.xlu1 %3347, %v728_v50   ;;  %843 = vperm.xlu0 %3346, %v667_v23  }
 0x151   :  { %v4384_v21 = vpop.permute.xlu1 %458  ;;  %v4386_v54 = vpop.permute.xlu0 %455 }
 0x153   :  { %1029 = vperm.xlu1 %3347, %v729_v49   ;;  %846 = vperm.xlu0 %3346, %v668_v26  }
 0x155   :  { %v4390_v24 = vpop.permute.xlu1 %464  ;;  %v4392_v53 = vpop.permute.xlu0 %461 }
 0x157   :  { %1032 = vperm.xlu1 %3347, %v730_v41   ;;  %849 = vperm.xlu0 %3346, %v669_v25  }
 0x159   :  { %v4396_v23 = vpop.permute.xlu1 %470  ;;  %v4398_v50 = vpop.permute.xlu0 %467 }
 0x15b   :  { %1035 = vperm.xlu1 %3347, %v731_v45   ;;  %852 = vperm.xlu0 %3346, %v670_v28  }
 0x15d   :  { %v4402_v26 = vpop.permute.xlu1 %476  ;;  %v4404_v49 = vpop.permute.xlu0 %473 }
 0x15e   :  { %5679 = vst [vmem:[#allocation39_spill] sm:$0xff] %v4402_v26  ;;  %5680 = vst [vmem:[#allocation6_spill] sm:$0xff] %v4404_v49  ;;  %v5690_v26 = vld [vmem:[#allocation46_spill] sm:$0xff]  ;;  %v676_v49 = vadd.s32 64, %v5694_v33  ;;  %v5698_v33 = vld [vmem:[#allocation55_spill] sm:$0xff] }
 0x15f   :  { %1038 = vperm.xlu1 %3347, %v732_v35   ;;  %855 = vperm.xlu0 %3346, %v671_v27   ;;  %v735_v31 = vadd.s32 64, %v5690_v26  ;;  %v140_v27 = vlaneseq  ;;  %v5695_v26 = vld [vmem:[#allocation50_spill] sm:$0xff] }
 0x161   :  { %v4408_v25 = vpop.permute.xlu1 %482  ;;  %v4410_v41 = vpop.permute.xlu0 %479 }
 0x162   :  { %5683 = vst [vmem:[#allocation38_spill] sm:$0xff] %v4408_v25  ;;  %5684 = vst [vmem:[#allocation5_spill] sm:$0xff] %v4410_v41  ;;  %v675_v41 = vadd.s32 64, %v5692_v1  ;;  %v5697_v1 = vld [vmem:[#allocation11_spill] sm:$0xff] }
 0x163   :  { %1041 = vperm.xlu1 %3347, %v733_v46   ;;  %858 = vperm.xlu0 %3346, %v672_v30   ;;  %v736_v46 = vadd.s32 64, %v5693_v32  ;;  %v4426_v30 = vand.u32 127, %v140_v27  ;;  %v677_v32 = vadd.s32 64, %v5697_v1  ;;  %v5704_v1 = vld [vmem:[#allocation59_spill] sm:$0xff] }
 0x165   :  { %v4414_v28 = vpop.permute.xlu1 %488  ;;  %v4416_v45 = vpop.permute.xlu0 %485  ;;  %vm580_vm5 = vcmp.eq.s32.totalorder %v4426_v30, %v4258_v42  ;;  %vm581_vm11 = vcmp.eq.s32.totalorder %v4426_v30, %v4266_v63 }
 0x166   :  { %5687 = vst [vmem:[#allocation43_spill] sm:$0xff] %v4414_v28  ;;  %5688 = vst [vmem:[#allocation8_spill] sm:$0xff] %v4416_v45 }
 0x167   :  { %1044 = vperm.xlu1 %3347, %v734_v38   ;;  %861 = vperm.xlu0 %3346, %v673_v34   ;;  %v737_v38 = vadd.s32 64, %v5695_v26  ;;  %v5696_v34 = vld [vmem:[#allocation15_spill] sm:$0xff]  ;;  %v5702_v26 = vld [vmem:[#allocation54_spill] sm:$0xff] }
 0x168   :  { %vm517_vm2 = vcmp.eq.s32.totalorder %v4426_v30, %v5696_v34  ;;  %v5703_v34 = vld [vmem:[#allocation14_spill] sm:$0xff] }
 0x169   :  { %v4420_v35 = vpop.permute.xlu1 %494  ;;  %v4422_v25 = vpop.permute.xlu0 %491  ;;  %vm519_vm13 = vcmp.eq.s32.totalorder %v4426_v30, %v5703_v34  ;;  %v3358_v34 = vld [vmem:[%s5537_s0 + $0x138] sm:$0xff] }
 0x16a   :  { %5691 = vst [vmem:[#allocation42_spill] sm:$0xff] %v4420_v35  ;;  %v738_v35 = vadd.s32 64, %v5698_v33  ;;  %v5705_v33 = vld [vmem:[#allocation16_spill] sm:$0xff] }
 0x16b   :  { %1047 = vperm.xlu1 %3347, %v735_v31   ;;  %864 = vperm.xlu0 %3346, %v674_v29   ;;  %v3419_v31 = vmov 1.0  }
 0x16e   :  { %v772_v28 = vpop.permute.xlu1 %771  ;;  %v769_v45 = vpop.permute.xlu0 %768 }
 0x16f   :  { %vm1142_vm1 = vcmp.eq.s32.totalorder %v4426_v30, %v769_v45  ;;  %1050 = vperm.xlu1 %3347, %v736_v46   ;;  %867 = vperm.xlu0 %3346, %v675_v41   ;;  %vm1143_vm4 = vcmp.eq.s32.totalorder %v4426_v30, %v772_v28  ;;  %v5699_v41 = vld [vmem:[#allocation17_spill] sm:$0xff]  ;;  %v5700_v28 = vmov 0.0  }
 0x170   :  { %vm1267_vm3 = vmor %vm517_vm2, %vm1142_vm1  ;;  %vm518_vm7 = vcmp.eq.s32.totalorder %v4426_v30, %v5699_v41  ;;  %vm582_vm2 = vcmp.eq.s32.totalorder %v4426_v30, %v4264_v0 }
 0x171   :  { %2921 = vmatmul.mubr.msk.f32.vlgmr.msra.gmra.mrb[0].mxu0 %vm1267_vm3, %v3419_v31  ;;  %vm1268_vm9 = vmor %vm518_vm7, %vm1143_vm4  ;;  %vm520_vm4 = vcmp.eq.s32.totalorder %v4426_v30, %v5705_v33 }
 0x172   :  { %v958_v29 = vpop.permute.xlu1 %957  ;;  %v775_v27 = vpop.permute.xlu0 %774  ;;  %2923 = vmatprep.mubr.msk.f32.mxu0 %vm3417_vm0, %v5700_v28 }
 0x173   :  { %vm1205_vm6 = vcmp.eq.s32.totalorder %v4426_v30, %v958_v29  ;;  %1053 = vperm.xlu1 %3347, %v737_v38   ;;  %870 = vperm.xlu0 %3346, %v676_v49   ;;  %vm1144_vm10 = vcmp.eq.s32.totalorder %v4426_v30, %v775_v27  ;;  %v5701_v49 = vld [vmem:[#allocation13_spill] sm:$0xff]  ;;  %v739_v38 = vadd.s32 64, %v5702_v26 }
 0x174   :  { %vm1330_vm8 = vmor %vm580_vm5, %vm1205_vm6  ;;  %v678_v46 = vadd.s32 64, %v5701_v49 }
 0x175   :  { %3110 = vmatmul.mubr.msk.f32.vlgmr.msra.gmra.mrb[0].mxu1 %vm1330_vm8, %v3419_v31  ;;  %2924 = vmatmul.mubr.msk.f32.gmra.mrb[2].mxu0 %vm1268_vm9, %v3419_v31  ;;  %vm1269_vm15 = vmor %vm519_vm13, %vm1144_vm10  ;;  %vm583_vm8 = vcmp.eq.s32.totalorder %v4426_v30, %v4272_v36 }
 0x176   :  { %v961_v45 = vpop.permute.xlu1 %960  ;;  %v778_v42 = vpop.permute.xlu0 %777  ;;  %3112 = vmatprep.mubr.msk.f32.mxu1 %vm3417_vm0, %v5700_v28  ;;  %2926 = vmatprep.mubr.msk.f32.mxu0 %vm3417_vm0, %v5700_v28 }
 0x177   :  { %vm1206_vm12 = vcmp.eq.s32.totalorder %v4426_v30, %v961_v45  ;;  %1056 = vperm.xlu1 %3347, %v738_v35   ;;  %873 = vperm.xlu0 %3346, %v677_v32   ;;  %vm1145_vm1 = vcmp.eq.s32.totalorder %v4426_v30, %v778_v42  ;;  %v3356_v35 = vld [vmem:[%s5537_s0 + $0x128] sm:$0xff]  ;;  %v740_v32 = vadd.s32 64, %v5704_v1  ;;  %v3357_v45 = vld [vmem:[%s5537_s0 + $0x130] sm:$0xff]  ;;  %v5707_v42 = vld [vmem:[#allocation19_spill] sm:$0xff] }
 0x178   :  { %vm1331_vm14 = vmor %vm581_vm11, %vm1206_vm12  ;;  %v679_v27 = vadd.s32 64, %v3356_v35  ;;  %v680_v49 = vadd.s32 64, %v3357_v45  ;;  %vm521_vm10 = vcmp.eq.s32.totalorder %v4426_v30, %v5707_v42  ;;  %v5708_v35 = vld [vmem:[#allocation63_spill] sm:$0xff] }
 0x179   :  { %3113 = vmatmul.mubr.msk.f32.gmra.mrb[2].mxu1 %vm1331_vm14, %v3419_v31  ;;  %2927 = vmatmul.mubr.msk.f32.gmra.mrb[4].mxu0 %vm1269_vm15, %v3419_v31  ;;  %vm1270_vm6 = vmor %vm520_vm4, %vm1145_vm1  ;;  %vm584_vm14 = vcmp.eq.s32.totalorder %v4426_v30, %v4270_v4  ;;  %v5712_v42 = vld [vmem:[#allocation67_spill] sm:$0xff] }
 0x17a   :  { %v964_v29 = vpop.permute.xlu1 %963  ;;  %v781_v63 = vpop.permute.xlu0 %780  ;;  %3115 = vmatprep.mubr.msk.f32.mxu1 %vm3417_vm0, %v5700_v28  ;;  %2929 = vmatprep.mubr.msk.f32.mxu0 %vm3417_vm0, %v5700_v28 }
 0x17b   :  { %vm1207_vm3 = vcmp.eq.s32.totalorder %v4426_v30, %v964_v29  ;;  %1059 = vperm.xlu1 %3347, %v739_v38   ;;  %876 = vperm.xlu0 %3346, %v678_v46   ;;  %vm1146_vm7 = vcmp.eq.s32.totalorder %v4426_v30, %v781_v63  ;;  %v5706_v46 = vld [vmem:[#allocation58_spill] sm:$0xff]  ;;  %v681_v29 = vadd.s32 64, %v3358_v34 }
 0x17c   :  { %vm1332_vm5 = vmor %vm582_vm2, %vm1207_vm3  ;;  %v741_v26 = vadd.s32 64, %v5706_v46  ;;  %v5709_v63 = vld [vmem:[#allocation18_spill] sm:$0xff]  ;;  %v3360_v46 = vld [vmem:[%s5537_s0 + $0x148] sm:$0xff] }
 0x17d   :  { %3116 = vmatmul.mubr.msk.f32.gmra.mrb[4].mxu1 %vm1332_vm5, %v3419_v31  ;;  %2930 = vmatmul.mubr.msk.f32.gmra.mrb[6].mxu0 %vm1270_vm6, %v3419_v31  ;;  %vm1271_vm12 = vmor %vm521_vm10, %vm1146_vm7  ;;  %vm522_vm1 = vcmp.eq.s32.totalorder %v4426_v30, %v5709_v63  ;;  %vm585_vm5 = vcmp.eq.s32.totalorder %v4426_v30, %v4278_v40 }
 0x17e   :  { %v967_v0 = vpop.permute.xlu1 %966  ;;  %v784_v41 = vpop.permute.xlu0 %783  ;;  %3118 = vmatprep.mubr.msk.f32.mxu1 %vm3417_vm0, %v5700_v28  ;;  %2932 = vmatprep.mubr.msk.f32.mxu0 %vm3417_vm0, %v5700_v28 }
 0x17f   :  { %vm1208_vm9 = vcmp.eq.s32.totalorder %v4426_v30, %v967_v0  ;;  %1062 = vperm.xlu1 %3347, %v740_v32   ;;  %879 = vperm.xlu0 %3346, %v679_v27   ;;  %vm1147_vm13 = vcmp.eq.s32.totalorder %v4426_v30, %v784_v41  ;;  %v742_v27 = vadd.s32 64, %v5708_v35  ;;  %v3359_v32 = vld [vmem:[%s5537_s0 + $0x140] sm:$0xff]  ;;  %v5710_v0 = vld [vmem:[#allocation62_spill] sm:$0xff]  ;;  %v5711_v41 = vld [vmem:[#allocation21_spill] sm:$0xff] }
 0x180   :  { %vm1333_vm11 = vmor %vm583_vm8, %vm1208_vm9  ;;  %v682_v33 = vadd.s32 64, %v3359_v32  ;;  %v743_v45 = vadd.s32 64, %v5710_v0  ;;  %vm523_vm7 = vcmp.eq.s32.totalorder %v4426_v30, %v5711_v41  ;;  %v3362_v32 = vld [vmem:[%s5537_s0 + $0x158] sm:$0xff]  ;;  %v5716_v0 = vld [vmem:[#allocation71_spill] sm:$0xff] }
 0x181   :  { %3119 = vmatmul.mubr.msk.f32.gmra.mrb[6].mxu1 %vm1333_vm11, %v3419_v31  ;;  %2933 = vmatmul.mubr.msk.f32.gmra.mrb[8].mxu0 %vm1271_vm12, %v3419_v31  ;;  %vm1272_vm3 = vmor %vm522_vm1, %vm1147_vm13  ;;  %vm586_vm11 = vcmp.eq.s32.totalorder %v4426_v30, %v4276_v3  ;;  %v5717_v41 = vld [vmem:[#allocation22_spill] sm:$0xff] }
 0x182   :  { %v970_v36 = vpop.permute.xlu1 %969  ;;  %v787_v38 = vpop.permute.xlu0 %786  ;;  %3121 = vmatprep.mubr.msk.f32.mxu1 %vm3417_vm0, %v5700_v28  ;;  %2935 = vmatprep.mubr.msk.f32.mxu0 %vm3417_vm0, %v5700_v28 }
 0x183   :  { %vm1209_vm15 = vcmp.eq.s32.totalorder %v4426_v30, %v970_v36  ;;  %1065 = vperm.xlu1 %3347, %v741_v26   ;;  %882 = vperm.xlu0 %3346, %v680_v49   ;;  %vm1148_vm4 = vcmp.eq.s32.totalorder %v4426_v30, %v787_v38  ;;  %v683_v26 = vadd.s32 64, %v3360_v46  ;;  %v744_v36 = vadd.s32 64, %v5712_v42  ;;  %v5713_v38 = vld [vmem:[#allocation20_spill] sm:$0xff] }
 0x184   :  { %vm1334_vm2 = vmor %vm584_vm14, %vm1209_vm15  ;;  %vm524_vm13 = vcmp.eq.s32.totalorder %v4426_v30, %v5713_v38 }
 0x185   :  { %3122 = vmatmul.mubr.msk.f32.gmra.mrb[8].mxu1 %vm1334_vm2, %v3419_v31  ;;  %2936 = vmatmul.mubr.msk.f32.gmra.mrb[10].mxu0 %vm1272_vm3, %v3419_v31  ;;  %vm1273_vm9 = vmor %vm523_vm7, %vm1148_vm4  ;;  %vm587_vm2 = vcmp.eq.s32.totalorder %v4426_v30, %v4284_v39 }
 0x186   :  { %v973_v4 = vpop.permute.xlu1 %972  ;;  %v790_v1 = vpop.permute.xlu0 %789  ;;  %3124 = vmatprep.mubr.msk.f32.mxu1 %vm3417_vm0, %v5700_v28  ;;  %2938 = vmatprep.mubr.msk.f32.mxu0 %vm3417_vm0, %v5700_v28 }
 0x187   :  { %vm1210_vm6 = vcmp.eq.s32.totalorder %v4426_v30, %v973_v4  ;;  %1068 = vperm.xlu1 %3347, %v742_v27   ;;  %885 = vperm.xlu0 %3346, %v681_v29   ;;  %vm1149_vm10 = vcmp.eq.s32.totalorder %v4426_v30, %v790_v1  ;;  %v3361_v29 = vld [vmem:[%s5537_s0 + $0x150] sm:$0xff]  ;;  %v5714_v27 = vld [vmem:[#allocation66_spill] sm:$0xff]  ;;  %v5715_v4 = vld [vmem:[#allocation23_spill] sm:$0xff] }
 0x188   :  { %vm1335_vm8 = vmor %vm585_vm5, %vm1210_vm6  ;;  %v684_v35 = vadd.s32 64, %v3361_v29  ;;  %v745_v63 = vadd.s32 64, %v5714_v27  ;;  %vm525_vm4 = vcmp.eq.s32.totalorder %v4426_v30, %v5715_v4  ;;  %v5720_v29 = vld [vmem:[#allocation75_spill] sm:$0xff]  ;;  %v5721_v27 = vld [vmem:[#allocation24_spill] sm:$0xff] }
 0x189   :  { %3125 = vmatmul.mubr.msk.f32.gmra.mrb[10].mxu1 %vm1335_vm8, %v3419_v31  ;;  %2939 = vmatmul.mubr.msk.f32.gmra.mrb[12].mxu0 %vm1273_vm9, %v3419_v31  ;;  %vm1274_vm15 = vmor %vm524_vm13, %vm1149_vm10  ;;  %vm588_vm8 = vcmp.eq.s32.totalorder %v4426_v30, %v4282_v6  ;;  %vm526_vm10 = vcmp.eq.s32.totalorder %v4426_v30, %v5717_v41  ;;  %v3365_v4 = vld [vmem:[%s5537_s0 + $0x170] sm:$0xff] }
 0x18a   :  { %v976_v40 = vpop.permute.xlu1 %975  ;;  %v793_v49 = vpop.permute.xlu0 %792  ;;  %3127 = vmatprep.mubr.msk.f32.mxu1 %vm3417_vm0, %v5700_v28  ;;  %2941 = vmatprep.mubr.msk.f32.mxu0 %vm3417_vm0, %v5700_v28 }
 0x18b   :  { %vm1211_vm12 = vcmp.eq.s32.totalorder %v4426_v30, %v976_v40  ;;  %1071 = vperm.xlu1 %3347, %v743_v45   ;;  %888 = vperm.xlu0 %3346, %v682_v33   ;;  %vm1150_vm1 = vcmp.eq.s32.totalorder %v4426_v30, %v793_v49  ;;  %v685_v33 = vadd.s32 64, %v3362_v32  ;;  %v746_v45 = vadd.s32 64, %v5716_v0  ;;  %v3363_v49 = vld [vmem:[%s5537_s0 + $0x160] sm:$0xff] }
 0x18c   :  { %vm1336_vm14 = vmor %vm586_vm11, %vm1211_vm12  ;;  %v686_v46 = vadd.s32 64, %v3363_v49  ;;  %v5725_v49 = vld [vmem:[#allocation26_spill] sm:$0xff] }
 0x18d   :  { %3128 = vmatmul.mubr.msk.f32.gmra.mrb[12].mxu1 %vm1336_vm14, %v3419_v31  ;;  %2942 = vmatmul.mubr.msk.f32.gmra.mrb[14].mxu0 %vm1274_vm15, %v3419_v31  ;;  %vm1275_vm6 = vmor %vm525_vm4, %vm1150_vm1  ;;  %vm589_vm14 = vcmp.eq.s32.totalorder %v4426_v30, %v4290_v44 }
 0x18e   :  { %v979_v3 = vpop.permute.xlu1 %978  ;;  %v796_v34 = vpop.permute.xlu0 %795  ;;  %3130 = vmatprep.mubr.msk.f32.mxu1 %vm3417_vm0, %v5700_v28  ;;  %2944 = vmatprep.mubr.msk.f32.mxu0 %vm3417_vm0, %v5700_v28 }
 0x18f   :  { %vm1212_vm3 = vcmp.eq.s32.totalorder %v4426_v30, %v979_v3  ;;  %1074 = vperm.xlu1 %3347, %v744_v36   ;;  %891 = vperm.xlu0 %3346, %v683_v26   ;;  %vm1151_vm7 = vcmp.eq.s32.totalorder %v4426_v30, %v796_v34  ;;  %v5718_v26 = vld [vmem:[#allocation70_spill] sm:$0xff]  ;;  %v5719_v36 = vld [vmem:[#allocation25_spill] sm:$0xff]  ;;  %v3364_v3 = vld [vmem:[%s5537_s0 + $0x168] sm:$0xff] }
 0x190   :  { %vm1337_vm5 = vmor %vm587_vm2, %vm1212_vm3  ;;  %v747_v42 = vadd.s32 64, %v5718_v26  ;;  %vm527_vm1 = vcmp.eq.s32.totalorder %v4426_v30, %v5719_v36  ;;  %v687_v34 = vadd.s32 64, %v3364_v3  ;;  %v3367_v26 = vld [vmem:[%s5537_s0 + $0x180] sm:$0xff]  ;;  %v5726_v36 = vld [vmem:[#allocation78_spill] sm:$0xff] }
 0x191   :  { %3131 = vmatmul.mubr.msk.f32.gmra.mrb[14].mxu1 %vm1337_vm5, %v3419_v31  ;;  %2945 = vmatmul.mubr.msk.f32.gmra.mrb[16].mxu0 %vm1275_vm6, %v3419_v31  ;;  %vm1276_vm12 = vmor %vm526_vm10, %vm1151_vm7  ;;  %vm590_vm5 = vcmp.eq.s32.totalorder %v4426_v30, %v4288_v5  ;;  %vm528_vm7 = vcmp.eq.s32.totalorder %v4426_v30, %v5721_v27 }
 0x192   :  { %v982_v39 = vpop.permute.xlu1 %981  ;;  %v799_v1 = vpop.permute.xlu0 %798  ;;  %3133 = vmatprep.mubr.msk.f32.mxu1 %vm3417_vm0, %v5700_v28  ;;  %2947 = vmatprep.mubr.msk.f32.mxu0 %vm3417_vm0, %v5700_v28 }
 0x193   :  { %vm1213_vm9 = vcmp.eq.s32.totalorder %v4426_v30, %v982_v39  ;;  %1077 = vperm.xlu1 %3347, %v745_v63   ;;  %894 = vperm.xlu0 %3346, %v684_v35   ;;  %vm1152_vm13 = vcmp.eq.s32.totalorder %v4426_v30, %v799_v1  ;;  %v748_v35 = vadd.s32 64, %v5720_v29  ;;  %v688_v39 = vadd.s32 64, %v3365_v4  ;;  %v5722_v1 = vld [vmem:[#allocation74_spill] sm:$0xff]  ;;  %v3369_v4 = vld [vmem:[%s5537_s0 + $0x190] sm:$0xff] }
 0x194   :  { %vm1338_vm11 = vmor %vm588_vm8, %vm1213_vm9  ;;  %v749_v32 = vadd.s32 64, %v5722_v1  ;;  %v3370_v1 = vld [vmem:[%s5537_s0 + $0x378] sm:$0xff] }
 0x195   :  { %3134 = vmatmul.mubr.msk.f32.gmra.mrb[16].mxu1 %vm1338_vm11, %v3419_v31  ;;  %2948 = vmatmul.mubr.msk.f32.gmra.mrb[18].mxu0 %vm1276_vm12, %v3419_v31  ;;  %vm1277_vm3 = vmor %vm527_vm1, %vm1152_vm13  ;;  %vm591_vm11 = vcmp.eq.s32.totalorder %v4426_v30, %v4296_v43 }
 0x196   :  { %v985_v6 = vpop.permute.xlu1 %984  ;;  %v802_v40 = vpop.permute.xlu0 %801  ;;  %3136 = vmatprep.mubr.msk.f32.mxu1 %vm3417_vm0, %v5700_v28  ;;  %2950 = vmatprep.mubr.msk.f32.mxu0 %vm3417_vm0, %v5700_v28 }
 0x197   :  { %vm1214_vm15 = vcmp.eq.s32.totalorder %v4426_v30, %v985_v6  ;;  %1080 = vperm.xlu1 %3347, %v746_v45   ;;  %897 = vperm.xlu0 %3346, %v685_v33   ;;  %vm1153_vm4 = vcmp.eq.s32.totalorder %v4426_v30, %v802_v40  ;;  %v5723_v33 = vld [vmem:[#allocation27_spill] sm:$0xff]  ;;  %v3366_v45 = vld [vmem:[%s5537_s0 + $0x178] sm:$0xff] }
 0x198   :  { %vm1339_vm2 = vmor %vm589_vm14, %vm1214_vm15  ;;  %vm529_vm13 = vcmp.eq.s32.totalorder %v4426_v30, %v5723_v33  ;;  %v689_v41 = vadd.s32 64, %v3366_v45  ;;  %v5724_v6 = vld [vmem:[#allocation79_spill] sm:$0xff] }
 0x199   :  { %3137 = vmatmul.mubr.msk.f32.gmra.mrb[18].mxu1 %vm1339_vm2, %v3419_v31  ;;  %2951 = vmatmul.mubr.msk.f32.gmra.mrb[20].mxu0 %vm1277_vm3, %v3419_v31  ;;  %vm1278_vm9 = vmor %vm528_vm7, %vm1153_vm4  ;;  %v750_v40 = vadd.s32 64, %v5724_v6  ;;  %vm592_vm2 = vcmp.eq.s32.totalorder %v4426_v30, %v4294_v8  ;;  %vm530_vm4 = vcmp.eq.s32.totalorder %v4426_v30, %v5725_v49  ;;  %v5730_v33 = vld [vmem:[#allocation31_spill] sm:$0xff] }
 0x19a   :  { %v988_v44 = vpop.permute.xlu1 %987  ;;  %v805_v38 = vpop.permute.xlu0 %804  ;;  %3139 = vmatprep.mubr.msk.f32.mxu1 %vm3417_vm0, %v5700_v28  ;;  %2953 = vmatprep.mubr.msk.f32.mxu0 %vm3417_vm0, %v5700_v28 }
 0x19b   :  { %vm1215_vm6 = vcmp.eq.s32.totalorder %v4426_v30, %v988_v44  ;;  %1083 = vperm.xlu1 %3347, %v747_v42   ;;  %900 = vperm.xlu0 %3346, %v686_v46   ;;  %vm1154_vm10 = vcmp.eq.s32.totalorder %v4426_v30, %v805_v38  ;;  %v690_v42 = vadd.s32 64, %v3367_v26  ;;  %v751_v44 = vadd.s32 64, %v5726_v36  ;;  %v5727_v38 = vld [vmem:[#allocation29_spill] sm:$0xff]  ;;  %v3374_v26 = vld [vmem:[%s5537_s0 + $0x388] sm:$0xff] }
 0x19c   :  { %vm1340_vm8 = vmor %vm590_vm5, %vm1215_vm6  ;;  %v5732_v36 = vld [vmem:[#allocation33_spill] sm:$0xff] }
 0x19d   :  { %3140 = vmatmul.mubr.msk.f32.gmra.mrb[20].mxu1 %vm1340_vm8, %v3419_v31  ;;  %2954 = vmatmul.mubr.msk.f32.gmra.mrb[22].mxu0 %vm1278_vm9, %v3419_v31  ;;  %vm1279_vm15 = vmor %vm529_vm13, %vm1154_vm10  ;;  %vm593_vm8 = vcmp.eq.s32.totalorder %v4426_v30, %v4302_v48  ;;  %vm531_vm10 = vcmp.eq.s32.totalorder %v4426_v30, %v5727_v38  ;;  %v3375_v38 = vld [vmem:[%s5537_s0 + $0x1a8] sm:$0xff] }
 0x19e   :  { %v991_v5 = vpop.permute.xlu1 %990  ;;  %v808_v63 = vpop.permute.xlu0 %807  ;;  %3142 = vmatprep.mubr.msk.f32.mxu1 %vm3417_vm0, %v5700_v28  ;;  %2956 = vmatprep.mubr.msk.f32.mxu0 %vm3417_vm0, %v5700_v28 }
 0x19f   :  { %vm1216_vm12 = vcmp.eq.s32.totalorder %v4426_v30, %v991_v5  ;;  %1086 = vperm.xlu1 %3347, %v748_v35   ;;  %903 = vperm.xlu0 %3346, %v687_v34   ;;  %vm1155_vm1 = vcmp.eq.s32.totalorder %v4426_v30, %v808_v63  ;;  %v3368_v34 = vld [vmem:[%s5537_s0 + $0x188] sm:$0xff]  ;;  %v5728_v35 = vld [vmem:[#allocation82_spill] sm:$0xff] }
 0x1a0   :  { %vm1341_vm14 = vmor %vm591_vm11, %vm1216_vm12  ;;  %v691_v29 = vadd.s32 64, %v3368_v34  ;;  %v752_v27 = vadd.s32 64, %v5728_v35  ;;  %v5729_v5 = vld [vmem:[#allocation28_spill] sm:$0xff] }
 0x1a1   :  { %3143 = vmatmul.mubr.msk.f32.gmra.mrb[22].mxu1 %vm1341_vm14, %v3419_v31  ;;  %2957 = vmatmul.mubr.msk.f32.gmra.mrb[24].mxu0 %vm1279_vm15, %v3419_v31  ;;  %vm1280_vm6 = vmor %vm530_vm4, %vm1155_vm1  ;;  %vm594_vm14 = vcmp.eq.s32.totalorder %v4426_v30, %v4300_v7  ;;  %vm532_vm1 = vcmp.eq.s32.totalorder %v4426_v30, %v5729_v5 }
 0x1a2   :  { %v994_v43 = vpop.permute.xlu1 %993  ;;  %v811_v0 = vpop.permute.xlu0 %810  ;;  %3145 = vmatprep.mubr.msk.f32.mxu1 %vm3417_vm0, %v5700_v28  ;;  %2959 = vmatprep.mubr.msk.f32.mxu0 %vm3417_vm0, %v5700_v28 }
 0x1a3   :  { %vm1217_vm3 = vcmp.eq.s32.totalorder %v4426_v30, %v994_v43  ;;  %1089 = vperm.xlu1 %3347, %v749_v32   ;;  %906 = vperm.xlu0 %3346, %v688_v39   ;;  %vm1156_vm7 = vcmp.eq.s32.totalorder %v4426_v30, %v811_v0  ;;  %v692_v39 = vadd.s32 64, %v3369_v4  ;;  %v753_v32 = vadd.s32 64, %v3370_v1  ;;  %v3371_v0 = vld [vmem:[%s5537_s0 + $0x198] sm:$0xff]  ;;  %v5734_v4 = vld [vmem:[#allocation35_spill] sm:$0xff] }
 0x1a4   :  { %vm1342_vm5 = vmor %vm592_vm2, %vm1217_vm3  ;;  %v693_v45 = vadd.s32 64, %v3371_v0  ;;  %v3379_v1 = vld [vmem:[%s5537_s0 + $0x1b8] sm:$0xff] }
 0x1a5   :  { %3146 = vmatmul.mubr.msk.f32.gmra.mrb[24].mxu1 %vm1342_vm5, %v3419_v31  ;;  %2960 = vmatmul.mubr.msk.f32.gmra.mrb[26].mxu0 %vm1280_vm6, %v3419_v31  ;;  %vm1281_vm12 = vmor %vm531_vm10, %vm1156_vm7  ;;  %vm595_vm5 = vcmp.eq.s32.totalorder %v4426_v30, %v4308_v47  ;;  %vm533_vm7 = vcmp.eq.s32.totalorder %v4426_v30, %v5730_v33  ;;  %v3380_v33 = vld [vmem:[%s5537_s0 + $0x3a0] sm:$0xff]  ;;  %v4813_v0 = vld [vmem:[%s5537_s0 + $0x3b8] sm:$0xff] }
 0x1a6   :  { %v997_v8 = vpop.permute.xlu1 %996  ;;  %v814_v46 = vpop.permute.xlu0 %813  ;;  %3148 = vmatprep.mubr.msk.f32.mxu1 %vm3417_vm0, %v5700_v28  ;;  %2962 = vmatprep.mubr.msk.f32.mxu0 %vm3417_vm0, %v5700_v28 }
 0x1a7   :  { %vm1218_vm9 = vcmp.eq.s32.totalorder %v4426_v30, %v997_v8  ;;  %1092 = vperm.xlu1 %3347, %v750_v40   ;;  %909 = vperm.xlu0 %3346, %v689_v41   ;;  %vm1157_vm13 = vcmp.eq.s32.totalorder %v4426_v30, %v814_v46  ;;  %v3372_v41 = vld [vmem:[%s5537_s0 + $0x380] sm:$0xff]  ;;  %v5731_v40 = vld [vmem:[#allocation30_spill] sm:$0xff] }
 0x1a8   :  { %vm1343_vm11 = vmor %vm593_vm8, %vm1218_vm9  ;;  %v754_v6 = vadd.s32 64, %v3372_v41  ;;  %v3373_v8 = vld [vmem:[%s5537_s0 + $0x1a0] sm:$0xff]  ;;  %v3381_v41 = vld [vmem:[%s5537_s0 + $0x3a8] sm:$0xff] }
 0x1a9   :  { %3149 = vmatmul.mubr.msk.f32.gmra.mrb[26].mxu1 %vm1343_vm11, %v3419_v31  ;;  %2963 = vmatmul.mubr.msk.f32.gmra.mrb[28].mxu0 %vm1281_vm12, %v3419_v31  ;;  %vm1282_vm3 = vmor %vm532_vm1, %vm1157_vm13  ;;  %vm596_vm11 = vcmp.eq.s32.totalorder %v4426_v30, %v4306_v10  ;;  %vm534_vm13 = vcmp.eq.s32.totalorder %v4426_v30, %v5731_v40  ;;  %v694_v46 = vadd.s32 64, %v3373_v8  ;;  %v761_v40 = vadd.s32 64, %v4813_v0 }
 0x1aa   :  { %v1000_v48 = vpop.permute.xlu1 %999  ;;  %v817_v3 = vpop.permute.xlu0 %816  ;;  %3151 = vmatprep.mubr.msk.f32.mxu1 %vm3417_vm0, %v5700_v28  ;;  %2965 = vmatprep.mubr.msk.f32.mxu0 %vm3417_vm0, %v5700_v28 }
 0x1ab   :  { %vm1219_vm15 = vcmp.eq.s32.totalorder %v4426_v30, %v1000_v48  ;;  %1095 = vperm.xlu1 %3347, %v751_v44   ;;  %912 = vperm.xlu0 %3346, %v690_v42   ;;  %vm1158_vm4 = vcmp.eq.s32.totalorder %v4426_v30, %v817_v3  ;;  %v755_v42 = vadd.s32 64, %v3374_v26  ;;  %v695_v48 = vadd.s32 64, %v3375_v38  ;;  %v3376_v3 = vld [vmem:[%s5537_s0 + $0x390] sm:$0xff]  ;;  %v3383_v38 = vld [vmem:[%s5537_s0 + $0x1d8] sm:$0xff] }
 0x1ac   :  { %vm1344_vm2 = vmor %vm594_vm14, %vm1219_vm15  ;;  %v756_v34 = vadd.s32 64, %v3376_v3 }
 0x1ad   :  { %3152 = vmatmul.mubr.msk.f32.gmra.mrb[28].mxu1 %vm1344_vm2, %v3419_v31  ;;  %2966 = vmatmul.mubr.msk.f32.gmra.mrb[30].mxu0 %vm1282_vm3, %v3419_v31  ;;  %vm1283_vm9 = vmor %vm533_vm7, %vm1158_vm4  ;;  %vm597_vm2 = vcmp.eq.s32.totalorder %v4426_v30, %v4314_v52  ;;  %vm535_vm4 = vcmp.eq.s32.totalorder %v4426_v30, %v5732_v36  ;;  %v5737_v36 = vld [vmem:[#allocation36_spill] sm:$0xff] }
 0x1ae   :  { %v1003_v7 = vpop.permute.xlu1 %1002  ;;  %v820_v63 = vpop.permute.xlu0 %819  ;;  %3154 = vmatprep.mubr.msk.f32.mxu1 %vm3417_vm0, %v5700_v28  ;;  %2968 = vmatprep.mubr.msk.f32.mxu0 %vm3417_vm0, %v5700_v28 }
 0x1af   :  { %vm1220_vm6 = vcmp.eq.s32.totalorder %v4426_v30, %v1003_v7  ;;  %1098 = vperm.xlu1 %3347, %v752_v27   ;;  %915 = vperm.xlu0 %3346, %v691_v29   ;;  %vm1159_vm10 = vcmp.eq.s32.totalorder %v4426_v30, %v820_v63  ;;  %v5733_v29 = vld [vmem:[#allocation32_spill] sm:$0xff]  ;;  %v3377_v27 = vld [vmem:[%s5537_s0 + $0x1b0] sm:$0xff]  ;;  %v3378_v7 = vld [vmem:[%s5537_s0 + $0x398] sm:$0xff] }
 0x1b0   :  { %vm1345_vm8 = vmor %vm595_vm5, %vm1220_vm6  ;;  %v696_v5 = vadd.s32 64, %v3377_v27  ;;  %v757_v63 = vadd.s32 64, %v3378_v7  ;;  %v5739_v27 = vld [vmem:[#allocation40_spill] sm:$0xff]  ;;  %v5740_v7 = vmov 0  }
 0x1b1   :  { %3155 = vmatmul.mubr.msk.f32.gmra.mrb[30].mxu1 %vm1345_vm8, %v3419_v31  ;;  %2969 = vmatmul.mubr.msk.f32.gmra.mrb[32].mxu0 %vm1283_vm9, %v3419_v31  ;;  %vm1284_vm15 = vmor %vm534_vm13, %vm1159_vm10  ;;  %vm598_vm8 = vcmp.eq.s32.totalorder %v4426_v30, %v4312_v9  ;;  %vm536_vm10 = vcmp.eq.s32.totalorder %v4426_v30, %v5733_v29 }
 0x1b2   :  { %v1006_v47 = vpop.permute.xlu1 %1005  ;;  %v823_v43 = vpop.permute.xlu0 %822  ;;  %3157 = vmatprep.mubr.msk.f32.mxu1 %vm3417_vm0, %v5700_v28  ;;  %2971 = vmatprep.mubr.msk.f32.mxu0 %vm3417_vm0, %v5700_v28 }
 0x1b3   :  { %vm1221_vm12 = vcmp.eq.s32.totalorder %v4426_v30, %v1006_v47  ;;  %1101 = vperm.xlu1 %3347, %v753_v32   ;;  %918 = vperm.xlu0 %3346, %v692_v39   ;;  %vm1160_vm1 = vcmp.eq.s32.totalorder %v4426_v30, %v823_v43  ;;  %v697_v32 = vadd.s32 64, %v3379_v1  ;;  %v758_v47 = vadd.s32 64, %v3380_v33  ;;  %v5735_v43 = vld [vmem:[#allocation34_spill] sm:$0xff]  ;;  %v4930_v1 = vld [vmem:[%s5537_s0 + $0x3d0] sm:$0xff] }
 0x1b4   :  { %vm1346_vm14 = vmor %vm596_vm11, %vm1221_vm12 }
 0x1b5   :  { %3158 = vmatmul.mubr.msk.f32.gmra.mrb[32].mxu1 %vm1346_vm14, %v3419_v31  ;;  %2972 = vmatmul.mubr.msk.f32.gmra.mrb[34].mxu0 %vm1284_vm15, %v3419_v31  ;;  %vm1285_vm6 = vmor %vm535_vm4, %vm1160_vm1  ;;  %vm599_vm14 = vcmp.eq.s32.totalorder %v4426_v30, %v4320_v51  ;;  %vm537_vm1 = vcmp.eq.s32.totalorder %v4426_v30, %v5734_v4 }
 0x1b6   :  { %v1009_v10 = vpop.permute.xlu1 %1008  ;;  %v826_v49 = vpop.permute.xlu0 %825  ;;  %3160 = vmatprep.mubr.msk.f32.mxu1 %vm3417_vm0, %v5700_v28  ;;  %2974 = vmatprep.mubr.msk.f32.mxu0 %vm3417_vm0, %v5700_v28 }
 0x1b7   :  { %vm1222_vm3 = vcmp.eq.s32.totalorder %v4426_v30, %v1009_v10  ;;  %1104 = vperm.xlu1 %3347, %v754_v6   ;;  %921 = vperm.xlu0 %3346, %v693_v45   ;;  %vm1161_vm7 = vcmp.eq.s32.totalorder %v4426_v30, %v826_v49  ;;  %v759_v6 = vadd.s32 64, %v3381_v41  ;;  %v5736_v10 = vld [vmem:[#allocation37_spill] sm:$0xff]  ;;  %v4836_v49 = vld [vmem:[%s5537_s0 + $0x3c0] sm:$0xff]  ;;  %v5745_v41 = vld [vmem:[#allocation48_spill] sm:$0xff] }
 0x1b8   :  { %vm1347_vm5 = vmor %vm597_vm2, %vm1222_vm3 }
 0x1b9   :  { %3161 = vmatmul.mubr.msk.f32.gmra.mrb[34].mxu1 %vm1347_vm5, %v3419_v31  ;;  %2975 = vmatmul.mubr.msk.f32.gmra.mrb[36].mxu0 %vm1285_vm6, %v3419_v31  ;;  %vm1286_vm12 = vmor %vm536_vm10, %vm1161_vm7  ;;  %vm600_vm5 = vcmp.eq.s32.totalorder %v4426_v30, %v4318_v12  ;;  %vm538_vm7 = vcmp.eq.s32.totalorder %v4426_v30, %v5735_v43  ;;  %v5744_v43 = vmov 1  }
 0x1ba   :  { %v1012_v52 = vpop.permute.xlu1 %1011  ;;  %v829_v44 = vpop.permute.xlu0 %828  ;;  %3163 = vmatprep.mubr.msk.f32.mxu1 %vm3417_vm0, %v5700_v28  ;;  %2977 = vmatprep.mubr.msk.f32.mxu0 %vm3417_vm0, %v5700_v28 }
 0x1bb   :  { %vm1223_vm9 = vcmp.eq.s32.totalorder %v4426_v30, %v1012_v52  ;;  %1107 = vperm.xlu1 %3347, %v755_v42   ;;  %924 = vperm.xlu0 %3346, %v694_v46   ;;  %vm1162_vm13 = vcmp.eq.s32.totalorder %v4426_v30, %v829_v44  ;;  %v3382_v46 = vld [vmem:[%s5537_s0 + $0x1c0] sm:$0xff]  ;;  %v762_v42 = vadd.s32 64, %v4836_v49  ;;  %v133_v52 = vld [vmem:[%s5537_s0 + $0x3b0] sm:$0xff] }
 0x1bc   :  { %vm1348_vm11 = vmor %vm598_vm8, %vm1223_vm9  ;;  %v698_v26 = vadd.s32 64, %v3382_v46  ;;  %v760_v3 = vadd.s32 64, %v133_v52 }
 0x1bd   :  { %3164 = vmatmul.mubr.msk.f32.gmra.mrb[36].mxu1 %vm1348_vm11, %v3419_v31  ;;  %2978 = vmatmul.mubr.msk.f32.gmra.mrb[38].mxu0 %vm1286_vm12, %v3419_v31  ;;  %vm1287_vm3 = vmor %vm537_vm1, %vm1162_vm13  ;;  %vm601_vm11 = vcmp.eq.s32.totalorder %v4426_v30, %v4326_v56  ;;  %vm539_vm13 = vcmp.eq.s32.totalorder %v4426_v30, %v5736_v10  ;;  %v4970_v10 = vld [vmem:[%s5537_s0 + $0x3e0] sm:$0xff] }
 0x1be   :  { %v1015_v9 = vpop.permute.xlu1 %1014  ;;  %v832_v35 = vpop.permute.xlu0 %831  ;;  %3166 = vmatprep.mubr.msk.f32.mxu1 %vm3417_vm0, %v5700_v28  ;;  %2980 = vmatprep.mubr.msk.f32.mxu0 %vm3417_vm0, %v5700_v28 }
 0x1bf   :  { %vm1224_vm15 = vcmp.eq.s32.totalorder %v4426_v30, %v1015_v9  ;;  %1110 = vperm.xlu1 %3347, %v756_v34   ;;  %927 = vperm.xlu0 %3346, %v695_v48   ;;  %vm1163_vm4 = vcmp.eq.s32.totalorder %v4426_v30, %v832_v35  ;;  %v701_v48 = vadd.s32 64, %v3383_v38  ;;  %v5738_v34 = vld [vmem:[#allocation41_spill] sm:$0xff]  ;;  %v3384_v9 = vld [vmem:[%s5537_s0 + $0x1c8] sm:$0xff] }
 0x1c0   :  { %vm1349_vm2 = vmor %vm599_vm14, %vm1224_vm15  ;;  %v699_v35 = vadd.s32 64, %v3384_v9 }
 0x1c1   :  { %3167 = vmatmul.mubr.msk.f32.gmra.mrb[38].mxu1 %vm1349_vm2, %v3419_v31  ;;  %2981 = vmatmul.mubr.msk.f32.gmra.mrb[40].mxu0 %vm1287_vm3, %v3419_v31  ;;  %vm1288_vm9 = vmor %vm538_vm7, %vm1163_vm4  ;;  %vm602_vm2 = vcmp.eq.s32.totalorder %v4426_v30, %v4324_v11  ;;  %vm540_vm4 = vcmp.eq.s32.totalorder %v4426_v30, %v5737_v36  ;;  %v5747_v36 = vld [vmem:[#allocation52_spill] sm:$0xff] }
 0x1c2   :  { %v1018_v51 = vpop.permute.xlu1 %1017  ;;  %v835_v39 = vpop.permute.xlu0 %834  ;;  %3169 = vmatprep.mubr.msk.f32.mxu1 %vm3417_vm0, %v5700_v28  ;;  %2983 = vmatprep.mubr.msk.f32.mxu0 %vm3417_vm0, %v5700_v28 }
 0x1c3   :  { %vm1225_vm6 = vcmp.eq.s32.totalorder %v4426_v30, %v1018_v51  ;;  %1113 = vperm.xlu1 %3347, %v757_v63   ;;  %930 = vperm.xlu0 %3346, %v696_v5   ;;  %vm1164_vm10 = vcmp.eq.s32.totalorder %v4426_v30, %v835_v39  ;;  %v5741_v63 = vld [vmem:[#allocation45_spill] sm:$0xff]  ;;  %v5742_v51 = vld [vmem:[#allocation44_spill] sm:$0xff] }
 0x1c4   :  { %vm1350_vm8 = vmor %vm600_vm5, %vm1225_vm6  ;;  %v3385_v39 = vld [vmem:[%s5537_s0 + $0x1d0] sm:$0xff] }
 0x1c5   :  { %3170 = vmatmul.mubr.msk.f32.gmra.mrb[40].mxu1 %vm1350_vm8, %v3419_v31  ;;  %2984 = vmatmul.mubr.msk.f32.gmra.mrb[42].mxu0 %vm1288_vm9, %v3419_v31  ;;  %vm1289_vm15 = vmor %vm539_vm13, %vm1164_vm10  ;;  %vm603_vm8 = vcmp.eq.s32.totalorder %v4426_v30, %v4332_v55  ;;  %vm541_vm10 = vcmp.eq.s32.totalorder %v4426_v30, %v5738_v34  ;;  %v5749_v34 = vld [vmem:[#allocation56_spill] sm:$0xff] }
 0x1c6   :  { %v1021_v12 = vpop.permute.xlu1 %1020  ;;  %v838_v45 = vpop.permute.xlu0 %837  ;;  %3172 = vmatprep.mubr.msk.f32.mxu1 %vm3417_vm0, %v5700_v28  ;;  %2986 = vmatprep.mubr.msk.f32.mxu0 %vm3417_vm0, %v5700_v28 }
 0x1c7   :  { %vm1226_vm12 = vcmp.eq.s32.totalorder %v4426_v30, %v1021_v12  ;;  %1116 = vperm.xlu1 %3347, %v758_v47   ;;  %933 = vperm.xlu0 %3346, %v697_v32   ;;  %vm1165_vm1 = vcmp.eq.s32.totalorder %v4426_v30, %v838_v45  ;;  %v5743_v47 = vld [vmem:[#allocation49_spill] sm:$0xff]  ;;  %v136_v45 = vld [vmem:[%s5537_s0 + $0x3c8] sm:$0xff] }
 0x1c8   :  { %vm1351_vm14 = vmor %vm601_vm11, %vm1226_vm12 }
 0x1c9   :  { %3173 = vmatmul.mubr.msk.f32.gmra.mrb[42].mxu1 %vm1351_vm14, %v3419_v31  ;;  %2987 = vmatmul.mubr.msk.f32.gmra.mrb[44].mxu0 %vm1289_vm15, %v3419_v31  ;;  %vm1290_vm6 = vmor %vm540_vm4, %vm1165_vm1  ;;  %vm604_vm14 = vcmp.eq.s32.totalorder %v4426_v30, %v4330_v14  ;;  %vm542_vm1 = vcmp.eq.s32.totalorder %v4426_v30, %v5739_v27  ;;  %v3388_v27 = vld [vmem:[%s5537_s0 + $0x1f0] sm:$0xff] }
 0x1ca   :  { %v1024_v56 = vpop.permute.xlu1 %1023  ;;  %v841_v8 = vpop.permute.xlu0 %840  ;;  %3175 = vmatprep.mubr.msk.f32.mxu1 %vm3417_vm0, %v5700_v28  ;;  %2989 = vmatprep.mubr.msk.f32.mxu0 %vm3417_vm0, %v5700_v28 }
 0x1cb   :  { %vm1227_vm3 = vcmp.eq.s32.totalorder %v4426_v30, %v1024_v56  ;;  %1119 = vperm.xlu1 %3347, %v759_v6   ;;  %1125 = vperm.xlu0 %3346, %v761_v40   ;;  %vm1166_vm7 = vcmp.eq.s32.totalorder %v4426_v30, %v841_v8  ;;  %v5746_v56 = vld [vmem:[#allocation53_spill] sm:$0xff] }
 0x1cc   :  { %vm1352_vm5 = vmor %vm602_vm2, %vm1227_vm3 }
 0x1cd   :  { %3176 = vmatmul.mubr.msk.f32.gmra.mrb[44].mxu1 %vm1352_vm5, %v3419_v31  ;;  %2990 = vmatmul.mubr.msk.f32.gmra.mrb[46].mxu0 %vm1290_vm6, %v3419_v31  ;;  %vm1291_vm12 = vmor %vm541_vm10, %vm1166_vm7  ;;  %vm605_vm5 = vcmp.eq.s32.totalorder %v4426_v30, %v4338_v60  ;;  %vm543_vm7 = vcmp.eq.s32.totalorder %v4426_v30, %v5741_v63 }
 0x1ce   :  { %v1027_v11 = vpop.permute.xlu1 %1026  ;;  %v844_v44 = vpop.permute.xlu0 %843  ;;  %3178 = vmatprep.mubr.msk.f32.mxu1 %vm3417_vm0, %v5700_v28  ;;  %2992 = vmatprep.mubr.msk.f32.mxu0 %vm3417_vm0, %v5700_v28 }
 0x1cf   :  { %vm1228_vm9 = vcmp.eq.s32.totalorder %v4426_v30, %v1027_v11  ;;  %936 = vperm.xlu1 %3347, %v698_v26   ;;  %1128 = vperm.xlu0 %3346, %v762_v42   ;;  %vm1167_vm13 = vcmp.eq.s32.totalorder %v4426_v30, %v844_v44  ;;  %v3386_v26 = vld [vmem:[%s5537_s0 + $0x1e0] sm:$0xff]  ;;  %v764_v11 = vadd.s32 64, %v4930_v1  ;;  %v5748_v44 = vld [vmem:[#allocation57_spill] sm:$0xff] }
 0x1d0   :  { %vm1353_vm11 = vmor %vm603_vm8, %vm1228_vm9  ;;  %v702_v42 = vadd.s32 64, %v3386_v26 }
 0x1d1   :  { %3179 = vmatmul.mubr.msk.f32.gmra.mrb[46].mxu1 %vm1353_vm11, %v3419_v31  ;;  %2993 = vmatmul.mubr.msk.f32.gmra.mrb[48].mxu0 %vm1291_vm12, %v3419_v31  ;;  %vm1292_vm3 = vmor %vm542_vm1, %vm1167_vm13  ;;  %vm606_vm11 = vcmp.eq.s32.totalorder %v4426_v30, %v4336_v13  ;;  %vm544_vm13 = vcmp.eq.s32.totalorder %v4426_v30, %v5742_v51  ;;  %v700_v13 = vadd.s32 64, %v3385_v39 }
 0x1d2   :  { %v1030_v55 = vpop.permute.xlu1 %1029  ;;  %v847_v29 = vpop.permute.xlu0 %846  ;;  %3181 = vmatprep.mubr.msk.f32.mxu1 %vm3417_vm0, %v5700_v28  ;;  %2995 = vmatprep.mubr.msk.f32.mxu0 %vm3417_vm0, %v5700_v28 }
 0x1d3   :  { %vm1229_vm15 = vcmp.eq.s32.totalorder %v4426_v30, %v1030_v55  ;;  %1122 = vperm.xlu1 %3347, %v760_v3   ;;  %945 = vperm.xlu0 %3346, %v701_v48   ;;  %vm1168_vm4 = vcmp.eq.s32.totalorder %v4426_v30, %v847_v29  ;;  %v3387_v48 = vld [vmem:[%s5537_s0 + $0x1e8] sm:$0xff] }
 0x1d4   :  { %vm1354_vm2 = vmor %vm604_vm14, %vm1229_vm15  ;;  %v703_v3 = vadd.s32 64, %v3387_v48 }
 0x1d5   :  { %3182 = vmatmul.mubr.msk.f32.gmra.mrb[48].mxu1 %vm1354_vm2, %v3419_v31  ;;  %2996 = vmatmul.mubr.msk.f32.gmra.mrb[50].mxu0 %vm1292_vm3, %v3419_v31  ;;  %vm1293_vm9 = vmor %vm543_vm7, %vm1168_vm4  ;;  %vm607_vm2 = vcmp.eq.s32.totalorder %v4426_v30, %v4344_v59  ;;  %vm545_vm4 = vcmp.eq.s32.totalorder %v4426_v30, %v5743_v47  ;;  %v138_v59 = vld [vmem:[%s5537_s0 + $0x3d8] sm:$0xff] }
 0x1d6   :  { %v1033_v5 = vpop.permute.xlu1 %1032  ;;  %v850_v14 = vpop.permute.xlu0 %849  ;;  %3184 = vmatprep.mubr.msk.f32.mxu1 %vm3417_vm0, %v5700_v28  ;;  %2998 = vmatprep.mubr.msk.f32.mxu0 %vm3417_vm0, %v5700_v28  ;;  %v765_v6 = vadd.s32 64, %v138_v59 }
 0x1d7   :  { %vm1230_vm6 = vcmp.eq.s32.totalorder %v4426_v30, %v1033_v5  ;;  %939 = vperm.xlu1 %3347, %v699_v35   ;;  %3351 = vset.pattern.permute.xlu0 %v5740_v7  ;;  %vm1169_vm10 = vcmp.eq.s32.totalorder %v4426_v30, %v850_v14  ;;  %v704_v5 = vadd.s32 64, %v3388_v27  ;;  %v5774_v27 = vld [vmem:[#allocation43_spill] sm:$0xff] }
 0x1d8   :  { %vm1355_vm8 = vmor %vm605_vm5, %vm1230_vm6  ;;  %497 = vperm.xlu0 %3351, %v133_v52  }
 0x1d9   :  { %3185 = vmatmul.mubr.msk.f32.gmra.mrb[50].mxu1 %vm1355_vm8, %v3419_v31  ;;  %2999 = vmatmul.mubr.msk.f32.gmra.mrb[52].mxu0 %vm1293_vm9, %v3419_v31  ;;  %vm1294_vm15 = vmor %vm544_vm13, %vm1169_vm10  ;;  %vm608_vm8 = vcmp.eq.s32.totalorder %v4426_v30, %v4342_v16  ;;  %vm546_vm10 = vcmp.eq.s32.totalorder %v4426_v30, %v5745_v41 }
 0x1da   :  { %v1036_v60 = vpop.permute.xlu1 %1035  ;;  %v853_v4 = vpop.permute.xlu0 %852  ;;  %3187 = vmatprep.mubr.msk.f32.mxu1 %vm3417_vm0, %v5700_v28  ;;  %3001 = vmatprep.mubr.msk.f32.mxu0 %vm3417_vm0, %v5700_v28 }
 0x1db   :  { %vm1231_vm12 = vcmp.eq.s32.totalorder %v4426_v30, %v1036_v60  ;;  %3348 = vset.pattern.permute.xlu1 %v5740_v7  ;;  %vm1170_vm1 = vcmp.eq.s32.totalorder %v4426_v30, %v853_v4  ;;  %v5753_v60 = vld [vmem:[#allocation64_spill] sm:$0xff] }
 0x1dc   :  { %vm1356_vm14 = vmor %vm606_vm11, %vm1231_vm12  ;;  %503 = vperm.xlu1 %3348, %v4836_v49   ;;  %500 = vperm.xlu0 %3351, %v4813_v0   ;;  %v763_v49 = vadd.s32 64, %v136_v45 }
 0x1dd   :  { %3188 = vmatmul.mubr.msk.f32.gmra.mrb[52].mxu1 %vm1356_vm14, %v3419_v31  ;;  %3002 = vmatmul.mubr.msk.f32.gmra.mrb[54].mxu0 %vm1294_vm15, %v3419_v31  ;;  %vm1295_vm6 = vmor %vm545_vm4, %vm1170_vm1  ;;  %vm609_vm14 = vcmp.eq.s32.totalorder %v4426_v30, %v4350_v2  ;;  %vm547_vm1 = vcmp.eq.s32.totalorder %v4426_v30, %v5746_v56  ;;  %v766_v2 = vadd.s32 64, %v4970_v10 }
 0x1de   :  { %v1039_v32 = vpop.permute.xlu1 %1038  ;;  %v856_v33 = vpop.permute.xlu0 %855  ;;  %3190 = vmatprep.mubr.msk.f32.mxu1 %vm3417_vm0, %v5700_v28  ;;  %3004 = vmatprep.mubr.msk.f32.mxu0 %vm3417_vm0, %v5700_v28 }
 0x1df   :  { %vm1232_vm3 = vcmp.eq.s32.totalorder %v4426_v30, %v1039_v32  ;;  %vm1171_vm7 = vcmp.eq.s32.totalorder %v4426_v30, %v856_v33 }
 0x1e0   :  { %vm1357_vm5 = vmor %vm607_vm2, %vm1232_vm3  ;;  %3349 = vset.pattern.permute.xlu1 %v5744_v43  ;;  %509 = vperm.xlu0 %3351, %v4930_v1  }
 0x1e1   :  { %942 = vperm.xlu1 %3349, %v700_v13   ;;  %3191 = vmatmul.mubr.msk.f32.gmra.mrb[54].mxu1 %vm1357_vm5, %v3419_v31  ;;  %vm1296_vm12 = vmor %vm546_vm10, %vm1171_vm7  ;;  %vm610_vm5 = vcmp.eq.s32.totalorder %v4426_v30, %v4348_v15  ;;  %vm548_vm7 = vcmp.eq.s32.totalorder %v4426_v30, %v5747_v36  ;;  %v5766_v36 = vld [vmem:[#allocation39_spill] sm:$0xff] }
 0x1e2   :  { %3005 = vmatmul.mubr.msk.f32.gmra.mrb[56].mxu0 %vm1295_vm6, %v3419_v31  ;;  %v1042_v0 = vpop.permute.xlu1 %1041  ;;  %v859_v12 = vpop.permute.xlu0 %858  ;;  %3193 = vmatprep.mubr.msk.f32.mxu1 %vm3417_vm0, %v5700_v28 }
 0x1e3   :  { %vm1233_vm9 = vcmp.eq.s32.totalorder %v4426_v30, %v1042_v0  ;;  %3007 = vmatprep.mubr.msk.f32.mxu0 %vm3417_vm0, %v5700_v28  ;;  %vm1172_vm13 = vcmp.eq.s32.totalorder %v4426_v30, %v859_v12 }
 0x1e4   :  { %vm1358_vm11 = vmor %vm608_vm8, %vm1233_vm9  ;;  %512 = vperm.xlu0 %3351, %v138_v59  }
 0x1e5   :  { %3350 = vset.pattern.permute.xlu1 %v5740_v7  ;;  %3194 = vmatmul.mubr.msk.f32.gmra.mrb[56].mxu1 %vm1358_vm11, %v3419_v31  ;;  %vm1297_vm3 = vmor %vm547_vm1, %vm1172_vm13  ;;  %vm611_vm11 = vcmp.eq.s32.totalorder %v4426_v30, %v4356_v37  ;;  %vm549_vm13 = vcmp.eq.s32.totalorder %v4426_v30, %v5748_v44  ;;  %v5768_v44 = vld [vmem:[#allocation5_spill] sm:$0xff] }
 0x1e6   :  { %3008 = vmatmul.mubr.msk.f32.gmra.mrb[58].mxu0 %vm1296_vm12, %v3419_v31  ;;  %506 = vperm.xlu1 %3350, %v136_v45   ;;  %v1045_v16 = vpop.permute.xlu1 %1044  ;;  %v862_v40 = vpop.permute.xlu0 %861 }
 0x1e7   :  { %vm1234_vm15 = vcmp.eq.s32.totalorder %v4426_v30, %v1045_v16  ;;  %3196 = vmatprep.mubr.msk.f32.mxu1 %vm3417_vm0, %v5700_v28  ;;  %3010 = vmatprep.mubr.msk.f32.mxu0 %vm3417_vm0, %v5700_v28  ;;  %vm1173_vm4 = vcmp.eq.s32.totalorder %v4426_v30, %v862_v40 }
 0x1e8   :  { %vm1359_vm2 = vmor %vm609_vm14, %vm1234_vm15  ;;  %3353 = vset.pattern.permute.xlu0 %v5744_v43 }
 0x1e9   :  { %3197 = vmatmul.mubr.msk.f32.gmra.mrb[58].mxu1 %vm1359_vm2, %v3419_v31  ;;  %1137 = vperm.xlu0 %3353, %v765_v6   ;;  %vm1298_vm9 = vmor %vm548_vm7, %vm1173_vm4  ;;  %vm612_vm2 = vcmp.eq.s32.totalorder %v4426_v30, %v4354_v18  ;;  %vm550_vm4 = vcmp.eq.s32.totalorder %v4426_v30, %v5749_v34  ;;  %v5750_v18 = vld [vmem:[#allocation61_spill] sm:$0xff]  ;;  %v5771_v34 = vld [vmem:[#allocation87_spill] sm:$0xff] }
 0x1ea   :  { %3011 = vmatmul.mubr.msk.f32.gmra.mrb[60].mxu0 %vm1297_vm3, %v3419_v31  ;;  %3352 = vset.pattern.permute.xlu1 %v5744_v43  ;;  %v1048_v8 = vpop.permute.xlu1 %1047  ;;  %v865_v46 = vpop.permute.xlu0 %864 }
 0x1eb   :  { %vm1235_vm6 = vcmp.eq.s32.totalorder %v4426_v30, %v1048_v8  ;;  %1131 = vperm.xlu1 %3352, %v763_v49   ;;  %3013 = vmatprep.mubr.msk.f32.mxu0 %vm3417_vm0, %v5700_v28  ;;  %vm1174_vm10 = vcmp.eq.s32.totalorder %v4426_v30, %v865_v46  ;;  %v5765_v46 = vld [vmem:[#allocation86_spill] sm:$0xff] }
 0x1ec   :  { %vm1360_vm8 = vmor %vm610_vm5, %vm1235_vm6  ;;  %3199 = vmatprep.mubr.msk.f32.mxu1 %vm3417_vm0, %v5700_v28 }
 0x1ed   :  { %3200 = vmatmul.mubr.msk.f32.gmra.mrb[60].mxu1 %vm1360_vm8, %v3419_v31  ;;  %1140 = vperm.xlu0 %3353, %v766_v2   ;;  %vm1299_vm15 = vmor %vm549_vm13, %vm1174_vm10  ;;  %vm613_vm8 = vcmp.eq.s32.totalorder %v4426_v30, %v4362_v62  ;;  %vm551_vm10 = vcmp.eq.s32.totalorder %v4426_v30, %v5750_v18  ;;  %v5751_v62 = vld [vmem:[#allocation60_spill] sm:$0xff] }
 0x1ee   :  { %3014 = vmatmul.mubr.msk.f32.gmra.mrb[62].mxu0 %vm1298_vm9, %v3419_v31  ;;  %v1051_v15 = vpop.permute.xlu1 %1050  ;;  %v868_v52 = vpop.permute.xlu0 %867  ;;  %3202 = vmatprep.mubr.msk.f32.mxu1 %vm3417_vm0, %v5700_v28  ;;  %v5772_v18 = vld [vmem:[#allocation8_spill] sm:$0xff] }
 0x1ef   :  { %vm1236_vm12 = vcmp.eq.s32.totalorder %v4426_v30, %v1051_v15  ;;  %948 = vperm.xlu1 %3352, %v702_v42   ;;  %3016 = vmatprep.mubr.msk.f32.mxu0 %vm3417_vm0, %v5700_v28  ;;  %vm1175_vm1 = vcmp.eq.s32.totalorder %v4426_v30, %v868_v52  ;;  %v5767_v15 = vld [vmem:[#allocation85_spill] sm:$0xff] }
 0x1f0   :  { %vm1361_vm14 = vmor %vm611_vm11, %vm1236_vm12 }
 0x1f1   :  { %3203 = vmatmul.mubr.msk.f32.gmra.mrb[62].mxu1 %vm1361_vm14, %v3419_v31  ;;  %vm1300_vm6 = vmor %vm550_vm4, %vm1175_vm1  ;;  %vm614_vm14 = vcmp.eq.s32.totalorder %v4426_v30, %v4360_v17  ;;  %vm552_vm1 = vcmp.eq.s32.totalorder %v4426_v30, %v5751_v62 }
 0x1f2   :  { %3017 = vmatmul.mubr.msk.f32.gmra.mrb[64].mxu0 %vm1299_vm15, %v3419_v31  ;;  %v1054_v37 = vpop.permute.xlu1 %1053  ;;  %v871_v38 = vpop.permute.xlu0 %870  ;;  %3205 = vmatprep.mubr.msk.f32.mxu1 %vm3417_vm0, %v5700_v28 }
 0x1f3   :  { %vm1237_vm3 = vcmp.eq.s32.totalorder %v4426_v30, %v1054_v37  ;;  %1134 = vperm.xlu1 %3352, %v764_v11   ;;  %3019 = vmatprep.mubr.msk.f32.mxu0 %vm3417_vm0, %v5700_v28  ;;  %vm1176_vm7 = vcmp.eq.s32.totalorder %v4426_v30, %v871_v38  ;;  %v5769_v37 = vld [vmem:[#allocation88_spill] sm:$0xff] }
 0x1f4   :  { %vm1362_vm5 = vmor %vm612_vm2, %vm1237_vm3 }
 0x1f5   :  { %3206 = vmatmul.mubr.msk.f32.gmra.mrb[64].mxu1 %vm1362_vm5, %v3419_v31  ;;  %vm1301_vm12 = vmor %vm551_vm10, %vm1176_vm7  ;;  %vm615_vm5 = vcmp.eq.s32.totalorder %v4426_v30, %v4368_v61 }
 0x1f6   :  { %3020 = vmatmul.mubr.msk.f32.gmra.mrb[66].mxu0 %vm1300_vm6, %v3419_v31  ;;  %v1057_v55 = vpop.permute.xlu1 %1056  ;;  %v874_v29 = vpop.permute.xlu0 %873  ;;  %3208 = vmatprep.mubr.msk.f32.mxu1 %vm3417_vm0, %v5700_v28 }
 0x1f7   :  { %vm1238_vm9 = vcmp.eq.s32.totalorder %v4426_v30, %v1057_v55  ;;  %951 = vperm.xlu1 %3352, %v703_v3   ;;  %3022 = vmatprep.mubr.msk.f32.mxu0 %vm3417_vm0, %v5700_v28  ;;  %vm1177_vm13 = vcmp.eq.s32.totalorder %v4426_v30, %v874_v29  ;;  %v5770_v3 = vld [vmem:[#allocation38_spill] sm:$0xff] }
 0x1f8   :  { %vm1363_vm11 = vmor %vm613_vm8, %vm1238_vm9 }
 0x1f9   :  { %3209 = vmatmul.mubr.msk.f32.gmra.mrb[66].mxu1 %vm1363_vm11, %v3419_v31  ;;  %vm1302_vm3 = vmor %vm552_vm1, %vm1177_vm13  ;;  %vm616_vm11 = vcmp.eq.s32.totalorder %v4426_v30, %v4366_v20  ;;  %vm554_vm13 = vcmp.eq.s32.totalorder %v4426_v30, %v5753_v60  ;;  %v5754_v20 = vld [vmem:[#allocation69_spill] sm:$0xff] }
 0x1fa   :  { %3023 = vmatmul.mubr.msk.f32.gmra.mrb[68].mxu0 %vm1301_vm12, %v3419_v31  ;;  %v1060_v9 = vpop.permute.xlu1 %1059  ;;  %v877_v35 = vpop.permute.xlu0 %876  ;;  %3211 = vmatprep.mubr.msk.f32.mxu1 %vm3417_vm0, %v5700_v28 }
 0x1fb   :  { %vm1239_vm15 = vcmp.eq.s32.totalorder %v4426_v30, %v1060_v9  ;;  %3354 = vset.pattern.permute.xlu1 %v5740_v7  ;;  %3025 = vmatprep.mubr.msk.f32.mxu0 %vm3417_vm0, %v5700_v28  ;;  %vm1178_vm4 = vcmp.eq.s32.totalorder %v4426_v30, %v877_v35  ;;  %v5752_v7 = vld [vmem:[#allocation65_spill] sm:$0xff]  ;;  %v5773_v9 = vld [vmem:[#allocation90_spill] sm:$0xff] }
 0x1fc   :  { %vm1364_vm2 = vmor %vm614_vm14, %vm1239_vm15  ;;  %515 = vperm.xlu1 %3354, %v4970_v10   ;;  %vm553_vm7 = vcmp.eq.s32.totalorder %v4426_v30, %v5752_v7 }
 0x1fd   :  { %3212 = vmatmul.mubr.msk.f32.gmra.mrb[68].mxu1 %vm1364_vm2, %v3419_v31  ;;  %vm1303_vm9 = vmor %vm553_vm7, %vm1178_vm4  ;;  %vm617_vm2 = vcmp.eq.s32.totalorder %v4426_v30, %v4374_v58  ;;  %vm555_vm4 = vcmp.eq.s32.totalorder %v4426_v30, %v5754_v20  ;;  %v5755_v58 = vld [vmem:[#allocation68_spill] sm:$0xff] }
 0x1fe   :  { %3026 = vmatmul.mubr.msk.f32.gmra.mrb[70].mxu0 %vm1302_vm3, %v3419_v31  ;;  %v1063_v17 = vpop.permute.xlu1 %1062  ;;  %v880_v14 = vpop.permute.xlu0 %879  ;;  %3214 = vmatprep.mubr.msk.f32.mxu1 %vm3417_vm0, %v5700_v28 }
 0x1ff   :  { %vm1240_vm6 = vcmp.eq.s32.totalorder %v4426_v30, %v1063_v17  ;;  %3028 = vmatprep.mubr.msk.f32.mxu0 %vm3417_vm0, %v5700_v28  ;;  %vm1179_vm10 = vcmp.eq.s32.totalorder %v4426_v30, %v880_v14  ;;  %v5775_v17 = vld [vmem:[#allocation89_spill] sm:$0xff] }
 0x200   :  { %vm1365_vm8 = vmor %vm615_vm5, %vm1240_vm6  ;;  %3355 = vset.pattern.permute.xlu1 %v5744_v43 }
 0x201   :  { %954 = vperm.xlu1 %3355, %v704_v5   ;;  %3215 = vmatmul.mubr.msk.f32.gmra.mrb[70].mxu1 %vm1365_vm8, %v3419_v31  ;;  %vm1304_vm15 = vmor %vm554_vm13, %vm1179_vm10  ;;  %vm618_vm8 = vcmp.eq.s32.totalorder %v4426_v30, %v4372_v19  ;;  %vm556_vm10 = vcmp.eq.s32.totalorder %v4426_v30, %v5755_v58  ;;  %v5756_v19 = vld [vmem:[#allocation73_spill] sm:$0xff]  ;;  %v5272_v5 = vld [vmem:[%s5539_s2] ss:$0 sm:$0xff] }
 0x202   :  { %3029 = vmatmul.mubr.msk.f32.gmra.mrb[72].mxu0 %vm1303_vm9, %v3419_v31  ;;  %v1066_v61 = vpop.permute.xlu1 %1065  ;;  %v883_v63 = vpop.permute.xlu0 %882  ;;  %3217 = vmatprep.mubr.msk.f32.mxu1 %vm3417_vm0, %v5700_v28 }
 0x203   :  { %vm1241_vm12 = vcmp.eq.s32.totalorder %v4426_v30, %v1066_v61  ;;  %3031 = vmatprep.mubr.msk.f32.mxu0 %vm3417_vm0, %v5700_v28  ;;  %vm1180_vm1 = vcmp.eq.s32.totalorder %v4426_v30, %v883_v63 }
 0x204   :  { %vm1366_vm14 = vmor %vm616_vm11, %vm1241_vm12 }
 0x205   :  { %3218 = vmatmul.mubr.msk.f32.gmra.mrb[72].mxu1 %vm1366_vm14, %v3419_v31  ;;  %vm1305_vm6 = vmor %vm555_vm4, %vm1180_vm1  ;;  %vm619_vm14 = vcmp.eq.s32.totalorder %v4426_v30, %v4380_v57  ;;  %vm557_vm1 = vcmp.eq.s32.totalorder %v4426_v30, %v5756_v19  ;;  %v5757_v57 = vld [vmem:[#allocation72_spill] sm:$0xff] }
 0x206   :  { %3032 = vmatmul.mubr.msk.f32.gmra.mrb[74].mxu0 %vm1304_vm15, %v3419_v31  ;;  %v1069_v4 = vpop.permute.xlu1 %1068  ;;  %v886_v51 = vpop.permute.xlu0 %885  ;;  %3220 = vmatprep.mubr.msk.f32.mxu1 %vm3417_vm0, %v5700_v28 }
 0x207   :  { %vm1242_vm3 = vcmp.eq.s32.totalorder %v4426_v30, %v1069_v4  ;;  %3034 = vmatprep.mubr.msk.f32.mxu0 %vm3417_vm0, %v5700_v28  ;;  %vm1181_vm7 = vcmp.eq.s32.totalorder %v4426_v30, %v886_v51  ;;  %v5776_v4 = vld [vmem:[#allocation92_spill] sm:$0xff] }
 0x208   :  { %vm1367_vm5 = vmor %vm617_vm2, %vm1242_vm3 }
 0x209   :  { %3221 = vmatmul.mubr.msk.f32.gmra.mrb[74].mxu1 %vm1367_vm5, %v3419_v31  ;;  %vm1306_vm12 = vmor %vm556_vm10, %vm1181_vm7  ;;  %vm620_vm5 = vcmp.eq.s32.totalorder %v4426_v30, %v4378_v22  ;;  %vm558_vm7 = vcmp.eq.s32.totalorder %v4426_v30, %v5757_v57  ;;  %v5758_v22 = vld [vmem:[#allocation77_spill] sm:$0xff] }
 0x20a   :  { %3035 = vmatmul.mubr.msk.f32.gmra.mrb[76].mxu0 %vm1305_vm6, %v3419_v31  ;;  %v1072_v39 = vpop.permute.xlu1 %1071  ;;  %v889_v13 = vpop.permute.xlu0 %888  ;;  %3223 = vmatprep.mubr.msk.f32.mxu1 %vm3417_vm0, %v5700_v28 }
 0x20b   :  { %vm1243_vm9 = vcmp.eq.s32.totalorder %v4426_v30, %v1072_v39  ;;  %3037 = vmatprep.mubr.msk.f32.mxu0 %vm3417_vm0, %v5700_v28  ;;  %vm1182_vm13 = vcmp.eq.s32.totalorder %v4426_v30, %v889_v13 }
 0x20c   :  { %vm1368_vm11 = vmor %vm618_vm8, %vm1243_vm9 }
 0x20d   :  { %3224 = vmatmul.mubr.msk.f32.gmra.mrb[76].mxu1 %vm1368_vm11, %v3419_v31  ;;  %vm1307_vm3 = vmor %vm557_vm1, %vm1182_vm13  ;;  %vm621_vm11 = vcmp.eq.s32.totalorder %v4426_v30, %v4386_v54  ;;  %vm559_vm13 = vcmp.eq.s32.totalorder %v4426_v30, %v5758_v22  ;;  %v5759_v54 = vld [vmem:[#allocation76_spill] sm:$0xff] }
 0x20e   :  { %3038 = vmatmul.mubr.msk.f32.gmra.mrb[78].mxu0 %vm1306_vm12, %v3419_v31  ;;  %v1075_v1 = vpop.permute.xlu1 %1074  ;;  %v892_v32 = vpop.permute.xlu0 %891  ;;  %3226 = vmatprep.mubr.msk.f32.mxu1 %vm3417_vm0, %v5700_v28 }
 0x20f   :  { %vm1244_vm15 = vcmp.eq.s32.totalorder %v4426_v30, %v1075_v1  ;;  %3040 = vmatprep.mubr.msk.f32.mxu0 %vm3417_vm0, %v5700_v28  ;;  %vm1183_vm4 = vcmp.eq.s32.totalorder %v4426_v30, %v892_v32  ;;  %v5777_v32 = vld [vmem:[#allocation42_spill] sm:$0xff] }
 0x210   :  { %vm1369_vm2 = vmor %vm619_vm14, %vm1244_vm15 }
 0x211   :  { %3227 = vmatmul.mubr.msk.f32.gmra.mrb[78].mxu1 %vm1369_vm2, %v3419_v31  ;;  %vm1308_vm9 = vmor %vm558_vm7, %vm1183_vm4  ;;  %vm622_vm2 = vcmp.eq.s32.totalorder %v4426_v30, %v4384_v21  ;;  %vm560_vm4 = vcmp.eq.s32.totalorder %v4426_v30, %v5759_v54  ;;  %v5760_v21 = vld [vmem:[#allocation81_spill] sm:$0xff]  ;;  %v5779_v54 = vld [vmem:[#allocation94_spill] sm:$0xff] }
 0x212   :  { %3041 = vmatmul.mubr.msk.f32.gmra.mrb[80].mxu0 %vm1307_vm3, %v3419_v31  ;;  %v1078_v33 = vpop.permute.xlu1 %1077  ;;  %v895_v47 = vpop.permute.xlu0 %894  ;;  %3229 = vmatprep.mubr.msk.f32.mxu1 %vm3417_vm0, %v5700_v28 }
 0x213   :  { %vm1245_vm6 = vcmp.eq.s32.totalorder %v4426_v30, %v1078_v33  ;;  %3043 = vmatprep.mubr.msk.f32.mxu0 %vm3417_vm0, %v5700_v28  ;;  %vm1184_vm10 = vcmp.eq.s32.totalorder %v4426_v30, %v895_v47  ;;  %v5778_v33 = vld [vmem:[#allocation91_spill] sm:$0xff] }
 0x214   :  { %vm1370_vm8 = vmor %vm620_vm5, %vm1245_vm6 }
 0x215   :  { %3230 = vmatmul.mubr.msk.f32.gmra.mrb[80].mxu1 %vm1370_vm8, %v3419_v31  ;;  %vm1309_vm15 = vmor %vm559_vm13, %vm1184_vm10  ;;  %vm623_vm8 = vcmp.eq.s32.totalorder %v4426_v30, %v4392_v53  ;;  %vm561_vm10 = vcmp.eq.s32.totalorder %v4426_v30, %v5760_v21  ;;  %v5761_v53 = vld [vmem:[#allocation80_spill] sm:$0xff] }
 0x216   :  { %3044 = vmatmul.mubr.msk.f32.gmra.mrb[82].mxu0 %vm1308_vm9, %v3419_v31  ;;  %v1081_v43 = vpop.permute.xlu1 %1080  ;;  %v898_v59 = vpop.permute.xlu0 %897  ;;  %3232 = vmatprep.mubr.msk.f32.mxu1 %vm3417_vm0, %v5700_v28 }
 0x217   :  { %vm1246_vm12 = vcmp.eq.s32.totalorder %v4426_v30, %v1081_v43  ;;  %3046 = vmatprep.mubr.msk.f32.mxu0 %vm3417_vm0, %v5700_v28  ;;  %vm1185_vm1 = vcmp.eq.s32.totalorder %v4426_v30, %v898_v59 }
 0x218   :  { %vm1371_vm14 = vmor %vm621_vm11, %vm1246_vm12 }
 0x219   :  { %3233 = vmatmul.mubr.msk.f32.gmra.mrb[82].mxu1 %vm1371_vm14, %v3419_v31  ;;  %vm1310_vm6 = vmor %vm560_vm4, %vm1185_vm1  ;;  %vm624_vm14 = vcmp.eq.s32.totalorder %v4426_v30, %v4390_v24  ;;  %vm562_vm1 = vcmp.eq.s32.totalorder %v4426_v30, %v5761_v53  ;;  %v5762_v24 = vld [vmem:[#allocation84_spill] sm:$0xff] }
 0x21a   :  { %3047 = vmatmul.mubr.msk.f32.gmra.mrb[84].mxu0 %vm1309_vm15, %v3419_v31  ;;  %v1084_v0 = vpop.permute.xlu1 %1083  ;;  %v901_v12 = vpop.permute.xlu0 %900  ;;  %3235 = vmatprep.mubr.msk.f32.mxu1 %vm3417_vm0, %v5700_v28 }
 0x21b   :  { %vm1247_vm3 = vcmp.eq.s32.totalorder %v4426_v30, %v1084_v0  ;;  %3049 = vmatprep.mubr.msk.f32.mxu0 %vm3417_vm0, %v5700_v28  ;;  %vm1186_vm7 = vcmp.eq.s32.totalorder %v4426_v30, %v901_v12 }
 0x21c   :  { %vm1372_vm5 = vmor %vm622_vm2, %vm1247_vm3 }
 0x21d   :  { %3236 = vmatmul.mubr.msk.f32.gmra.mrb[84].mxu1 %vm1372_vm5, %v3419_v31  ;;  %vm1311_vm12 = vmor %vm561_vm10, %vm1186_vm7  ;;  %vm625_vm5 = vcmp.eq.s32.totalorder %v4426_v30, %v4398_v50  ;;  %vm563_vm7 = vcmp.eq.s32.totalorder %v4426_v30, %v5762_v24  ;;  %v5763_v50 = vld [vmem:[#allocation83_spill] sm:$0xff] }
 0x21e   :  { %3050 = vmatmul.mubr.msk.f32.gmra.mrb[86].mxu0 %vm1310_vm6, %v3419_v31  ;;  %v1087_v45 = vpop.permute.xlu1 %1086  ;;  %v904_v41 = vpop.permute.xlu0 %903  ;;  %3238 = vmatprep.mubr.msk.f32.mxu1 %vm3417_vm0, %v5700_v28 }
 0x21f   :  { %vm1248_vm9 = vcmp.eq.s32.totalorder %v4426_v30, %v1087_v45  ;;  %3052 = vmatprep.mubr.msk.f32.mxu0 %vm3417_vm0, %v5700_v28  ;;  %vm1187_vm13 = vcmp.eq.s32.totalorder %v4426_v30, %v904_v41 }
 0x220   :  { %vm1373_vm11 = vmor %vm623_vm8, %vm1248_vm9 }
 0x221   :  { %3239 = vmatmul.mubr.msk.f32.gmra.mrb[86].mxu1 %vm1373_vm11, %v3419_v31  ;;  %vm1312_vm3 = vmor %vm562_vm1, %vm1187_vm13  ;;  %vm626_vm11 = vcmp.eq.s32.totalorder %v4426_v30, %v4396_v23  ;;  %vm564_vm13 = vcmp.eq.s32.totalorder %v4426_v30, %v5763_v50  ;;  %v5764_v23 = vld [vmem:[#allocation6_spill] sm:$0xff] }
 0x222   :  { %3053 = vmatmul.mubr.msk.f32.gmra.mrb[88].mxu0 %vm1311_vm12, %v3419_v31  ;;  %v1090_v6 = vpop.permute.xlu1 %1089  ;;  %v907_v16 = vpop.permute.xlu0 %906  ;;  %3241 = vmatprep.mubr.msk.f32.mxu1 %vm3417_vm0, %v5700_v28 }
 0x223   :  { %vm1249_vm15 = vcmp.eq.s32.totalorder %v4426_v30, %v1090_v6  ;;  %3055 = vmatprep.mubr.msk.f32.mxu0 %vm3417_vm0, %v5700_v28  ;;  %vm1188_vm4 = vcmp.eq.s32.totalorder %v4426_v30, %v907_v16 }
 0x224   :  { %vm1374_vm2 = vmor %vm624_vm14, %vm1249_vm15 }
 0x225   :  { %3242 = vmatmul.mubr.msk.f32.gmra.mrb[88].mxu1 %vm1374_vm2, %v3419_v31  ;;  %vm1313_vm9 = vmor %vm563_vm7, %vm1188_vm4  ;;  %vm627_vm2 = vcmp.eq.s32.totalorder %v4426_v30, %v5764_v23  ;;  %vm565_vm4 = vcmp.eq.s32.totalorder %v4426_v30, %v5765_v46 }
 0x226   :  { %3056 = vmatmul.mubr.msk.f32.gmra.mrb[90].mxu0 %vm1312_vm3, %v3419_v31  ;;  %v1093_v40 = vpop.permute.xlu1 %1092  ;;  %v910_v10 = vpop.permute.xlu0 %909  ;;  %3244 = vmatprep.mubr.msk.f32.mxu1 %vm3417_vm0, %v5700_v28 }
 0x227   :  { %vm1250_vm6 = vcmp.eq.s32.totalorder %v4426_v30, %v1093_v40  ;;  %3058 = vmatprep.mubr.msk.f32.mxu0 %vm3417_vm0, %v5700_v28  ;;  %vm1189_vm10 = vcmp.eq.s32.totalorder %v4426_v30, %v910_v10 }
 0x228   :  { %vm1375_vm8 = vmor %vm625_vm5, %vm1250_vm6 }
 0x229   :  { %3245 = vmatmul.mubr.msk.f32.gmra.mrb[90].mxu1 %vm1375_vm8, %v3419_v31  ;;  %vm1314_vm15 = vmor %vm564_vm13, %vm1189_vm10  ;;  %vm628_vm8 = vcmp.eq.s32.totalorder %v4426_v30, %v5766_v36  ;;  %vm566_vm10 = vcmp.eq.s32.totalorder %v4426_v30, %v5767_v15 }
 0x22a   :  { %3059 = vmatmul.mubr.msk.f32.gmra.mrb[92].mxu0 %vm1313_vm9, %v3419_v31  ;;  %v1096_v49 = vpop.permute.xlu1 %1095  ;;  %v913_v56 = vpop.permute.xlu0 %912  ;;  %3247 = vmatprep.mubr.msk.f32.mxu1 %vm3417_vm0, %v5700_v28 }
 0x22b   :  { %vm1251_vm12 = vcmp.eq.s32.totalorder %v4426_v30, %v1096_v49  ;;  %3061 = vmatprep.mubr.msk.f32.mxu0 %vm3417_vm0, %v5700_v28  ;;  %vm1190_vm1 = vcmp.eq.s32.totalorder %v4426_v30, %v913_v56 }
 0x22c   :  { %vm1376_vm14 = vmor %vm626_vm11, %vm1251_vm12 }
 0x22d   :  { %3248 = vmatmul.mubr.msk.f32.gmra.mrb[92].mxu1 %vm1376_vm14, %v3419_v31  ;;  %vm1315_vm6 = vmor %vm565_vm4, %vm1190_vm1  ;;  %vm629_vm14 = vcmp.eq.s32.totalorder %v4426_v30, %v5768_v44  ;;  %vm567_vm1 = vcmp.eq.s32.totalorder %v4426_v30, %v5769_v37 }
 0x22e   :  { %3062 = vmatmul.mubr.msk.f32.gmra.mrb[94].mxu0 %vm1314_vm15, %v3419_v31  ;;  %v1099_v2 = vpop.permute.xlu1 %1098  ;;  %v916_v8 = vpop.permute.xlu0 %915  ;;  %3250 = vmatprep.mubr.msk.f32.mxu1 %vm3417_vm0, %v5700_v28 }
 0x22f   :  { %vm1252_vm3 = vcmp.eq.s32.totalorder %v4426_v30, %v1099_v2  ;;  %3064 = vmatprep.mubr.msk.f32.mxu0 %vm3417_vm0, %v5700_v28  ;;  %vm1191_vm7 = vcmp.eq.s32.totalorder %v4426_v30, %v916_v8 }
 0x230   :  { %vm1377_vm5 = vmor %vm627_vm2, %vm1252_vm3 }
 0x231   :  { %3251 = vmatmul.mubr.msk.f32.gmra.mrb[94].mxu1 %vm1377_vm5, %v3419_v31  ;;  %vm1316_vm12 = vmor %vm566_vm10, %vm1191_vm7  ;;  %vm630_vm5 = vcmp.eq.s32.totalorder %v4426_v30, %v5770_v3  ;;  %vm568_vm7 = vcmp.eq.s32.totalorder %v4426_v30, %v5771_v34 }
 0x232   :  { %3065 = vmatmul.mubr.msk.f32.gmra.mrb[96].mxu0 %vm1315_vm6, %v3419_v31  ;;  %v1102_v26 = vpop.permute.xlu1 %1101  ;;  %v919_v42 = vpop.permute.xlu0 %918  ;;  %3253 = vmatprep.mubr.msk.f32.mxu1 %vm3417_vm0, %v5700_v28 }
 0x233   :  { %vm1253_vm9 = vcmp.eq.s32.totalorder %v4426_v30, %v1102_v26  ;;  %3067 = vmatprep.mubr.msk.f32.mxu0 %vm3417_vm0, %v5700_v28  ;;  %vm1192_vm13 = vcmp.eq.s32.totalorder %v4426_v30, %v919_v42  ;;  %v5780_v26 = vld [vmem:[#allocation93_spill] sm:$0xff] }
 0x234   :  { %vm1378_vm11 = vmor %vm628_vm8, %vm1253_vm9 }
 0x235   :  { %3254 = vmatmul.mubr.msk.f32.gmra.mrb[96].mxu1 %vm1378_vm11, %v3419_v31  ;;  %vm1317_vm3 = vmor %vm567_vm1, %vm1192_vm13  ;;  %vm631_vm11 = vcmp.eq.s32.totalorder %v4426_v30, %v5772_v18  ;;  %vm569_vm13 = vcmp.eq.s32.totalorder %v4426_v30, %v5773_v9 }
 0x236   :  { %3068 = vmatmul.mubr.msk.f32.gmra.mrb[98].mxu0 %vm1316_vm12, %v3419_v31  ;;  %v1105_v52 = vpop.permute.xlu1 %1104  ;;  %v922_v11 = vpop.permute.xlu0 %921  ;;  %3256 = vmatprep.mubr.msk.f32.mxu1 %vm3417_vm0, %v5700_v28 }
 0x237   :  { %vm1254_vm15 = vcmp.eq.s32.totalorder %v4426_v30, %v1105_v52  ;;  %3070 = vmatprep.mubr.msk.f32.mxu0 %vm3417_vm0, %v5700_v28  ;;  %vm1193_vm4 = vcmp.eq.s32.totalorder %v4426_v30, %v922_v11 }
 0x238   :  { %vm1379_vm2 = vmor %vm629_vm14, %vm1254_vm15 }
 0x239   :  { %3257 = vmatmul.mubr.msk.f32.gmra.mrb[98].mxu1 %vm1379_vm2, %v3419_v31  ;;  %vm1318_vm9 = vmor %vm568_vm7, %vm1193_vm4  ;;  %vm632_vm2 = vcmp.eq.s32.totalorder %v4426_v30, %v5774_v27  ;;  %vm570_vm4 = vcmp.eq.s32.totalorder %v4426_v30, %v5775_v17  ;;  %v5781_v27 = vld [vmem:[#allocation96_spill] sm:$0xff] }
 0x23a   :  { %3071 = vmatmul.mubr.msk.f32.gmra.mrb[100].mxu0 %vm1317_vm3, %v3419_v31  ;;  %v1108_v38 = vpop.permute.xlu1 %1107  ;;  %v925_v48 = vpop.permute.xlu0 %924  ;;  %3259 = vmatprep.mubr.msk.f32.mxu1 %vm3417_vm0, %v5700_v28 }
 0x23b   :  { %vm1255_vm6 = vcmp.eq.s32.totalorder %v4426_v30, %v1108_v38  ;;  %3073 = vmatprep.mubr.msk.f32.mxu0 %vm3417_vm0, %v5700_v28  ;;  %vm1194_vm10 = vcmp.eq.s32.totalorder %v4426_v30, %v925_v48 }
 0x23c   :  { %vm1380_vm8 = vmor %vm630_vm5, %vm1255_vm6 }
 0x23d   :  { %3260 = vmatmul.mubr.msk.f32.gmra.mrb[100].mxu1 %vm1380_vm8, %v3419_v31  ;;  %vm1319_vm15 = vmor %vm569_vm13, %vm1194_vm10  ;;  %vm633_vm8 = vcmp.eq.s32.totalorder %v4426_v30, %v4422_v25  ;;  %vm571_vm10 = vcmp.eq.s32.totalorder %v4426_v30, %v5776_v4 }
 0x23e   :  { %3074 = vmatmul.mubr.msk.f32.gmra.mrb[102].mxu0 %vm1318_vm9, %v3419_v31  ;;  %v1111_v55 = vpop.permute.xlu1 %1110  ;;  %v928_v29 = vpop.permute.xlu0 %927  ;;  %3262 = vmatprep.mubr.msk.f32.mxu1 %vm3417_vm0, %v5700_v28 }
 0x23f   :  { %vm1256_vm12 = vcmp.eq.s32.totalorder %v4426_v30, %v1111_v55  ;;  %3076 = vmatprep.mubr.msk.f32.mxu0 %vm3417_vm0, %v5700_v28  ;;  %vm1195_vm1 = vcmp.eq.s32.totalorder %v4426_v30, %v928_v29 }
 0x240   :  { %vm1381_vm14 = vmor %vm631_vm11, %vm1256_vm12 }
 0x241   :  { %3263 = vmatmul.mubr.msk.f32.gmra.mrb[102].mxu1 %vm1381_vm14, %v3419_v31  ;;  %vm1320_vm6 = vmor %vm570_vm4, %vm1195_vm1  ;;  %vm634_vm14 = vcmp.eq.s32.totalorder %v4426_v30, %v5777_v32  ;;  %vm572_vm1 = vcmp.eq.s32.totalorder %v4426_v30, %v5778_v33  ;;  %vm573_vm4 = vcmp.eq.s32.totalorder %v4426_v30, %v5779_v54 }
 0x242   :  { %3077 = vmatmul.mubr.msk.f32.gmra.mrb[104].mxu0 %vm1319_vm15, %v3419_v31  ;;  %v1114_v35 = vpop.permute.xlu1 %1113  ;;  %v931_v62 = vpop.permute.xlu0 %930  ;;  %3265 = vmatprep.mubr.msk.f32.mxu1 %vm3417_vm0, %v5700_v28 }
 0x243   :  { %vm1257_vm3 = vcmp.eq.s32.totalorder %v4426_v30, %v1114_v35  ;;  %3079 = vmatprep.mubr.msk.f32.mxu0 %vm3417_vm0, %v5700_v28  ;;  %vm1196_vm7 = vcmp.eq.s32.totalorder %v4426_v30, %v931_v62 }
 0x244   :  { %vm1382_vm5 = vmor %vm632_vm2, %vm1257_vm3  ;;  %v1731_v14 = vpop.f32.mrb[0].mxu0 }
 0x245   :  { %3266 = vmatmul.mubr.msk.f32.gmra.mrb[104].mxu1 %vm1382_vm5, %v3419_v31  ;;  %v1732_v7 = vadd.f32 %v5272_v5, %v1731_v14  ;;  %v2922_v61 = vpop.f32.mrb[1].mxu0  ;;  %vm1321_vm12 = vmor %vm571_vm10, %vm1196_vm7  ;;  %vm574_vm7 = vcmp.eq.s32.totalorder %v4426_v30, %v5780_v26 }
 0x246   :  { %3080 = vmatmul.mubr.msk.f32.gmra.mrb[106].mxu0 %vm1320_vm6, %v3419_v31  ;;  %v1117_v63 = vpop.permute.xlu1 %1116  ;;  %3268 = vmatprep.mubr.msk.f32.mxu1 %vm3417_vm0, %v5700_v28  ;;  %v934_v60 = vpop.permute.xlu0 %933 }
 0x247   :  { %vm1258_vm9 = vcmp.eq.s32.totalorder %v4426_v30, %v1117_v63  ;;  %3082 = vmatprep.mubr.msk.f32.mxu0 %vm3417_vm0, %v5700_v28  ;;  %2355 = vst [vmem:[#allocation2] sm:$0xff] %v1732_v7  ;;  %vm1197_vm13 = vcmp.eq.s32.totalorder %v4426_v30, %v934_v60 }
 0x248   :  { %vm1383_vm11 = vmor %vm633_vm8, %vm1258_vm9  ;;  %v2046_v51 = vpop.f32.mrb[0].mxu1  ;;  %v1736_v20 = vpop.f32.mrb[2].mxu0 }
 0x249   :  { %v2047_v39 = vadd.f32 %v5272_v5, %v2046_v51  ;;  %v3111_v13 = vpop.f32.mrb[1].mxu1  ;;  %3269 = vmatmul.mubr.msk.f32.gmra.mrb[106].mxu1 %vm1383_vm11, %v3419_v31  ;;  %v1737_v25 = vadd.f32 %v5272_v5, %v1736_v20  ;;  %v2925_v58 = vpop.f32.mrb[3].mxu0  ;;  %vm1322_vm3 = vmor %vm572_vm1, %vm1197_vm13  ;;  %v5782_v51 = vld [vmem:[#allocation95_spill] sm:$0xff] }
 0x24a   :  { %3083 = vmatmul.mubr.msk.f32.gmra.mrb[108].mxu0 %vm1321_vm12, %v3419_v31  ;;  %v1120_v1 = vpop.permute.xlu1 %1119  ;;  %3271 = vmatprep.mubr.msk.f32.mxu1 %vm3417_vm0, %v5700_v28  ;;  %v5301_v19 = vpop.permute.xlu0 %1125 }
 0x24b   :  { %2418 = vst [vmem:[#allocation2 + $0x1f8] sm:$0xff] %v2047_v39  ;;  %vm1259_vm15 = vcmp.eq.s32.totalorder %v4426_v30, %v1120_v1  ;;  %3085 = vmatprep.mubr.msk.f32.mxu0 %vm3417_vm0, %v5700_v28  ;;  %2356 = vst [vmem:[#allocation2 + $0x8] sm:$0xff] %v1737_v25 }
 0x24c   :  { %vm1384_vm2 = vmor %vm634_vm14, %vm1259_vm15  ;;  %v2051_v47 = vpop.f32.mrb[2].mxu1  ;;  %v1741_v57 = vpop.f32.mrb[4].mxu0  ;;  %vm1261_vm14 = vcmp.eq.s32.totalorder %v4426_v30, %v5301_v19 }
 0x24d   :  { %v2052_v43 = vadd.f32 %v5272_v5, %v2051_v47  ;;  %v3114_v59 = vpop.f32.mrb[3].mxu1  ;;  %3272 = vmatmul.mubr.msk.f32.gmra.mrb[108].mxu1 %vm1384_vm2, %v3419_v31  ;;  %v1742_v22 = vadd.f32 %v5272_v5, %v1741_v57  ;;  %v2928_v0 = vpop.f32.mrb[5].mxu0 }
 0x24e   :  { %3086 = vmatmul.mubr.msk.f32.gmra.mrb[110].mxu0 %vm1322_vm3, %v3419_v31  ;;  %v937_v12 = vpop.permute.xlu1 %936  ;;  %3274 = vmatprep.mubr.msk.f32.mxu1 %vm3417_vm0, %v5700_v28  ;;  %v5318_v45 = vpop.permute.xlu0 %1128  ;;  %vm575_vm3 = vcmp.eq.s32.totalorder %v4426_v30, %v5781_v27 }
 0x24f   :  { %2419 = vst [vmem:[#allocation2 + $0x200] sm:$0xff] %v2052_v43  ;;  %vm1198_vm5 = vcmp.eq.s32.totalorder %v4426_v30, %v937_v12  ;;  %3088 = vmatprep.mubr.msk.f32.mxu0 %vm3417_vm0, %v5700_v28  ;;  %2357 = vst [vmem:[#allocation2 + $0x10] sm:$0xff] %v1742_v22  ;;  %vm1262_vm2 = vcmp.eq.s32.totalorder %v4426_v30, %v5318_v45 }
 0x250   :  { %vm1323_vm6 = vmor %vm573_vm4, %vm1198_vm5  ;;  %v2056_v41 = vpop.f32.mrb[4].mxu1  ;;  %v1746_v21 = vpop.f32.mrb[6].mxu0 }
 0x251   :  { %v2057_v6 = vadd.f32 %v5272_v5, %v2056_v41  ;;  %v3117_v16 = vpop.f32.mrb[5].mxu1  ;;  %v1747_v53 = vadd.f32 %v5272_v5, %v1746_v21  ;;  %v2931_v40 = vpop.f32.mrb[7].mxu0 }
 0x252   :  { %3089 = vmatmul.mubr.msk.f32.gmra.mrb[112].mxu0 %vm1323_vm6, %v3419_v31  ;;  %v1123_v10 = vpop.permute.xlu1 %1122  ;;  %v5325_v24 = vpop.permute.xlu0 %945  ;;  %v5783_v16 = vld [vmem:[#allocation98_spill] sm:$0xff] }
 0x253   :  { %2420 = vst [vmem:[#allocation2 + $0x208] sm:$0xff] %v2057_v6  ;;  %3091 = vmatprep.mubr.msk.f32.mxu0 %vm3417_vm0, %v5700_v28  ;;  %2358 = vst [vmem:[#allocation2 + $0x18] sm:$0xff] %v1747_v53  ;;  %vm1260_vm9 = vcmp.eq.s32.totalorder %v4426_v30, %v1123_v10 }
 0x254   :  { %v2061_v49 = vpop.f32.mrb[6].mxu1  ;;  %v1751_v56 = vpop.f32.mrb[8].mxu0 }
 0x255   :  { %v2062_v50 = vadd.f32 %v5272_v5, %v2061_v49  ;;  %v3120_v2 = vpop.f32.mrb[7].mxu1  ;;  %v1752_v8 = vadd.f32 %v5272_v5, %v1751_v56  ;;  %v2934_v23 = vpop.f32.mrb[9].mxu0 }
 0x256   :  { %v940_v46 = vpop.permute.xlu1 %939 }
 0x257   :  { %2421 = vst [vmem:[#allocation2 + $0x210] sm:$0xff] %v2062_v50  ;;  %vm1199_vm8 = vcmp.eq.s32.totalorder %v4426_v30, %v940_v46  ;;  %v498_v42 = vpop.permute.xlu0 %497  ;;  %2359 = vst [vmem:[#allocation2 + $0x20] sm:$0xff] %v1752_v8 }
 0x258   :  { %vm1324_vm10 = vmor %vm574_vm7, %vm1199_vm8  ;;  %vm635_vm11 = vcmp.eq.s32.totalorder %v4426_v30, %v498_v42  ;;  %v2066_v36 = vpop.f32.mrb[8].mxu1  ;;  %v1756_v15 = vpop.f32.mrb[10].mxu0  ;;  %vm1201_vm7 = vcmp.eq.s32.totalorder %v4426_v30, %v5325_v24  ;;  %vm576_vm8 = vcmp.eq.s32.totalorder %v4426_v30, %v5782_v51 }
 0x259   :  { %vm1385_vm12 = vmor %vm635_vm11, %vm1260_vm9  ;;  %v2067_v52 = vadd.f32 %v5272_v5, %v2066_v36  ;;  %3092 = vmatmul.mubr.msk.f32.gmra.mrb[114].mxu0 %vm1324_vm10, %v3419_v31  ;;  %v3123_v11 = vpop.f32.mrb[9].mxu1  ;;  %v1757_v44 = vadd.f32 %v5272_v5, %v1756_v15  ;;  %v2937_v37 = vpop.f32.mrb[11].mxu0 }
 0x25a   :  { %3275 = vmatmul.mubr.msk.f32.gmra.mrb[110].mxu1 %vm1385_vm12, %v3419_v31  ;;  %3094 = vmatprep.mubr.msk.f32.mxu0 %vm3417_vm0, %v5700_v28  ;;  %vm1326_vm9 = vmor %vm576_vm8, %vm1201_vm7 }
 0x25b   :  { %2422 = vst [vmem:[#allocation2 + $0x218] sm:$0xff] %v2067_v52  ;;  %v504_v38 = vpop.permute.xlu1 %503  ;;  %v501_v48 = vpop.permute.xlu0 %500  ;;  %3277 = vmatprep.mubr.msk.f32.mxu1 %vm3417_vm0, %v5700_v28  ;;  %2360 = vst [vmem:[#allocation2 + $0x28] sm:$0xff] %v1757_v44  ;;  %v5784_v52 = vld [vmem:[#allocation97_spill] sm:$0xff] }
 0x25c   :  { %vm636_vm13 = vcmp.eq.s32.totalorder %v4426_v30, %v501_v48  ;;  %v2071_v3 = vpop.f32.mrb[10].mxu1  ;;  %v1761_v34 = vpop.f32.mrb[12].mxu0  ;;  %vm637_vm15 = vcmp.eq.s32.totalorder %v4426_v30, %v504_v38 }
 0x25d   :  { %v2072_v55 = vadd.f32 %v5272_v5, %v2071_v3  ;;  %v3126_v29 = vpop.f32.mrb[11].mxu1  ;;  %vm1386_vm1 = vmor %vm636_vm13, %vm1261_vm14  ;;  %v1762_v18 = vadd.f32 %v5272_v5, %v1761_v34  ;;  %v2940_v9 = vpop.f32.mrb[13].mxu0  ;;  %vm577_vm13 = vcmp.eq.s32.totalorder %v4426_v30, %v5783_v16 }
 0x25e   :  { %3278 = vmatmul.mubr.msk.f32.gmra.mrb[112].mxu1 %vm1386_vm1, %v3419_v31  ;;  %vm1387_vm4 = vmor %vm637_vm15, %vm1262_vm2 }
 0x25f   :  { %2423 = vst [vmem:[#allocation2 + $0x220] sm:$0xff] %v2072_v55  ;;  %2361 = vst [vmem:[#allocation2 + $0x30] sm:$0xff] %v1762_v18  ;;  %3280 = vmatprep.mubr.msk.f32.mxu1 %vm3417_vm0, %v5700_v28  ;;  %v5360_v63 = vpop.permute.xlu0 %509 }
 0x260   :  { %v943_v35 = vpop.permute.xlu1 %942  ;;  %v2076_v62 = vpop.f32.mrb[12].mxu1  ;;  %vm639_vm1 = vcmp.eq.s32.totalorder %v4426_v30, %v5360_v63 }
 0x261   :  { %vm1200_vm5 = vcmp.eq.s32.totalorder %v4426_v30, %v943_v35  ;;  %v1766_v17 = vpop.f32.mrb[14].mxu0  ;;  %v2077_v14 = vadd.f32 %v5272_v5, %v2076_v62  ;;  %v3129_v7 = vpop.f32.mrb[13].mxu1 }
 0x262   :  { %vm1325_vm6 = vmor %vm575_vm3, %vm1200_vm5  ;;  %v1767_v61 = vadd.f32 %v5272_v5, %v1766_v17  ;;  %v2943_v60 = vpop.f32.mrb[15].mxu0  ;;  %3281 = vmatmul.mubr.msk.f32.gmra.mrb[114].mxu1 %vm1387_vm4, %v3419_v31 }
 0x263   :  { %2424 = vst [vmem:[#allocation2 + $0x228] sm:$0xff] %v2077_v14  ;;  %3095 = vmatmul.mubr.msk.f32.gmra.mrb[116].mxu0 %vm1325_vm6, %v3419_v31  ;;  %3283 = vmatprep.mubr.msk.f32.mxu1 %vm3417_vm0, %v5700_v28  ;;  %v513_v32 = vpop.permute.xlu0 %512  ;;  %vm578_vm6 = vcmp.eq.s32.totalorder %v4426_v30, %v5784_v52  ;;  %v5785_v14 = vld [vmem:[#allocation99_spill] sm:$0xff] }
 0x264   :  { %2362 = vst [vmem:[#allocation2 + $0x38] sm:$0xff] %v1767_v61  ;;  %v2081_v4 = vpop.f32.mrb[14].mxu1  ;;  %3097 = vmatprep.mubr.msk.f32.mxu0 %vm3417_vm0, %v5700_v28  ;;  %v1771_v20 = vpop.f32.mrb[16].mxu0  ;;  %vm640_vm3 = vcmp.eq.s32.totalorder %v4426_v30, %v513_v32 }
 0x265   :  { %v2082_v39 = vadd.f32 %v5272_v5, %v2081_v4  ;;  %v507_v13 = vpop.permute.xlu1 %506  ;;  %v1772_v25 = vadd.f32 %v5272_v5, %v1771_v20  ;;  %v2946_v58 = vpop.f32.mrb[17].mxu0 }
 0x266   :  { %v3132_v1 = vpop.f32.mrb[15].mxu1  ;;  %vm638_vm10 = vcmp.eq.s32.totalorder %v4426_v30, %v507_v13 }
 0x267   :  { %2425 = vst [vmem:[#allocation2 + $0x230] sm:$0xff] %v2082_v39  ;;  %3098 = vmatmul.mubr.msk.f32.gmra.mrb[118].mxu0 %vm1326_vm9, %v3419_v31  ;;  %2363 = vst [vmem:[#allocation2 + $0x40] sm:$0xff] %v1772_v25 }
 0x268   :  { %v2086_v19 = vpop.f32.mrb[16].mxu1  ;;  %3100 = vmatprep.mubr.msk.f32.mxu0 %vm3417_vm0, %v5700_v28  ;;  %v1776_v33 = vpop.f32.mrb[18].mxu0 }
 0x269   :  { %v2087_v47 = vadd.f32 %v5272_v5, %v2086_v19  ;;  %v3135_v57 = vpop.f32.mrb[17].mxu1  ;;  %v1777_v43 = vadd.f32 %v5272_v5, %v1776_v33  ;;  %v2949_v59 = vpop.f32.mrb[19].mxu0 }
 0x26a   :  { %v1132_v22 = vpop.permute.xlu1 %1131  ;;  %v1138_v53 = vpop.permute.xlu0 %1137 }
 0x26b   :  { %2426 = vst [vmem:[#allocation2 + $0x238] sm:$0xff] %v2087_v47  ;;  %vm1263_vm11 = vcmp.eq.s32.totalorder %v4426_v30, %v1132_v22  ;;  %2364 = vst [vmem:[#allocation2 + $0x48] sm:$0xff] %v1777_v43  ;;  %vm1265_vm4 = vcmp.eq.s32.totalorder %v4426_v30, %v1138_v53 }
 0x26c   :  { %vm1388_vm12 = vmor %vm638_vm10, %vm1263_vm11  ;;  %v2091_v0 = vpop.f32.mrb[18].mxu1  ;;  %v1781_v12 = vpop.f32.mrb[20].mxu0 }
 0x26d   :  { %v2092_v54 = vadd.f32 %v5272_v5, %v2091_v0  ;;  %v3138_v45 = vpop.f32.mrb[19].mxu1  ;;  %3284 = vmatmul.mubr.msk.f32.gmra.mrb[116].mxu1 %vm1388_vm12, %v3419_v31  ;;  %v1782_v41 = vadd.f32 %v5272_v5, %v1781_v12  ;;  %v2952_v21 = vpop.f32.mrb[21].mxu0  ;;  %vm1390_vm7 = vmor %vm640_vm3, %vm1265_vm4 }
 0x26e   :  { %v949_v6 = vpop.permute.xlu1 %948  ;;  %3286 = vmatprep.mubr.msk.f32.mxu1 %vm3417_vm0, %v5700_v28  ;;  %v1141_v11 = vpop.permute.xlu0 %1140 }
 0x26f   :  { %2427 = vst [vmem:[#allocation2 + $0x240] sm:$0xff] %v2092_v54  ;;  %vm1202_vm14 = vcmp.eq.s32.totalorder %v4426_v30, %v949_v6  ;;  %2365 = vst [vmem:[#allocation2 + $0x50] sm:$0xff] %v1782_v41  ;;  %vm1266_vm10 = vcmp.eq.s32.totalorder %v4426_v30, %v1141_v11 }
 0x270   :  { %vm1327_vm15 = vmor %vm577_vm13, %vm1202_vm14  ;;  %v2096_v40 = vpop.f32.mrb[20].mxu1  ;;  %v1786_v10 = vpop.f32.mrb[22].mxu0 }
 0x271   :  { %v2097_v24 = vadd.f32 %v5272_v5, %v2096_v40  ;;  %3101 = vmatmul.mubr.msk.f32.gmra.mrb[120].mxu0 %vm1327_vm15, %v3419_v31  ;;  %v3141_v49 = vpop.f32.mrb[21].mxu1  ;;  %v1787_v56 = vadd.f32 %v5272_v5, %v1786_v10  ;;  %v2955_v50 = vpop.f32.mrb[23].mxu0 }
 0x272   :  { %v1135_v2 = vpop.permute.xlu1 %1134  ;;  %3103 = vmatprep.mubr.msk.f32.mxu0 %vm3417_vm0, %v5700_v28 }
 0x273   :  { %2428 = vst [vmem:[#allocation2 + $0x248] sm:$0xff] %v2097_v24  ;;  %vm1264_vm2 = vcmp.eq.s32.totalorder %v4426_v30, %v1135_v2  ;;  %2366 = vst [vmem:[#allocation2 + $0x58] sm:$0xff] %v1787_v56 }
 0x274   :  { %vm1389_vm5 = vmor %vm639_vm1, %vm1264_vm2  ;;  %v2101_v8 = vpop.f32.mrb[22].mxu1  ;;  %v1791_v23 = vpop.f32.mrb[24].mxu0 }
 0x275   :  { %v2102_v46 = vadd.f32 %v5272_v5, %v2101_v8  ;;  %v3144_v26 = vpop.f32.mrb[23].mxu1  ;;  %3287 = vmatmul.mubr.msk.f32.gmra.mrb[118].mxu1 %vm1389_vm5, %v3419_v31  ;;  %v1792_v42 = vadd.f32 %v5272_v5, %v1791_v23  ;;  %v2958_v36 = vpop.f32.mrb[25].mxu0 }
 0x276   :  { %v952_v15 = vpop.permute.xlu1 %951  ;;  %3289 = vmatprep.mubr.msk.f32.mxu1 %vm3417_vm0, %v5700_v28 }
 0x277   :  { %2429 = vst [vmem:[#allocation2 + $0x250] sm:$0xff] %v2102_v46  ;;  %vm1203_vm8 = vcmp.eq.s32.totalorder %v4426_v30, %v952_v15  ;;  %2367 = vst [vmem:[#allocation2 + $0x60] sm:$0xff] %v1792_v42 }
 0x278   :  { %vm1328_vm9 = vmor %vm578_vm6, %vm1203_vm8  ;;  %v2106_v44 = vpop.f32.mrb[24].mxu1  ;;  %v1796_v37 = vpop.f32.mrb[26].mxu0 }
 0x279   :  { %v2107_v38 = vadd.f32 %v5272_v5, %v2106_v44  ;;  %3104 = vmatmul.mubr.msk.f32.gmra.mrb[122].mxu0 %vm1328_vm9, %v3419_v31  ;;  %v3147_v48 = vpop.f32.mrb[25].mxu1  ;;  %3290 = vmatmul.mubr.msk.f32.gmra.mrb[120].mxu1 %vm1390_vm7, %v3419_v31  ;;  %v1797_v3 = vadd.f32 %v5272_v5, %v1796_v37  ;;  %v2961_v34 = vpop.f32.mrb[27].mxu0 }
 0x27a   :  { %3292 = vmatprep.mubr.msk.f32.mxu1 %vm3417_vm0, %v5700_v28  ;;  %3106 = vmatprep.mubr.msk.f32.mxu0 %vm3417_vm0, %v5700_v28  ;;  %vm579_vm0 = vcmp.eq.s32.totalorder %v4426_v30, %v5785_v14 }
 0x27b   :  { %2430 = vst [vmem:[#allocation2 + $0x258] sm:$0xff] %v2107_v38  ;;  %v516_v55 = vpop.permute.xlu1 %515  ;;  %2368 = vst [vmem:[#allocation2 + $0x68] sm:$0xff] %v1797_v3 }
 0x27c   :  { %vm641_vm11 = vcmp.eq.s32.totalorder %v4426_v30, %v516_v55  ;;  %v2111_v29 = vpop.f32.mrb[26].mxu1  ;;  %v1801_v18 = vpop.f32.mrb[28].mxu0 }
 0x27d   :  { %vm1391_vm12 = vmor %vm641_vm11, %vm1266_vm10  ;;  %v2112_v9 = vadd.f32 %v5272_v5, %v2111_v29  ;;  %v3150_v35 = vpop.f32.mrb[27].mxu1  ;;  %v1802_v62 = vadd.f32 %v5272_v5, %v1801_v18  ;;  %v2964_v27 = vpop.f32.mrb[29].mxu0 }
 0x27e   :  { %3293 = vmatmul.mubr.msk.f32.gmra.mrb[122].mxu1 %vm1391_vm12, %v3419_v31 }
 0x27f   :  { %2431 = vst [vmem:[#allocation2 + $0x260] sm:$0xff] %v2112_v9  ;;  %2369 = vst [vmem:[#allocation2 + $0x70] sm:$0xff] %v1802_v62 }
 0x280   :  { %v955_v17 = vpop.permute.xlu1 %954  ;;  %v2116_v28 = vpop.f32.mrb[28].mxu1 }
 0x281   :  { %vm1204_vm13 = vcmp.eq.s32.totalorder %v4426_v30, %v955_v17  ;;  %v1806_v7 = vpop.f32.mrb[30].mxu0  ;;  %v2117_v61 = vadd.f32 %v5272_v5, %v2116_v28  ;;  %v3153_v63 = vpop.f32.mrb[29].mxu1 }
 0x282   :  { %vm1329_vm14 = vmor %vm579_vm0, %vm1204_vm13  ;;  %v1807_v60 = vadd.f32 %v5272_v5, %v1806_v7  ;;  %v2967_v4 = vpop.f32.mrb[31].mxu0 }
 0x283   :  { %2432 = vst [vmem:[#allocation2 + $0x268] sm:$0xff] %v2117_v61  ;;  %3107 = vmatmul.mubr.msk.f32.gmra.mrb[124].mxu0 %vm1329_vm14, %v3419_v31 }
 0x284   :  { %2370 = vst [vmem:[#allocation2 + $0x78] sm:$0xff] %v1807_v60  ;;  %v2121_v51 = vpop.f32.mrb[30].mxu1  ;;  %v1811_v20 = vpop.f32.mrb[32].mxu0 }
 0x285   :  { %v2122_v39 = vadd.f32 %v5272_v5, %v2121_v51  ;;  %v3156_v13 = vpop.f32.mrb[31].mxu1  ;;  %v1812_v25 = vadd.f32 %v5272_v5, %v1811_v20  ;;  %v2970_v30 = vpop.f32.mrb[33].mxu0 }
 0x287   :  { %2433 = vst [vmem:[#allocation2 + $0x270] sm:$0xff] %v2122_v39  ;;  %2371 = vst [vmem:[#allocation2 + $0x80] sm:$0xff] %v1812_v25 }
 0x288   :  { %v2126_v58 = vpop.f32.mrb[32].mxu1  ;;  %v1816_v1 = vpop.f32.mrb[34].mxu0 }
 0x289   :  { %v2127_v32 = vadd.f32 %v5272_v5, %v2126_v58  ;;  %v3159_v19 = vpop.f32.mrb[33].mxu1  ;;  %v1817_v33 = vadd.f32 %v5272_v5, %v1816_v1  ;;  %v2973_v47 = vpop.f32.mrb[35].mxu0 }
 0x28b   :  { %2434 = vst [vmem:[#allocation2 + $0x278] sm:$0xff] %v2127_v32  ;;  %2372 = vst [vmem:[#allocation2 + $0x88] sm:$0xff] %v1817_v33 }
 0x28c   :  { %v2131_v31 = vpop.f32.mrb[34].mxu1  ;;  %v1821_v57 = vpop.f32.mrb[36].mxu0 }
 0x28d   :  { %v2132_v43 = vadd.f32 %v5272_v5, %v2131_v31  ;;  %v3162_v59 = vpop.f32.mrb[35].mxu1  ;;  %v1822_v22 = vadd.f32 %v5272_v5, %v1821_v57  ;;  %v2976_v0 = vpop.f32.mrb[37].mxu0 }
 0x28f   :  { %2435 = vst [vmem:[#allocation2 + $0x280] sm:$0xff] %v2132_v43  ;;  %2373 = vst [vmem:[#allocation2 + $0x90] sm:$0xff] %v1822_v22 }
 0x290   :  { %v2136_v12 = vpop.f32.mrb[36].mxu1  ;;  %v1826_v54 = vpop.f32.mrb[38].mxu0 }
 0x291   :  { %v2137_v45 = vadd.f32 %v5272_v5, %v2136_v12  ;;  %v3165_v41 = vpop.f32.mrb[37].mxu1  ;;  %v1827_v21 = vadd.f32 %v5272_v5, %v1826_v54  ;;  %v2979_v6 = vpop.f32.mrb[39].mxu0 }
 0x293   :  { %2436 = vst [vmem:[#allocation2 + $0x288] sm:$0xff] %v2137_v45  ;;  %2374 = vst [vmem:[#allocation2 + $0x98] sm:$0xff] %v1827_v21 }
 0x294   :  { %v2141_v16 = vpop.f32.mrb[38].mxu1  ;;  %v1831_v53 = vpop.f32.mrb[40].mxu0 }
 0x295   :  { %v2142_v40 = vadd.f32 %v5272_v5, %v2141_v16  ;;  %v3168_v10 = vpop.f32.mrb[39].mxu1  ;;  %v1832_v24 = vadd.f32 %v5272_v5, %v1831_v53  ;;  %v2982_v49 = vpop.f32.mrb[41].mxu0 }
 0x297   :  { %2437 = vst [vmem:[#allocation2 + $0x290] sm:$0xff] %v2142_v40  ;;  %2375 = vst [vmem:[#allocation2 + $0xa0] sm:$0xff] %v1832_v24 }
 0x298   :  { %v2146_v56 = vpop.f32.mrb[40].mxu1  ;;  %v1836_v50 = vpop.f32.mrb[42].mxu0 }
 0x299   :  { %v2147_v2 = vadd.f32 %v5272_v5, %v2146_v56  ;;  %v3171_v8 = vpop.f32.mrb[41].mxu1  ;;  %v1837_v23 = vadd.f32 %v5272_v5, %v1836_v50  ;;  %v2985_v46 = vpop.f32.mrb[43].mxu0 }
 0x29b   :  { %2438 = vst [vmem:[#allocation2 + $0x298] sm:$0xff] %v2147_v2  ;;  %2376 = vst [vmem:[#allocation2 + $0xa8] sm:$0xff] %v1837_v23 }
 0x29c   :  { %v2151_v26 = vpop.f32.mrb[42].mxu1  ;;  %v1841_v42 = vpop.f32.mrb[44].mxu0 }
 0x29d   :  { %v2152_v36 = vadd.f32 %v5272_v5, %v2151_v26  ;;  %v3174_v15 = vpop.f32.mrb[43].mxu1  ;;  %v1842_v52 = vadd.f32 %v5272_v5, %v1841_v42  ;;  %v2988_v11 = vpop.f32.mrb[45].mxu0 }
 0x29f   :  { %2439 = vst [vmem:[#allocation2 + $0x2a0] sm:$0xff] %v2152_v36  ;;  %2377 = vst [vmem:[#allocation2 + $0xb0] sm:$0xff] %v1842_v52 }
 0x2a0   :  { %v2156_v44 = vpop.f32.mrb[44].mxu1  ;;  %v1846_v37 = vpop.f32.mrb[46].mxu0 }
 0x2a1   :  { %v2157_v38 = vadd.f32 %v5272_v5, %v2156_v44  ;;  %v3177_v48 = vpop.f32.mrb[45].mxu1  ;;  %v1847_v3 = vadd.f32 %v5272_v5, %v1846_v37  ;;  %v2991_v34 = vpop.f32.mrb[47].mxu0 }
 0x2a3   :  { %2440 = vst [vmem:[#allocation2 + $0x2a8] sm:$0xff] %v2157_v38  ;;  %2378 = vst [vmem:[#allocation2 + $0xb8] sm:$0xff] %v1847_v3 }
 0x2a4   :  { %v2161_v55 = vpop.f32.mrb[46].mxu1  ;;  %v1851_v29 = vpop.f32.mrb[48].mxu0 }
 0x2a5   :  { %v2162_v18 = vadd.f32 %v5272_v5, %v2161_v55  ;;  %v3180_v9 = vpop.f32.mrb[47].mxu1  ;;  %v1852_v35 = vadd.f32 %v5272_v5, %v1851_v29  ;;  %v2994_v62 = vpop.f32.mrb[49].mxu0 }
 0x2a7   :  { %2441 = vst [vmem:[#allocation2 + $0x2b0] sm:$0xff] %v2162_v18  ;;  %2379 = vst [vmem:[#allocation2 + $0xc0] sm:$0xff] %v1852_v35 }
 0x2a8   :  { %v2166_v27 = vpop.f32.mrb[48].mxu1  ;;  %v1856_v17 = vpop.f32.mrb[50].mxu0 }
 0x2a9   :  { %v2167_v28 = vadd.f32 %v5272_v5, %v2166_v27  ;;  %v3183_v14 = vpop.f32.mrb[49].mxu1  ;;  %v1857_v7 = vadd.f32 %v5272_v5, %v1856_v17  ;;  %v2997_v61 = vpop.f32.mrb[51].mxu0 }
 0x2ab   :  { %2442 = vst [vmem:[#allocation2 + $0x2b8] sm:$0xff] %v2167_v28  ;;  %2380 = vst [vmem:[#allocation2 + $0xc8] sm:$0xff] %v1857_v7 }
 0x2ac   :  { %v2171_v63 = vpop.f32.mrb[50].mxu1  ;;  %v1861_v60 = vpop.f32.mrb[52].mxu0 }
 0x2ad   :  { %v2172_v4 = vadd.f32 %v5272_v5, %v2171_v63  ;;  %v3186_v51 = vpop.f32.mrb[51].mxu1  ;;  %v1862_v20 = vadd.f32 %v5272_v5, %v1861_v60  ;;  %v3000_v39 = vpop.f32.mrb[53].mxu0 }
 0x2af   :  { %2443 = vst [vmem:[#allocation2 + $0x2c0] sm:$0xff] %v2172_v4  ;;  %2381 = vst [vmem:[#allocation2 + $0xd0] sm:$0xff] %v1862_v20 }
 0x2b0   :  { %v2176_v13 = vpop.f32.mrb[52].mxu1  ;;  %v1866_v25 = vpop.f32.mrb[54].mxu0 }
 0x2b1   :  { %v2177_v30 = vadd.f32 %v5272_v5, %v2176_v13  ;;  %v3189_v58 = vpop.f32.mrb[53].mxu1  ;;  %v1867_v1 = vadd.f32 %v5272_v5, %v1866_v25  ;;  %v3003_v32 = vpop.f32.mrb[55].mxu0 }
 0x2b3   :  { %2444 = vst [vmem:[#allocation2 + $0x2c8] sm:$0xff] %v2177_v30  ;;  %2382 = vst [vmem:[#allocation2 + $0xd8] sm:$0xff] %v1867_v1 }
 0x2b4   :  { %v2181_v19 = vpop.f32.mrb[54].mxu1 }
 0x2b5   :  { %v1871_v33 = vpop.f32.mrb[56].mxu0  ;;  %v2182_v47 = vadd.f32 %v5272_v5, %v2181_v19  ;;  %v3192_v31 = vpop.f32.mrb[55].mxu1 }
 0x2b6   :  { %v1872_v57 = vadd.f32 %v5272_v5, %v1871_v33  ;;  %v3006_v43 = vpop.f32.mrb[57].mxu0 }
 0x2b7   :  { %2445 = vst [vmem:[#allocation2 + $0x2d0] sm:$0xff] %v2182_v47 }
 0x2b8   :  { %2383 = vst [vmem:[#allocation2 + $0xe0] sm:$0xff] %v1872_v57  ;;  %v2186_v59 = vpop.f32.mrb[56].mxu1 }
 0x2b9   :  { %v1876_v22 = vpop.f32.mrb[58].mxu0  ;;  %v2187_v0 = vadd.f32 %v5272_v5, %v2186_v59  ;;  %v3195_v12 = vpop.f32.mrb[57].mxu1 }
 0x2ba   :  { %v1877_v54 = vadd.f32 %v5272_v5, %v1876_v22  ;;  %v3009_v45 = vpop.f32.mrb[59].mxu0 }
 0x2bb   :  { %2446 = vst [vmem:[#allocation2 + $0x2d8] sm:$0xff] %v2187_v0 }
 0x2bc   :  { %2384 = vst [vmem:[#allocation2 + $0xe8] sm:$0xff] %v1877_v54  ;;  %v2191_v41 = vpop.f32.mrb[58].mxu1 }
 0x2bd   :  { %v1881_v21 = vpop.f32.mrb[60].mxu0  ;;  %v2192_v6 = vadd.f32 %v5272_v5, %v2191_v41  ;;  %v3198_v16 = vpop.f32.mrb[59].mxu1 }
 0x2be   :  { %v1882_v53 = vadd.f32 %v5272_v5, %v1881_v21  ;;  %v3012_v40 = vpop.f32.mrb[61].mxu0 }
 0x2bf   :  { %2447 = vst [vmem:[#allocation2 + $0x2e0] sm:$0xff] %v2192_v6 }
 0x2c0   :  { %2385 = vst [vmem:[#allocation2 + $0xf0] sm:$0xff] %v1882_v53  ;;  %v2196_v10 = vpop.f32.mrb[60].mxu1 }
 0x2c1   :  { %v1886_v24 = vpop.f32.mrb[62].mxu0  ;;  %v2197_v49 = vadd.f32 %v5272_v5, %v2196_v10  ;;  %v3201_v56 = vpop.f32.mrb[61].mxu1 }
 0x2c2   :  { %v1887_v50 = vadd.f32 %v5272_v5, %v1886_v24  ;;  %v3015_v2 = vpop.f32.mrb[63].mxu0 }
 0x2c3   :  { %2448 = vst [vmem:[#allocation2 + $0x2e8] sm:$0xff] %v2197_v49 }
 0x2c4   :  { %2386 = vst [vmem:[#allocation2 + $0xf8] sm:$0xff] %v1887_v50  ;;  %v2201_v8 = vpop.f32.mrb[62].mxu1 }
 0x2c5   :  { %v1891_v23 = vpop.f32.mrb[64].mxu0  ;;  %v2202_v46 = vadd.f32 %v5272_v5, %v2201_v8  ;;  %v3204_v26 = vpop.f32.mrb[63].mxu1 }
 0x2c6   :  { %v1892_v42 = vadd.f32 %v5272_v5, %v1891_v23  ;;  %v3018_v36 = vpop.f32.mrb[65].mxu0 }
 0x2c7   :  { %2449 = vst [vmem:[#allocation2 + $0x2f0] sm:$0xff] %v2202_v46 }
 0x2c8   :  { %2387 = vst [vmem:[#allocation2 + $0x100] sm:$0xff] %v1892_v42  ;;  %v2206_v15 = vpop.f32.mrb[64].mxu1 }
 0x2c9   :  { %v1896_v52 = vpop.f32.mrb[66].mxu0  ;;  %v2207_v11 = vadd.f32 %v5272_v5, %v2206_v15  ;;  %v3207_v44 = vpop.f32.mrb[65].mxu1 }
 0x2ca   :  { %v1897_v37 = vadd.f32 %v5272_v5, %v1896_v52  ;;  %v3021_v38 = vpop.f32.mrb[67].mxu0 }
 0x2cb   :  { %2450 = vst [vmem:[#allocation2 + $0x2f8] sm:$0xff] %v2207_v11 }
 0x2cc   :  { %2388 = vst [vmem:[#allocation2 + $0x108] sm:$0xff] %v1897_v37  ;;  %v2211_v48 = vpop.f32.mrb[66].mxu1 }
 0x2cd   :  { %v1901_v3 = vpop.f32.mrb[68].mxu0  ;;  %v2212_v34 = vadd.f32 %v5272_v5, %v2211_v48  ;;  %v3210_v55 = vpop.f32.mrb[67].mxu1 }
 0x2ce   :  { %v1902_v29 = vadd.f32 %v5272_v5, %v1901_v3  ;;  %v3024_v18 = vpop.f32.mrb[69].mxu0 }
 0x2cf   :  { %2451 = vst [vmem:[#allocation2 + $0x300] sm:$0xff] %v2212_v34 }
 0x2d0   :  { %2389 = vst [vmem:[#allocation2 + $0x110] sm:$0xff] %v1902_v29  ;;  %v2216_v9 = vpop.f32.mrb[68].mxu1 }
 0x2d1   :  { %v1906_v35 = vpop.f32.mrb[70].mxu0  ;;  %v2217_v62 = vadd.f32 %v5272_v5, %v2216_v9  ;;  %v3213_v27 = vpop.f32.mrb[69].mxu1 }
 0x2d2   :  { %v1907_v17 = vadd.f32 %v5272_v5, %v1906_v35  ;;  %v3027_v28 = vpop.f32.mrb[71].mxu0 }
 0x2d3   :  { %2452 = vst [vmem:[#allocation2 + $0x308] sm:$0xff] %v2217_v62 }
 0x2d4   :  { %2390 = vst [vmem:[#allocation2 + $0x118] sm:$0xff] %v1907_v17  ;;  %v2221_v14 = vpop.f32.mrb[70].mxu1 }
 0x2d5   :  { %v1911_v7 = vpop.f32.mrb[72].mxu0  ;;  %v2222_v61 = vadd.f32 %v5272_v5, %v2221_v14  ;;  %v3216_v63 = vpop.f32.mrb[71].mxu1 }
 0x2d6   :  { %v1912_v60 = vadd.f32 %v5272_v5, %v1911_v7  ;;  %v3030_v4 = vpop.f32.mrb[73].mxu0 }
 0x2d7   :  { %2453 = vst [vmem:[#allocation2 + $0x310] sm:$0xff] %v2222_v61 }
 0x2d8   :  { %2391 = vst [vmem:[#allocation2 + $0x120] sm:$0xff] %v1912_v60  ;;  %v2226_v51 = vpop.f32.mrb[72].mxu1 }
 0x2d9   :  { %v1916_v20 = vpop.f32.mrb[74].mxu0  ;;  %v2227_v39 = vadd.f32 %v5272_v5, %v2226_v51  ;;  %v3219_v13 = vpop.f32.mrb[73].mxu1 }
 0x2da   :  { %v1917_v25 = vadd.f32 %v5272_v5, %v1916_v20  ;;  %v3033_v30 = vpop.f32.mrb[75].mxu0 }
 0x2db   :  { %2454 = vst [vmem:[#allocation2 + $0x318] sm:$0xff] %v2227_v39 }
 0x2dc   :  { %2392 = vst [vmem:[#allocation2 + $0x128] sm:$0xff] %v1917_v25  ;;  %v2231_v58 = vpop.f32.mrb[74].mxu1 }
 0x2dd   :  { %v1921_v1 = vpop.f32.mrb[76].mxu0  ;;  %v2232_v32 = vadd.f32 %v5272_v5, %v2231_v58  ;;  %v3222_v19 = vpop.f32.mrb[75].mxu1 }
 0x2de   :  { %v1922_v33 = vadd.f32 %v5272_v5, %v1921_v1  ;;  %v3036_v47 = vpop.f32.mrb[77].mxu0 }
 0x2df   :  { %2455 = vst [vmem:[#allocation2 + $0x320] sm:$0xff] %v2232_v32 }
 0x2e0   :  { %2393 = vst [vmem:[#allocation2 + $0x130] sm:$0xff] %v1922_v33  ;;  %v2236_v31 = vpop.f32.mrb[76].mxu1 }
 0x2e1   :  { %v1926_v57 = vpop.f32.mrb[78].mxu0  ;;  %v2237_v43 = vadd.f32 %v5272_v5, %v2236_v31  ;;  %v3225_v59 = vpop.f32.mrb[77].mxu1 }
 0x2e2   :  { %v1927_v22 = vadd.f32 %v5272_v5, %v1926_v57  ;;  %v3039_v0 = vpop.f32.mrb[79].mxu0  ;;  %v5496_v57 = vld [vmem:[%s5539_s2] ss:$0 sm:$0xff]  ;;  %s3420_s2 = smov [#allocation2]  }
 0x2e3   :  { %2456 = vst [vmem:[#allocation2 + $0x328] sm:$0xff] %v2237_v43  ;;  %s2485_s9 = sshll.u32 %s3420_s2, 4  ;;  %s2486_s9 = int_to_ptr.vmem [resolvable:$true] %s2485_s9 }
 0x2e4   :  { %2394 = vst [vmem:[#allocation2 + $0x138] sm:$0xff] %v1927_v22  ;;  %v2241_v12 = vpop.f32.mrb[78].mxu1  ;;  %s3390_s1 = scalar_lea.vmem %s2486_s9, 16000  ;;  %p3395_p1 = scmp.lt.s32.totalorder %s2486_s9, %s2486_s9 }
 0x2e5   :  { %v1931_v54 = vpop.f32.mrb[80].mxu0  ;;  %v2242_v45 = vadd.f32 %v5272_v5, %v2241_v12  ;;  %v3228_v41 = vpop.f32.mrb[79].mxu1  ;;  %p3391_p0 = scmp.ne.s32.totalorder %s2486_s9, %s3390_s1  ;;  %p3396_p2 = scmp.lt.s32.totalorder %s3390_s1, %s3390_s1 }
 0x2e6   :  { %v1932_v21 = vadd.f32 %v5272_v5, %v1931_v54  ;;  %v3042_v6 = vpop.f32.mrb[81].mxu0 }
 0x2e7   :  { %2457 = vst [vmem:[#allocation2 + $0x330] sm:$0xff] %v2242_v45  ;;  %p3397_p3 = por %p3396_p2, %p3395_p1 }
 0x2e8   :  { %2395 = vst [vmem:[#allocation2 + $0x140] sm:$0xff] %v1932_v21  ;;  %v2246_v16 = vpop.f32.mrb[80].mxu1 }
 0x2e9   :  { %v1936_v53 = vpop.f32.mrb[82].mxu0  ;;  %v2247_v40 = vadd.f32 %v5272_v5, %v2246_v16  ;;  %v3231_v10 = vpop.f32.mrb[81].mxu1  ;;  %p3398_p4 = pnand %p3397_p3, %p3391_p0 }
 0x2ea   :  { %v1937_v24 = vadd.f32 %v5272_v5, %v1936_v53  ;;  %v3045_v49 = vpop.f32.mrb[83].mxu0 }
 0x2eb   :  { %2458 = vst [vmem:[#allocation2 + $0x338] sm:$0xff] %v2247_v40 }
 0x2ec   :  { %2396 = vst [vmem:[#allocation2 + $0x148] sm:$0xff] %v1937_v24  ;;  %v2251_v56 = vpop.f32.mrb[82].mxu1 }
 0x2ed   :  { %v1941_v50 = vpop.f32.mrb[84].mxu0  ;;  %v2252_v2 = vadd.f32 %v5272_v5, %v2251_v56  ;;  %v3234_v8 = vpop.f32.mrb[83].mxu1 }
 0x2ee   :  { %v1942_v23 = vadd.f32 %v5272_v5, %v1941_v50  ;;  %v3048_v46 = vpop.f32.mrb[85].mxu0 }
 0x2ef   :  { %2459 = vst [vmem:[#allocation2 + $0x340] sm:$0xff] %v2252_v2 }
 0x2f0   :  { %2397 = vst [vmem:[#allocation2 + $0x150] sm:$0xff] %v1942_v23  ;;  %v2256_v26 = vpop.f32.mrb[84].mxu1 }
 0x2f1   :  { %v1946_v42 = vpop.f32.mrb[86].mxu0  ;;  %v2257_v36 = vadd.f32 %v5272_v5, %v2256_v26  ;;  %v3237_v15 = vpop.f32.mrb[85].mxu1 }
 0x2f2   :  { %v1947_v52 = vadd.f32 %v5272_v5, %v1946_v42  ;;  %v3051_v11 = vpop.f32.mrb[87].mxu0 }
 0x2f3   :  { %2460 = vst [vmem:[#allocation2 + $0x348] sm:$0xff] %v2257_v36 }
 0x2f4   :  { %2398 = vst [vmem:[#allocation2 + $0x158] sm:$0xff] %v1947_v52  ;;  %v2261_v44 = vpop.f32.mrb[86].mxu1 }
 0x2f5   :  { %v1951_v37 = vpop.f32.mrb[88].mxu0  ;;  %v2262_v38 = vadd.f32 %v5272_v5, %v2261_v44  ;;  %v3240_v48 = vpop.f32.mrb[87].mxu1 }
 0x2f6   :  { %v1952_v3 = vadd.f32 %v5272_v5, %v1951_v37  ;;  %v3054_v34 = vpop.f32.mrb[89].mxu0 }
 0x2f7   :  { %2461 = vst [vmem:[#allocation2 + $0x350] sm:$0xff] %v2262_v38 }
 0x2f8   :  { %2399 = vst [vmem:[#allocation2 + $0x160] sm:$0xff] %v1952_v3  ;;  %v2266_v55 = vpop.f32.mrb[88].mxu1 }
 0x2f9   :  { %v1956_v29 = vpop.f32.mrb[90].mxu0  ;;  %v2267_v18 = vadd.f32 %v5272_v5, %v2266_v55  ;;  %v3243_v9 = vpop.f32.mrb[89].mxu1 }
 0x2fa   :  { %v1957_v35 = vadd.f32 %v5272_v5, %v1956_v29  ;;  %v3057_v62 = vpop.f32.mrb[91].mxu0 }
 0x2fb   :  { %2462 = vst [vmem:[#allocation2 + $0x358] sm:$0xff] %v2267_v18 }
 0x2fc   :  { %2400 = vst [vmem:[#allocation2 + $0x168] sm:$0xff] %v1957_v35  ;;  %v2271_v27 = vpop.f32.mrb[90].mxu1 }
 0x2fd   :  { %v1961_v17 = vpop.f32.mrb[92].mxu0  ;;  %v2272_v28 = vadd.f32 %v5272_v5, %v2271_v27  ;;  %v3246_v14 = vpop.f32.mrb[91].mxu1 }
 0x2fe   :  { %v1962_v7 = vadd.f32 %v5272_v5, %v1961_v17  ;;  %v3060_v61 = vpop.f32.mrb[93].mxu0 }
 0x2ff   :  { %2463 = vst [vmem:[#allocation2 + $0x360] sm:$0xff] %v2272_v28 }
 0x300   :  { %2401 = vst [vmem:[#allocation2 + $0x170] sm:$0xff] %v1962_v7  ;;  %v2276_v63 = vpop.f32.mrb[92].mxu1 }
 0x301   :  { %v1966_v60 = vpop.f32.mrb[94].mxu0  ;;  %v2277_v4 = vadd.f32 %v5272_v5, %v2276_v63  ;;  %v3249_v51 = vpop.f32.mrb[93].mxu1 }
 0x302   :  { %v1967_v20 = vadd.f32 %v5272_v5, %v1966_v60  ;;  %v3063_v39 = vpop.f32.mrb[95].mxu0 }
 0x303   :  { %2464 = vst [vmem:[#allocation2 + $0x368] sm:$0xff] %v2277_v4 }
 0x304   :  { %2402 = vst [vmem:[#allocation2 + $0x178] sm:$0xff] %v1967_v20  ;;  %v2281_v13 = vpop.f32.mrb[94].mxu1 }
 0x305   :  { %v1971_v25 = vpop.f32.mrb[96].mxu0  ;;  %v2282_v30 = vadd.f32 %v5272_v5, %v2281_v13  ;;  %v3252_v58 = vpop.f32.mrb[95].mxu1 }
 0x306   :  { %v1972_v1 = vadd.f32 %v5272_v5, %v1971_v25  ;;  %v3066_v32 = vpop.f32.mrb[97].mxu0 }
 0x307   :  { %2465 = vst [vmem:[#allocation2 + $0x370] sm:$0xff] %v2282_v30 }
 0x308   :  { %2403 = vst [vmem:[#allocation2 + $0x180] sm:$0xff] %v1972_v1  ;;  %v2286_v19 = vpop.f32.mrb[96].mxu1 }
 0x309   :  { %v1976_v33 = vpop.f32.mrb[98].mxu0  ;;  %v2287_v47 = vadd.f32 %v5272_v5, %v2286_v19  ;;  %v3255_v31 = vpop.f32.mrb[97].mxu1 }
 0x30a   :  { %v1977_v43 = vadd.f32 %v5496_v57, %v1976_v33  ;;  %v3069_v59 = vpop.f32.mrb[99].mxu0 }
 0x30b   :  { %2466 = vst [vmem:[#allocation2 + $0x378] sm:$0xff] %v2287_v47 }
 0x30c   :  { %2404 = vst [vmem:[#allocation2 + $0x188] sm:$0xff] %v1977_v43  ;;  %v2291_v22 = vpop.f32.mrb[98].mxu1 }
 0x30d   :  { %v1981_v0 = vpop.f32.mrb[100].mxu0  ;;  %v2292_v12 = vadd.f32 %v5496_v57, %v2291_v22  ;;  %v3258_v54 = vpop.f32.mrb[99].mxu1 }
 0x30e   :  { %v1982_v45 = vadd.f32 %v5496_v57, %v1981_v0  ;;  %v3072_v41 = vpop.f32.mrb[101].mxu0 }
 0x30f   :  { %2467 = vst [vmem:[#allocation2 + $0x380] sm:$0xff] %v2292_v12 }
 0x310   :  { %2405 = vst [vmem:[#allocation2 + $0x190] sm:$0xff] %v1982_v45  ;;  %v2296_v5 = vpop.f32.mrb[100].mxu1 }
 0x311   :  { %v1986_v21 = vpop.f32.mrb[102].mxu0  ;;  %v2297_v6 = vadd.f32 %v5496_v57, %v2296_v5  ;;  %v3261_v16 = vpop.f32.mrb[101].mxu1 }
 0x312   :  { %v1987_v53 = vadd.f32 %v5496_v57, %v1986_v21  ;;  %v3075_v40 = vpop.f32.mrb[103].mxu0 }
 0x313   :  { %2468 = vst [vmem:[#allocation2 + $0x388] sm:$0xff] %v2297_v6 }
 0x314   :  { %2406 = vst [vmem:[#allocation2 + $0x198] sm:$0xff] %v1987_v53  ;;  %v2301_v10 = vpop.f32.mrb[102].mxu1 }
 0x315   :  { %v1991_v24 = vpop.f32.mrb[104].mxu0  ;;  %v2302_v49 = vadd.f32 %v5496_v57, %v2301_v10  ;;  %v3264_v56 = vpop.f32.mrb[103].mxu1 }
 0x316   :  { %v1992_v50 = vadd.f32 %v5496_v57, %v1991_v24  ;;  %v3078_v2 = vpop.f32.mrb[105].mxu0 }
 0x317   :  { %2469 = vst [vmem:[#allocation2 + $0x390] sm:$0xff] %v2302_v49 }
 0x318   :  { %2407 = vst [vmem:[#allocation2 + $0x1a0] sm:$0xff] %v1992_v50  ;;  %v2306_v8 = vpop.f32.mrb[104].mxu1 }
 0x319   :  { %v1996_v23 = vpop.f32.mrb[106].mxu0  ;;  %v2307_v46 = vadd.f32 %v5496_v57, %v2306_v8  ;;  %v3267_v26 = vpop.f32.mrb[105].mxu1 }
 0x31a   :  { %v1997_v42 = vadd.f32 %v5496_v57, %v1996_v23  ;;  %v3081_v36 = vpop.f32.mrb[107].mxu0 }
 0x31b   :  { %2470 = vst [vmem:[#allocation2 + $0x398] sm:$0xff] %v2307_v46 }
 0x31c   :  { %2408 = vst [vmem:[#allocation2 + $0x1a8] sm:$0xff] %v1997_v42  ;;  %v2311_v15 = vpop.f32.mrb[106].mxu1 }
 0x31d   :  { %v2001_v52 = vpop.f32.mrb[108].mxu0  ;;  %v2312_v11 = vadd.f32 %v5496_v57, %v2311_v15  ;;  %v3270_v44 = vpop.f32.mrb[107].mxu1 }
 0x31e   :  { %v2002_v37 = vadd.f32 %v5496_v57, %v2001_v52  ;;  %v3084_v38 = vpop.f32.mrb[109].mxu0 }
 0x31f   :  { %2471 = vst [vmem:[#allocation2 + $0x3a0] sm:$0xff] %v2312_v11 }
 0x320   :  { %2409 = vst [vmem:[#allocation2 + $0x1b0] sm:$0xff] %v2002_v37  ;;  %v2316_v48 = vpop.f32.mrb[108].mxu1 }
 0x321   :  { %v2006_v3 = vpop.f32.mrb[110].mxu0  ;;  %v2317_v34 = vadd.f32 %v5496_v57, %v2316_v48  ;;  %v3273_v55 = vpop.f32.mrb[109].mxu1 }
 0x322   :  { %v2007_v29 = vadd.f32 %v5496_v57, %v2006_v3  ;;  %v3087_v18 = vpop.f32.mrb[111].mxu0 }
 0x323   :  { %2472 = vst [vmem:[#allocation2 + $0x3a8] sm:$0xff] %v2317_v34 }
 0x324   :  { %2410 = vst [vmem:[#allocation2 + $0x1b8] sm:$0xff] %v2007_v29 }
 0x325   :  { %v2011_v9 = vpop.f32.mrb[112].mxu0 }
 0x326   :  { %v2012_v35 = vadd.f32 %v5496_v57, %v2011_v9  ;;  %v3090_v62 = vpop.f32.mrb[113].mxu0 }
 0x328   :  { %2411 = vst [vmem:[#allocation2 + $0x1c0] sm:$0xff] %v2012_v35 }
 0x32c   :  { %v2016_v27 = vpop.f32.mrb[114].mxu0 }
 0x32d   :  { %v2017_v17 = vadd.f32 %v5496_v57, %v2016_v27  ;;  %v3093_v28 = vpop.f32.mrb[115].mxu0  ;;  %v2321_v14 = vpop.f32.mrb[110].mxu1 }
 0x32e   :  { %v2322_v7 = vadd.f32 %v5496_v57, %v2321_v14  ;;  %v3276_v61 = vpop.f32.mrb[111].mxu1 }
 0x32f   :  { %2412 = vst [vmem:[#allocation2 + $0x1c8] sm:$0xff] %v2017_v17 }
 0x330   :  { %2473 = vst [vmem:[#allocation2 + $0x3b0] sm:$0xff] %v2322_v7 }
 0x331   :  { %v2326_v63 = vpop.f32.mrb[112].mxu1 }
 0x332   :  { %v2327_v60 = vadd.f32 %v5496_v57, %v2326_v63  ;;  %v3279_v4 = vpop.f32.mrb[113].mxu1 }
 0x334   :  { %2474 = vst [vmem:[#allocation2 + $0x3b8] sm:$0xff] %v2327_v60 }
 0x335   :  { %v2331_v51 = vpop.f32.mrb[114].mxu1 }
 0x336   :  { %v2021_v20 = vpop.f32.mrb[116].mxu0  ;;  %v2332_v39 = vadd.f32 %v5496_v57, %v2331_v51  ;;  %v3282_v25 = vpop.f32.mrb[115].mxu1 }
 0x337   :  { %v2022_v13 = vadd.f32 %v5496_v57, %v2021_v20  ;;  %v3096_v30 = vpop.f32.mrb[117].mxu0 }
 0x338   :  { %2475 = vst [vmem:[#allocation2 + $0x3c0] sm:$0xff] %v2332_v39 }
 0x339   :  { %2413 = vst [vmem:[#allocation2 + $0x1d0] sm:$0xff] %v2022_v13 }
 0x33a   :  { %v2026_v58 = vpop.f32.mrb[118].mxu0 }
 0x33b   :  { %v2027_v1 = vadd.f32 %v5496_v57, %v2026_v58  ;;  %v3099_v32 = vpop.f32.mrb[119].mxu0 }
 0x33d   :  { %2414 = vst [vmem:[#allocation2 + $0x1d8] sm:$0xff] %v2027_v1 }
 0x340   :  { %v2336_v19 = vpop.f32.mrb[116].mxu1 }
 0x341   :  { %v2337_v33 = vadd.f32 %v5496_v57, %v2336_v19  ;;  %v3285_v47 = vpop.f32.mrb[117].mxu1 }
 0x343   :  { %2476 = vst [vmem:[#allocation2 + $0x3c8] sm:$0xff] %v2337_v33 }
 0x344   :  { %v2031_v31 = vpop.f32.mrb[120].mxu0 }
 0x345   :  { %v2032_v43 = vadd.f32 %v5496_v57, %v2031_v31  ;;  %v3102_v59 = vpop.f32.mrb[121].mxu0 }
 0x347   :  { %2415 = vst [vmem:[#allocation2 + $0x1e0] sm:$0xff] %v2032_v43 }
 0x348   :  { %v2341_v22 = vpop.f32.mrb[118].mxu1 }
 0x349   :  { %v2342_v0 = vadd.f32 %v5496_v57, %v2341_v22  ;;  %v3288_v12 = vpop.f32.mrb[119].mxu1 }
 0x34b   :  { %2477 = vst [vmem:[#allocation2 + $0x3d0] sm:$0xff] %v2342_v0 }
 0x34c   :  { %v2036_v54 = vpop.f32.mrb[122].mxu0  ;;  %v2346_v45 = vpop.f32.mrb[120].mxu1 }
 0x34d   :  { %v2037_v41 = vadd.f32 %v5496_v57, %v2036_v54  ;;  %v2347_v5 = vadd.f32 %v5496_v57, %v2346_v45  ;;  %v3105_v21 = vpop.f32.mrb[123].mxu0  ;;  %v3291_v6 = vpop.f32.mrb[121].mxu1 }
 0x34f   :  { %2416 = vst [vmem:[#allocation2 + $0x1e8] sm:$0xff] %v2037_v41  ;;  %2478 = vst [vmem:[#allocation2 + $0x3d8] sm:$0xff] %v2347_v5 }
 0x351   :  { %v2351_v16 = vpop.f32.mrb[122].mxu1 }
 0x352   :  { %v2352_v53 = vadd.f32 %v5496_v57, %v2351_v16  ;;  %v3294_v40 = vpop.f32.mrb[123].mxu1 }
 0x354   :  { %2479 = vst [vmem:[#allocation2 + $0x3e0] sm:$0xff] %v2352_v53 }
 0x356   :  { %v2041_v10 = vpop.f32.mrb[124].mxu0 }
 0x357   :  { %v2042_v24 = vadd.f32 %v5496_v57, %v2041_v10  ;;  %v3108_v49 = vpop.f32.mrb[125].mxu0 }
 0x359   :  { %2417 = vst [vmem:[#allocation2 + $0x1f0] sm:$0xff] %v2042_v24 }
 0x35a   :  { %3401 = shalt.err (!%p3398_p4)
}
 0x35b   :  { %s3402_s12 = scalar_lea.hbm %s5540_s3, 16000 }
 0x35c   :  { %p3403_p5 = scmp.ne.s32.totalorder %s5540_s3, %s3402_s12  ;;  %p3406_p6 = scmp.lt.u32.totalorder %s3402_s12, %s5540_s3 }
 0x35e   :  { %p3408_p7 = pnand %p3406_p6, %p3403_p5 }
 0x360   :  { %3411 = shalt.err (!%p3408_p7)
}
 0x361   :  { %s3421_s17 = smov 128   ;;  %s3422_s18 = smov 8  }
 0x362   :  { %2491 = dma.vmem_to_hbm [thread:$0]  %s2486_s9, 16000, %s5540_s3, [#allocation3], %s3421_s17, %s3421_s17, %s3422_s18  }
 0x363   :  { %3412 = dma.done.wait [#allocation3], 16000  }
 0x364   :  { %3413 = vsyncadd [#allocation3], 4294951296 }
 0x365   :  { %2495 = vsyncpa [#allocation3], 1 }

</bundles_post_ra>
